<compile_context>
chip_gen: v5e
topology: v5e:2x2
jax: 0.10.0
libtpu: 0.0.40
codegen_flags: <defaults>
</compile_context>

<pallas_src>
import numpy as np
import jax
import jax.numpy as jnp
from jax.experimental import pallas as pl
from jax.experimental.pallas import tpu as pltpu

E = 64        # embeddingSize
N_PTS = 128   # number of keypoints (module default 512; small demo size)
B = 8         # number of grid vertices (batch dim of `motion`)


# ---------------------------------------------------------------------------
# Parameter-slab layout: every weight [Cout, Cin] and bias [Cout, 1] lives at
# an 8-aligned row offset of one [P_ROWS, 128] slab (cols 0..Cin-1 / col 0).
# ---------------------------------------------------------------------------
def _make_layout():
    blocks = [
        # weights
        ('we',     E,      2),       # embedding (distance)
        ('wem',    E,      2),       # embedding_motion
        ('w1',     E,      E),       # conv1
        ('wm1',    2 * E,  E),       # m_conv1
        ('wm2',    2 * E,  2 * E),   # m_conv2
        ('wm3',    E,      2 * E),   # m_conv3
        ('wf1a',   E,      E),       # fuse_conv1, motion half
        ('w2',     E // 2, E),       # conv2
        ('wfused', E + 1,  E // 2),  # [fuse_conv1 distance half ; conv3]
        ('wf2p',   E + 1,  E),       # fuse_conv2 + ones-row (den fold)
        ('wd',     2,      E),       # decoder (no bias)
        # biases ([C, 1] columns at lane 0)
        ('be',     E,      1),
        ('bem',    E,      1),
        ('b1',     E,      1),
        ('bm1',    2 * E,  1),
        ('bm2',    2 * E,  1),
        ('bm3',    E,      1),
        ('b2',     E // 2, 1),
        ('bf1',    E,      1),
        ('bf2p',   E + 1,  1),
    ]
    layout, off = {}, 0
    for name, r, c in blocks:
        layout[name] = (off, r, c)
        off += -(-r // 8) * 8           # next block at an 8-aligned row
    return layout, off


_LAYOUT, P_ROWS = _make_layout()


def _lrelu(x):
    # LeakyReLU(0.1) as 2 VPU ops (mul+max) instead of 3 (cmp+mul+select).
    return jnp.maximum(x, 0.1 * x)


def _p(ref, name):
    r0, r, c = _LAYOUT[name]
    return ref[r0:r0 + r, 0:c]


def motionpro_kernel(di_ref, mi_ref, seg_ref, p_ref, out_ref):
    nb = out_ref.shape[1]                                      # grid vertices (static)

    def conv(wname, bname, x):
        # 1x1 Conv1d == per-position channel matmul on the MXU.
        return (jnp.dot(_p(p_ref, wname), x, preferred_element_type=jnp.float32)
                + _p(p_ref, bname))

    def embed(wname, bname, x):
        # Cin = 2: a depth-2 MXU contraction is wasteful -> 2 VPU broadcast FMAs.
        r0, r, _ = _LAYOUT[wname]
        w = p_ref[r0:r0 + r, 0:2]
        return w[:, 0:1] * x[0:1, :] + w[:, 1:2] * x[1:2, :] + _p(p_ref, bname)

    # ---- motion branch: shared across vertices, computed once on [2, N] ----
    em = jnp.maximum(embed('wem', 'bem', mi_ref[...]), 0.0)    # [E,  N]
    em = _lrelu(conv('wm1', 'bm1', em))                        # [2E, N]
    em = _lrelu(conv('wm2', 'bm2', em))                        # [2E, N]
    em = _lrelu(conv('wm3', 'bm3', em))                        # [E,  N]
    fm = conv('wf1a', 'bf1', em)                               # [E,  N] fuse_conv1 motion half (bias once)

    # ---- distance branch on the folded [2, B*N] slab ----
    ed = jnp.maximum(embed('we', 'be', di_ref[...]), 0.0)      # [E,   L]
    ed = _lrelu(conv('w1', 'b1', ed))                          # [E,   L]
    ed = _lrelu(conv('w2', 'b2', ed))                          # [E/2, L]

    # fuse_conv1 (distance half) and conv3 logits share `ed` -> ONE matmul.
    fused = jnp.dot(_p(p_ref, 'wfused'), ed,
                    preferred_element_type=jnp.float32)        # [E+1, L]
    logits = fused[E:E + 1, :]                                 # [1, L]; b3 dropped (cancels in softmax)

    # unnormalized softmax weights; a global max shift is exact per segment.
    m = jnp.max(logits, axis=1, keepdims=True)                 # [1, 1]
    e = jnp.exp(logits - m)                                    # [1, L]

    # ---- fuse ----
    fm_rep = jnp.concatenate([fm] * nb, axis=1)                # [E, L] lane-aligned replicate
    f = _lrelu(fm_rep + fused[0:E, :])                         # [E,   L]
    f = _lrelu(conv('wf2p', 'bf2p', f))                        # [E+1, L]; row E == 1.0 exactly

    # ---- per-vertex weighted pooling: num AND den from one segment-sum matmul ----
    numden = jnp.dot(f * e, seg_ref[...],
                     preferred_element_type=jnp.float32)       # [E+1, B]
    pooled = numden[0:E, :] * pl.reciprocal(numden[E:E + 1, :], approx=False)  # [E, B]

    # ---- linear decoder (no bias) ----
    out_ref[...] = jnp.dot(_p(p_ref, 'wd'), pooled,
                           preferred_element_type=jnp.float32)  # [2, B]


def pack_params(params):
    """Host-side: fuse weights and pack everything into one [P_ROWS, 128] slab."""
    (we, be, w1, b1, w2, b2, w3, b3, wem, bem, wm1, bm1, wm2, bm2,
     wm3, bm3, wf1, bf1, wf2, bf2, wd) = params
    esz = wf1.shape[0]
    wf1a = wf1[:, :esz]                                        # motion half   [E, E]
    wf1b = wf1[:, esz:]                                        # distance half [E, E//2]
    # fuse_conv1 (distance half) + conv3 share the same RHS -> stack rows.
    wfused = jnp.concatenate([wf1b, w3], axis=0)               # [E+1, E//2]
    # fold the softmax denominator into fuse_conv2: extra channel with zero
    # weights and bias 1.0 -> leaky-ReLU gives a constant-ones row.
    wf2p = jnp.concatenate([wf2, jnp.zeros((1, esz), wf2.dtype)], axis=0)  # [E+1, E]
    bf2p = jnp.concatenate([bf2, jnp.ones((1, 1), bf2.dtype)], axis=0)     # [E+1, 1]
    del b3  # uniform logit shift: cancels exactly in the softmax

    tensors = {'we': we, 'wem': wem, 'w1': w1, 'wm1': wm1, 'wm2': wm2,
               'wm3': wm3, 'wf1a': wf1a, 'w2': w2, 'wfused': wfused,
               'wf2p': wf2p, 'wd': wd,
               'be': be, 'bem': bem, 'b1': b1, 'bm1': bm1, 'bm2': bm2,
               'bm3': bm3, 'b2': b2, 'bf1': bf1, 'bf2p': bf2p}
    slab = jnp.zeros((P_ROWS, 128), jnp.float32)
    for name, arr in tensors.items():
        r0, r, c = _LAYOUT[name]
        slab = slab.at[r0:r0 + r, 0:c].set(arr.astype(jnp.float32))
    return slab


def motionpro_forward(motion, params):
    Bv, c4, n = motion.shape
    assert c4 == 4
    L = Bv * n
    pslab = pack_params(params)                                          # one param DMA

    # layout plumbing in plain XLA: fold the vertex axis into the lane axis
    di = jnp.transpose(motion[:, 0:2, :], (1, 0, 2)).reshape(2, L)       # [2, B*N]
    mi = motion[0, 2:4, :]                                               # [2, N]
    # segment-sum matrix: column b selects lanes [b*n, (b+1)*n)
    seg = jnp.repeat(jnp.eye(Bv, dtype=jnp.float32), n, axis=0)          # [L, B]

    out = pl.pallas_call(
        motionpro_kernel,
        out_shape=jax.ShapeDtypeStruct((2, Bv), jnp.float32),
        compiler_params=pltpu.CompilerParams(vmem_limit_bytes=32 * 1024 * 1024),
    )(di, mi, seg, pslab)
    return out.T                                                         # [B, 2]


def init_params(key):
    """Deterministic PyTorch-default-style uniform init: U(-1/sqrt(fan_in), 1/sqrt(fan_in))."""
    conv_shapes = [
        ((E, 2), 2),                    # embedding
        ((E, E), E),                    # conv1
        ((E // 2, E), E),               # conv2
        ((1, E // 2), E // 2),          # conv3
        ((E, 2), 2),                    # embedding_motion
        ((2 * E, E), E),                # m_conv1
        ((2 * E, 2 * E), 2 * E),        # m_conv2
        ((E, 2 * E), 2 * E),            # m_conv3
        ((E, E + E // 2), E + E // 2),  # fuse_conv1
        ((E, E), E),                    # fuse_conv2
    ]
    keys = jax.random.split(key, 2 * len(conv_shapes) + 1)
    params = []
    ki = 0
    for w_shape, fan_in in conv_shapes:
        bound = 1.0 / float(np.sqrt(fan_in))
        params.append(jax.random.uniform(keys[ki], w_shape, jnp.float32, -bound, bound))
        ki += 1
        params.append(jax.random.uniform(keys[ki], (w_shape[0], 1), jnp.float32, -bound, bound))
        ki += 1
    bound = 1.0 / float(np.sqrt(E))
    params.append(jax.random.uniform(keys[ki], (2, E), jnp.float32, -bound, bound))  # decoder
    return params


def reference(motion, params):
    (we, be, w1, b1, w2, b2, w3, b3, wem, bem, wm1, bm1, wm2, bm2,
     wm3, bm3, wf1, bf1, wf2, bf2, wd) = params

    def conv(w, bb, x):
        return jnp.einsum('oc,bcn->bon', w, x) + bb[None, :, :]

    lrelu = lambda x: jnp.where(x > 0, x, 0.1 * x)
    di = motion[:, 0:2, :]
    mi = motion[0:1, 2:4, :]
    ed = jnp.maximum(conv(we, be, di), 0.0)
    ed = lrelu(conv(w1, b1, ed))
    ed = lrelu(conv(w2, b2, ed))
    dw = jax.nn.softmax(conv(w3, b3, ed), axis=2)
    em = jnp.maximum(conv(wem, bem, mi), 0.0)
    em = lrelu(conv(wm1, bm1, em))
    em = lrelu(conv(wm2, bm2, em))
    em = lrelu(conv(wm3, bm3, em))
    em = jnp.tile(em, (motion.shape[0], 1, 1))
    fused = jnp.concatenate([em, ed], axis=1)
    f = lrelu(conv(wf1, bf1, fused))
    f = lrelu(conv(wf2, bf2, f))
    pooled = jnp.sum(f * dw, axis=2)
    return pooled @ wd.T


if __name__ == "__main__":
    key = jax.random.PRNGKey(0)
    pkey, xkey = jax.random.split(key)
    params = init_params(pkey)
    motion = jax.random.normal(xkey, (B, 4, N_PTS), jnp.float32)

    out = motionpro_forward(motion, params)
    out = jax.block_until_ready(out)

    ref = reference(motion, params)
    np.testing.assert_allclose(np.asarray(out), np.asarray(ref), rtol=5e-4, atol=5e-4)
    print("KERNEL_OK")
</pallas_src>

<mosaic_0001>
module attributes {stable_mosaic.version = 11 : i64} {
  func.func @motionpro_kernel(%arg0: memref<2x1024xf32, #tpu.memory_space<vmem>>, %arg1: memref<2x128xf32, #tpu.memory_space<vmem>>, %arg2: memref<1024x8xf32, #tpu.memory_space<vmem>>, %arg3: memref<1440x128xf32, #tpu.memory_space<vmem>>, %arg4: memref<2x8xf32, #tpu.memory_space<vmem>>) attributes {dimension_semantics = [], scalar_prefetch = 0 : i64, scratch_operands = 0 : i64, tpu.core_type = #tpu.core_type<tc>} {
    %c0 = arith.constant 0 : index
    %c0_0 = arith.constant 0 : index
    %0 = vector.load %arg1[%c0, %c0_0] : memref<2x128xf32, #tpu.memory_space<vmem>>, vector<2x128xf32>
    %c64 = arith.constant 64 : index
    %c0_1 = arith.constant 0 : index
    %1 = vector.load %arg3[%c64, %c0_1] : memref<1440x128xf32, #tpu.memory_space<vmem>>, vector<64x2xf32>
    %2 = vector.extract_strided_slice %1 {offsets = [0, 0], sizes = [64, 1], strides = [1, 1]} : vector<64x2xf32> to vector<64x1xf32>
    %3 = vector.extract_strided_slice %0 {offsets = [0, 0], sizes = [1, 128], strides = [1, 1]} : vector<2x128xf32> to vector<1x128xf32>
    %4 = vector.broadcast %2 : vector<64x1xf32> to vector<64x128xf32>
    %5 = vector.broadcast %3 : vector<1x128xf32> to vector<64x128xf32>
    %6 = arith.mulf %4, %5 : vector<64x128xf32>
    %7 = vector.extract_strided_slice %1 {offsets = [0, 1], sizes = [64, 1], strides = [1, 1]} : vector<64x2xf32> to vector<64x1xf32>
    %8 = vector.extract_strided_slice %0 {offsets = [1, 0], sizes = [1, 128], strides = [1, 1]} : vector<2x128xf32> to vector<1x128xf32>
    %9 = vector.broadcast %7 : vector<64x1xf32> to vector<64x128xf32>
    %10 = vector.broadcast %8 : vector<1x128xf32> to vector<64x128xf32>
    %11 = arith.mulf %9, %10 : vector<64x128xf32>
    %12 = arith.addf %6, %11 : vector<64x128xf32>
    %c824 = arith.constant 824 : index
    %c0_2 = arith.constant 0 : index
    %13 = vector.load %arg3[%c824, %c0_2] : memref<1440x128xf32, #tpu.memory_space<vmem>>, vector<64x1xf32>
    %14 = vector.broadcast %13 : vector<64x1xf32> to vector<64x128xf32>
    %15 = arith.addf %12, %14 : vector<64x128xf32>
    %cst = arith.constant 0.000000e+00 : f32
    %16 = vector.broadcast %cst : f32 to vector<64x128xf32>
    %17 = arith.maximumf %15, %16 : vector<64x128xf32>
    %c192 = arith.constant 192 : index
    %c0_3 = arith.constant 0 : index
    %18 = vector.load %arg3[%c192, %c0_3] : memref<1440x128xf32, #tpu.memory_space<vmem>>, vector<128x64xf32>
    %cst_4 = arith.constant dense<0.000000e+00> : vector<128x128xf32>
    %19 = tpu.matmul %18, %17, %cst_4 {dimension_numbers = #tpu.dot_dimension_numbers<[1], [0], [0], [1], [0, 0, 1, 1], [], []>} : vector<128x64xf32>, vector<64x128xf32>, vector<128x128xf32> -> vector<128x128xf32>
    %c952 = arith.constant 952 : index
    %c0_5 = arith.constant 0 : index
    %20 = vector.load %arg3[%c952, %c0_5] : memref<1440x128xf32, #tpu.memory_space<vmem>>, vector<128x1xf32>
    %21 = vector.broadcast %20 : vector<128x1xf32> to vector<128x128xf32>
    %22 = arith.addf %19, %21 : vector<128x128xf32>
    %cst_6 = arith.constant 1.000000e-01 : f32
    %23 = vector.broadcast %cst_6 : f32 to vector<128x128xf32>
    %24 = arith.mulf %23, %22 : vector<128x128xf32>
    %25 = arith.maximumf %22, %24 : vector<128x128xf32>
    %c320 = arith.constant 320 : index
    %c0_7 = arith.constant 0 : index
    %26 = vector.load %arg3[%c320, %c0_7] : memref<1440x128xf32, #tpu.memory_space<vmem>>, vector<128x128xf32>
    %cst_8 = arith.constant dense<0.000000e+00> : vector<128x128xf32>
    %27 = tpu.matmul %26, %25, %cst_8 {dimension_numbers = #tpu.dot_dimension_numbers<[1], [0], [0], [1], [0, 0, 1, 1], [], []>} : vector<128x128xf32>, vector<128x128xf32>, vector<128x128xf32> -> vector<128x128xf32>
    %c1080 = arith.constant 1080 : index
    %c0_9 = arith.constant 0 : index
    %28 = vector.load %arg3[%c1080, %c0_9] : memref<1440x128xf32, #tpu.memory_space<vmem>>, vector<128x1xf32>
    %29 = vector.broadcast %28 : vector<128x1xf32> to vector<128x128xf32>
    %30 = arith.addf %27, %29 : vector<128x128xf32>
    %cst_10 = arith.constant 1.000000e-01 : f32
    %31 = vector.broadcast %cst_10 : f32 to vector<128x128xf32>
    %32 = arith.mulf %31, %30 : vector<128x128xf32>
    %33 = arith.maximumf %30, %32 : vector<128x128xf32>
    %c448 = arith.constant 448 : index
    %c0_11 = arith.constant 0 : index
    %34 = vector.load %arg3[%c448, %c0_11] : memref<1440x128xf32, #tpu.memory_space<vmem>>, vector<64x128xf32>
    %cst_12 = arith.constant dense<0.000000e+00> : vector<64x128xf32>
    %35 = tpu.matmul %34, %33, %cst_12 {dimension_numbers = #tpu.dot_dimension_numbers<[1], [0], [0], [1], [0, 0, 1, 1], [], []>} : vector<64x128xf32>, vector<128x128xf32>, vector<64x128xf32> -> vector<64x128xf32>
    %c1208 = arith.constant 1208 : index
    %c0_13 = arith.constant 0 : index
    %36 = vector.load %arg3[%c1208, %c0_13] : memref<1440x128xf32, #tpu.memory_space<vmem>>, vector<64x1xf32>
    %37 = vector.broadcast %36 : vector<64x1xf32> to vector<64x128xf32>
    %38 = arith.addf %35, %37 : vector<64x128xf32>
    %cst_14 = arith.constant 1.000000e-01 : f32
    %39 = vector.broadcast %cst_14 : f32 to vector<64x128xf32>
    %40 = arith.mulf %39, %38 : vector<64x128xf32>
    %41 = arith.maximumf %38, %40 : vector<64x128xf32>
    %c512 = arith.constant 512 : index
    %c0_15 = arith.constant 0 : index
    %42 = vector.load %arg3[%c512, %c0_15] : memref<1440x128xf32, #tpu.memory_space<vmem>>, vector<64x64xf32>
    %cst_16 = arith.constant dense<0.000000e+00> : vector<64x128xf32>
    %43 = tpu.matmul %42, %41, %cst_16 {dimension_numbers = #tpu.dot_dimension_numbers<[1], [0], [0], [1], [0, 0, 1, 1], [], []>} : vector<64x64xf32>, vector<64x128xf32>, vector<64x128xf32> -> vector<64x128xf32>
    %c1304 = arith.constant 1304 : index
    %c0_17 = arith.constant 0 : index
    %44 = vector.load %arg3[%c1304, %c0_17] : memref<1440x128xf32, #tpu.memory_space<vmem>>, vector<64x1xf32>
    %45 = vector.broadcast %44 : vector<64x1xf32> to vector<64x128xf32>
    %46 = arith.addf %43, %45 : vector<64x128xf32>
    %c0_18 = arith.constant 0 : index
    %c0_19 = arith.constant 0 : index
    %47 = vector.load %arg0[%c0_18, %c0_19] : memref<2x1024xf32, #tpu.memory_space<vmem>>, vector<2x1024xf32>
    %c0_20 = arith.constant 0 : index
    %c0_21 = arith.constant 0 : index
    %48 = vector.load %arg3[%c0_20, %c0_21] : memref<1440x128xf32, #tpu.memory_space<vmem>>, vector<64x2xf32>
    %49 = vector.extract_strided_slice %48 {offsets = [0, 0], sizes = [64, 1], strides = [1, 1]} : vector<64x2xf32> to vector<64x1xf32>
    %50 = vector.extract_strided_slice %47 {offsets = [0, 0], sizes = [1, 1024], strides = [1, 1]} : vector<2x1024xf32> to vector<1x1024xf32>
    %51 = vector.broadcast %49 : vector<64x1xf32> to vector<64x1024xf32>
    %52 = vector.broadcast %50 : vector<1x1024xf32> to vector<64x1024xf32>
    %53 = arith.mulf %51, %52 : vector<64x1024xf32>
    %54 = vector.extract_strided_slice %48 {offsets = [0, 1], sizes = [64, 1], strides = [1, 1]} : vector<64x2xf32> to vector<64x1xf32>
    %55 = vector.extract_strided_slice %47 {offsets = [1, 0], sizes = [1, 1024], strides = [1, 1]} : vector<2x1024xf32> to vector<1x1024xf32>
    %56 = vector.broadcast %54 : vector<64x1xf32> to vector<64x1024xf32>
    %57 = vector.broadcast %55 : vector<1x1024xf32> to vector<64x1024xf32>
    %58 = arith.mulf %56, %57 : vector<64x1024xf32>
    %59 = arith.addf %53, %58 : vector<64x1024xf32>
    %c760 = arith.constant 760 : index
    %c0_22 = arith.constant 0 : index
    %60 = vector.load %arg3[%c760, %c0_22] : memref<1440x128xf32, #tpu.memory_space<vmem>>, vector<64x1xf32>
    %61 = vector.broadcast %60 : vector<64x1xf32> to vector<64x1024xf32>
    %62 = arith.addf %59, %61 : vector<64x1024xf32>
    %cst_23 = arith.constant 0.000000e+00 : f32
    %63 = vector.broadcast %cst_23 : f32 to vector<64x1024xf32>
    %64 = arith.maximumf %62, %63 : vector<64x1024xf32>
    %c128 = arith.constant 128 : index
    %c0_24 = arith.constant 0 : index
    %65 = vector.load %arg3[%c128, %c0_24] : memref<1440x128xf32, #tpu.memory_space<vmem>>, vector<64x64xf32>
    %cst_25 = arith.constant dense<0.000000e+00> : vector<64x1024xf32>
    %66 = tpu.matmul %65, %64, %cst_25 {dimension_numbers = #tpu.dot_dimension_numbers<[1], [0], [0], [1], [0, 0, 1, 1], [], []>} : vector<64x64xf32>, vector<64x1024xf32>, vector<64x1024xf32> -> vector<64x1024xf32>
    %c888 = arith.constant 888 : index
    %c0_26 = arith.constant 0 : index
    %67 = vector.load %arg3[%c888, %c0_26] : memref<1440x128xf32, #tpu.memory_space<vmem>>, vector<64x1xf32>
    %68 = vector.broadcast %67 : vector<64x1xf32> to vector<64x1024xf32>
    %69 = arith.addf %66, %68 : vector<64x1024xf32>
    %cst_27 = arith.constant 1.000000e-01 : f32
    %70 = vector.broadcast %cst_27 : f32 to vector<64x1024xf32>
    %71 = arith.mulf %70, %69 : vector<64x1024xf32>
    %72 = arith.maximumf %69, %71 : vector<64x1024xf32>
    %c576 = arith.constant 576 : index
    %c0_28 = arith.constant 0 : index
    %73 = vector.load %arg3[%c576, %c0_28] : memref<1440x128xf32, #tpu.memory_space<vmem>>, vector<32x64xf32>
    %cst_29 = arith.constant dense<0.000000e+00> : vector<32x1024xf32>
    %74 = tpu.matmul %73, %72, %cst_29 {dimension_numbers = #tpu.dot_dimension_numbers<[1], [0], [0], [1], [0, 0, 1, 1], [], []>} : vector<32x64xf32>, vector<64x1024xf32>, vector<32x1024xf32> -> vector<32x1024xf32>
    %c1272 = arith.constant 1272 : index
    %c0_30 = arith.constant 0 : index
    %75 = vector.load %arg3[%c1272, %c0_30] : memref<1440x128xf32, #tpu.memory_space<vmem>>, vector<32x1xf32>
    %76 = vector.broadcast %75 : vector<32x1xf32> to vector<32x1024xf32>
    %77 = arith.addf %74, %76 : vector<32x1024xf32>
    %cst_31 = arith.constant 1.000000e-01 : f32
    %78 = vector.broadcast %cst_31 : f32 to vector<32x1024xf32>
    %79 = arith.mulf %78, %77 : vector<32x1024xf32>
    %80 = arith.maximumf %77, %79 : vector<32x1024xf32>
    %c608 = arith.constant 608 : index
    %c0_32 = arith.constant 0 : index
    %81 = vector.load %arg3[%c608, %c0_32] : memref<1440x128xf32, #tpu.memory_space<vmem>>, vector<65x32xf32>
    %cst_33 = arith.constant dense<0.000000e+00> : vector<65x1024xf32>
    %82 = tpu.matmul %81, %80, %cst_33 {dimension_numbers = #tpu.dot_dimension_numbers<[1], [0], [0], [1], [0, 0, 1, 1], [], []>} : vector<65x32xf32>, vector<32x1024xf32>, vector<65x1024xf32> -> vector<65x1024xf32>
    %83 = vector.extract_strided_slice %82 {offsets = [64, 0], sizes = [1, 1024], strides = [1, 1]} : vector<65x1024xf32> to vector<1x1024xf32>
    %cst_34 = arith.constant dense<0xFF800000> : vector<1xf32>
    %84 = vector.multi_reduction <maximumf>, %83, %cst_34 [1] : vector<1x1024xf32> to vector<1xf32>
    %85 = vector.shape_cast %84 : vector<1xf32> to vector<1x1xf32>
    %86 = vector.broadcast %85 : vector<1x1xf32> to vector<1x1024xf32>
    %87 = arith.subf %83, %86 : vector<1x1024xf32>
    %88 = math.exp %87 : vector<1x1024xf32>
    %89 = tpu.concatenate %46, %46, %46, %46, %46, %46, %46, %46 in 1 : vector<64x128xf32>, vector<64x128xf32>, vector<64x128xf32>, vector<64x128xf32>, vector<64x128xf32>, vector<64x128xf32>, vector<64x128xf32>, vector<64x128xf32> -> vector<64x1024xf32>
    %90 = vector.extract_strided_slice %82 {offsets = [0, 0], sizes = [64, 1024], strides = [1, 1]} : vector<65x1024xf32> to vector<64x1024xf32>
    %91 = arith.addf %89, %90 : vector<64x1024xf32>
    %cst_35 = arith.constant 1.000000e-01 : f32
    %92 = vector.broadcast %cst_35 : f32 to vector<64x1024xf32>
    %93 = arith.mulf %92, %91 : vector<64x1024xf32>
    %94 = arith.maximumf %91, %93 : vector<64x1024xf32>
    %c680 = arith.constant 680 : index
    %c0_36 = arith.constant 0 : index
    %95 = vector.load %arg3[%c680, %c0_36] : memref<1440x128xf32, #tpu.memory_space<vmem>>, vector<65x64xf32>
    %cst_37 = arith.constant dense<0.000000e+00> : vector<65x1024xf32>
    %96 = tpu.matmul %95, %94, %cst_37 {dimension_numbers = #tpu.dot_dimension_numbers<[1], [0], [0], [1], [0, 0, 1, 1], [], []>} : vector<65x64xf32>, vector<64x1024xf32>, vector<65x1024xf32> -> vector<65x1024xf32>
    %c1368 = arith.constant 1368 : index
    %c0_38 = arith.constant 0 : index
    %97 = vector.load %arg3[%c1368, %c0_38] : memref<1440x128xf32, #tpu.memory_space<vmem>>, vector<65x1xf32>
    %98 = vector.broadcast %97 : vector<65x1xf32> to vector<65x1024xf32>
    %99 = arith.addf %96, %98 : vector<65x1024xf32>
    %cst_39 = arith.constant 1.000000e-01 : f32
    %100 = vector.broadcast %cst_39 : f32 to vector<65x1024xf32>
    %101 = arith.mulf %100, %99 : vector<65x1024xf32>
    %102 = arith.maximumf %99, %101 : vector<65x1024xf32>
    %103 = vector.broadcast %88 : vector<1x1024xf32> to vector<65x1024xf32>
    %104 = arith.mulf %102, %103 : vector<65x1024xf32>
    %c0_40 = arith.constant 0 : index
    %c0_41 = arith.constant 0 : index
    %105 = vector.load %arg2[%c0_40, %c0_41] : memref<1024x8xf32, #tpu.memory_space<vmem>>, vector<1024x8xf32>
    %cst_42 = arith.constant dense<0.000000e+00> : vector<65x8xf32>
    %106 = tpu.matmul %104, %105, %cst_42 {dimension_numbers = #tpu.dot_dimension_numbers<[1], [0], [0], [1], [0, 0, 1, 1], [], []>} : vector<65x1024xf32>, vector<1024x8xf32>, vector<65x8xf32> -> vector<65x8xf32>
    %107 = vector.extract_strided_slice %106 {offsets = [0, 0], sizes = [64, 8], strides = [1, 1]} : vector<65x8xf32> to vector<64x8xf32>
    %108 = vector.extract_strided_slice %106 {offsets = [64, 0], sizes = [1, 8], strides = [1, 1]} : vector<65x8xf32> to vector<1x8xf32>
    %109 = tpu.reciprocal %108 : vector<1x8xf32> -> vector<1x8xf32>
    %110 = vector.broadcast %109 : vector<1x8xf32> to vector<64x8xf32>
    %111 = arith.mulf %107, %110 : vector<64x8xf32>
    %c752 = arith.constant 752 : index
    %c0_43 = arith.constant 0 : index
    %112 = vector.load %arg3[%c752, %c0_43] : memref<1440x128xf32, #tpu.memory_space<vmem>>, vector<2x64xf32>
    %cst_44 = arith.constant dense<0.000000e+00> : vector<2x8xf32>
    %113 = tpu.matmul %112, %111, %cst_44 {dimension_numbers = #tpu.dot_dimension_numbers<[1], [0], [0], [1], [0, 0, 1, 1], [], []>} : vector<2x64xf32>, vector<64x8xf32>, vector<2x8xf32> -> vector<2x8xf32>
    %c0_45 = arith.constant 0 : index
    %c0_46 = arith.constant 0 : index
    %114 = vector.load %arg4[%c0_45, %c0_46] : memref<2x8xf32, #tpu.memory_space<vmem>>, vector<2x8xf32>
    tpu.vector_store %arg4[%c0_45, %c0_46], %113 {strides = array<i32>} : memref<2x8xf32, #tpu.memory_space<vmem>>, vector<2x8xf32>,
    return
  }
}

</mosaic_0001>

<bundles_post_ra>
// kernel: tpu_custom_call.1
= control target key start
LH: loop header
LB: loop body
LE: loop exit
PB: predicated region body
PF: predicated region fallthrough
CT: control target
= control target key end

     0   :  { %9 = vsyncpa [#allocation3], 0  ;;  %s7001_s0 = inlined_call_operand.vmem [shape: f32[2,1024], index: 0, kind: input, shape index: {}]   ;;  %s7002_s1 = inlined_call_operand.vmem [shape: f32[2,128], index: 1, kind: input, shape index: {}]   ;;  %s7003_s2 = inlined_call_operand.vmem [shape: f32[1024,8], index: 2, kind: input, shape index: {}]   ;;  %s7004_s3 = inlined_call_operand.hbm [shape: f32[1440,128], index: 3, kind: input, shape index: {}]   ;;  %s7005_s4 = inlined_call_operand.hbm [shape: f32[2,8], index: 4, kind: output, shape index: {}]  }
   0x1   :  { %10 = vsyncpa [#allocation4], 0  ;;  %s21_s17 = sshll.u32 %s7004_s3, 4  ;;  %s4481_s18 = smov [#allocation2]   ;;  %s22_s17 = int_to_ptr.hbm [resolvable:$true] %s21_s17 }
   0x2   :  { %s23_s19 = sshll.u32 %s4481_s18, 4  ;;  %s4482_s20 = smov 128   ;;  %s24_s19 = int_to_ptr.vmem [resolvable:$true] %s23_s19 }
   0x3   :  { %s4483_s21 = smov 8  }
   0x4   :  { %29 = dma.hbm_to_vmem [thread:$0]  %s22_s17, 23040, %s24_s19, [#allocation3], %s4482_s20, %s4482_s20, %s4483_s21  }
   0x5   :  { %4477 = dma.done.wait [#allocation3], 23040  }
   0x6   :  { %4478 = vsyncadd [#allocation3], 4294944256  ;;  %v4484_v0 = vmov 0   ;;  %v42_v1 = vld [vmem:[#allocation2 + $0x78] sm:$0xff]  ;;  %v41_v2 = vld [vmem:[#allocation2 + $0x70] sm:$0xff]  ;;  %v4485_v4 = vmov 1  }
   0x7   :  { %4388 = vset.pattern.permute.xlu2 %v4484_v0  ;;  %4386 = vset.pattern.permute.xlu1 %v4484_v0  ;;  %v40_v3 = vld [vmem:[#allocation2 + $0x68] sm:$0xff]  ;;  %v39_v5 = vld [vmem:[#allocation2 + $0x60] sm:$0xff]  ;;  %v148_v6 = vld [vmem:[#allocation2 + $0x370] sm:$0xff]  ;;  %vm317_vm0 = vcmask 523264   ;;  %vm2287_vm1 = vcmask 261120   ;;  %vm2667_vm2 = vcmask 1040384  }
   0x8   :  { %4384 = vset.pattern.permute.xlu0 %v4484_v0  ;;  %75 = vperm.xlu1 %4386, %v41_v2   ;;  %v38_v7 = vld [vmem:[#allocation2 + $0x58] sm:$0xff]  ;;  %v147_v8 = vld [vmem:[#allocation2 + $0x368] sm:$0xff]  ;;  %v37_v9 = vld [vmem:[#allocation2 + $0x50] sm:$0xff]  ;;  %s4103_s24 = sshll.u32 %s7005_s4, 4  ;;  %vm4094_vm7 = vcmask 58368   ;;  %s4104_s24 = int_to_ptr.hbm [resolvable:$true] %s4103_s24 }
   0x9   :  { %80 = vperm.xlu0 %4384, %v42_v1   ;;  %70 = vperm.xlu2 %4388, %v40_v3   ;;  %v146_v10 = vld [vmem:[#allocation2 + $0x360] sm:$0xff]  ;;  %v36_v11 = vld [vmem:[#allocation2 + $0x48] sm:$0xff]  ;;  %v145_v12 = vld [vmem:[#allocation2 + $0x358] sm:$0xff] }
   0xa   :  { %v35_v13 = vld [vmem:[#allocation2 + $0x40] sm:$0xff]  ;;  %v144_v14 = vld [vmem:[#allocation2 + $0x350] sm:$0xff]  ;;  %v141_v15 = vld [vmem:[#allocation2 + $0x338] sm:$0xff] }
   0xb   :  { %v143_v16 = vld [vmem:[#allocation2 + $0x348] sm:$0xff]  ;;  %v142_v17 = vld [vmem:[#allocation2 + $0x340] sm:$0xff]  ;;  %v232_v18 = vld [vmem:[#allocation2 + $0x410] sm:$0xff] }
   0xc   :  { %v236_v19 = vld [vmem:[#allocation2 + $0x430] sm:$0xff]  ;;  %v235_v20 = vld [vmem:[#allocation2 + $0x428] sm:$0xff]  ;;  %v229_v21 = vld [vmem:[#allocation2 + $0x3f8] sm:$0xff] }
   0xd   :  { %v234_v22 = vld [vmem:[#allocation2 + $0x420] sm:$0xff]  ;;  %v233_v23 = vld [vmem:[#allocation2 + $0x418] sm:$0xff]  ;;  %v231_v25 = vld [vmem:[#allocation2 + $0x408] sm:$0xff] }
   0xe   :  { %v226_v24 = vld [vmem:[#allocation2 + $0x3e0] sm:$0xff]  ;;  %v223_v27 = vld [vmem:[#allocation2 + $0x3c8] sm:$0xff]  ;;  %v228_v28 = vld [vmem:[#allocation2 + $0x3f0] sm:$0xff] }
   0xf   :  { %v230_v26 = vld [vmem:[#allocation2 + $0x400] sm:$0xff]  ;;  %v227_v29 = vld [vmem:[#allocation2 + $0x3e8] sm:$0xff]  ;;  %v494_v31 = vld [vmem:[#allocation2 + $0x4b0] sm:$0xff] }
  0x10   :  { %4387 = vset.pattern.permute.xlu1 %v4485_v4  ;;  %v225_v32 = vld [vmem:[#allocation2 + $0x3d8] sm:$0xff]  ;;  %v224_v33 = vld [vmem:[#allocation2 + $0x3d0] sm:$0xff]  ;;  %v222_v36 = vld [vmem:[#allocation2 + $0x3c0] sm:$0xff] }
  0x11   :  { %4385 = vset.pattern.permute.xlu0 %v4485_v4  ;;  %4389 = vset.pattern.permute.xlu2 %v4485_v4  ;;  %v491_v35 = vld [vmem:[#allocation2 + $0x498] sm:$0xff]  ;;  %v488_v39 = vld [vmem:[#allocation2 + $0x480] sm:$0xff]  ;;  %v493_v40 = vld [vmem:[#allocation2 + $0x4a8] sm:$0xff] }
  0x12   :  { %121 = vperm.xlu0 %4385, %v42_v1   ;;  %117 = vperm.xlu1 %4387, %v41_v2   ;;  %v221_v37 = vld [vmem:[#allocation2 + $0x3b8] sm:$0xff]  ;;  %v492_v41 = vld [vmem:[#allocation2 + $0x4a0] sm:$0xff]  ;;  %v485_v45 = vld [vmem:[#allocation2 + $0x468] sm:$0xff] }
  0x13   :  { %113 = vperm.xlu2 %4389, %v40_v3   ;;  %v490_v46 = vld [vmem:[#allocation2 + $0x490] sm:$0xff]  ;;  %v489_v47 = vld [vmem:[#allocation2 + $0x488] sm:$0xff]  ;;  %v34_v50 = vld [vmem:[%s7002_s1] sm:$0x3] }
  0x14   :  { %v4535_v52 = vperm.slane %v34_v50, 1  ;;  %v482_v53 = vld [vmem:[#allocation2 + $0x450] sm:$0xff]  ;;  %v4537_v54 = vperm.slane %v34_v50, 0  ;;  %v487_v56 = vld [vmem:[#allocation2 + $0x478] sm:$0xff] }
  0x15   :  { %v486_v57 = vld [vmem:[#allocation2 + $0x470] sm:$0xff]  ;;  %v479_v1 = vld [vmem:[#allocation2 + $0x438] sm:$0xff] }
  0x1a   :  { %109 = vperm.xlu0 %4385, %v39_v5   ;;  %4390 = vset.pattern.permute.xlu1 %v4484_v0 }
  0x1b   :  { %4391 = vset.pattern.permute.xlu2 %v4484_v0  ;;  %186 = vperm.xlu1 %4390, %v148_v6   ;;  %v483_v6 = vld [vmem:[#allocation2 + $0x458] sm:$0xff] }
  0x1c   :  { %65 = vperm.xlu2 %4391, %v39_v5   ;;  %v484_v5 = vld [vmem:[#allocation2 + $0x460] sm:$0xff] }
  0x22   :  { %105 = vperm.xlu0 %4385, %v38_v7  }
  0x23   :  { %181 = vperm.xlu1 %4390, %v147_v8  }
  0x24   :  { %60 = vperm.xlu2 %4391, %v38_v7  }
  0x2a   :  { %101 = vperm.xlu0 %4385, %v37_v9  }
  0x2b   :  { %176 = vperm.xlu1 %4390, %v146_v10  }
  0x2c   :  { %55 = vperm.xlu2 %4391, %v37_v9  }
  0x32   :  { %97 = vperm.xlu0 %4385, %v36_v11  }
  0x33   :  { %171 = vperm.xlu1 %4390, %v145_v12  }
  0x34   :  { %50 = vperm.xlu2 %4391, %v36_v11  }
  0x3a   :  { %93 = vperm.xlu0 %4385, %v35_v13  }
  0x3b   :  { %166 = vperm.xlu1 %4390, %v144_v14  }
  0x3c   :  { %45 = vperm.xlu2 %4391, %v35_v13   ;;  %v685_v13 = vld [vmem:[#allocation2 + $0x4e0] sm:$0xff] }
  0x42   :  { %4392 = vset.pattern.permute.xlu0 %v4484_v0 }
  0x43   :  { %151 = vperm.xlu0 %4392, %v141_v15   ;;  %161 = vperm.xlu1 %4390, %v143_v16  }
  0x44   :  { %156 = vperm.xlu2 %4391, %v142_v17   ;;  %v481_v17 = vld [vmem:[#allocation2 + $0x448] sm:$0xff] }
  0x4b   :  { %294 = vperm.xlu0 %4392, %v232_v18   ;;  %314 = vperm.xlu1 %4390, %v236_v19   ;;  %v480_v18 = vld [vmem:[#allocation2 + $0x440] sm:$0xff] }
  0x4c   :  { %309 = vperm.xlu2 %4391, %v235_v20  }
  0x53   :  { %279 = vperm.xlu0 %4392, %v229_v21   ;;  %304 = vperm.xlu1 %4390, %v234_v22  }
  0x54   :  { %299 = vperm.xlu2 %4391, %v233_v23  }
  0x5b   :  { %264 = vperm.xlu0 %4392, %v226_v24   ;;  %289 = vperm.xlu1 %4390, %v231_v25   ;;  %v682_v24 = vld [vmem:[#allocation2 + $0x4c8] sm:$0xff] }
  0x5c   :  { %284 = vperm.xlu2 %4391, %v230_v26  }
  0x63   :  { %249 = vperm.xlu0 %4392, %v223_v27   ;;  %274 = vperm.xlu1 %4390, %v228_v28   ;;  %v4524_v30 = vpop.permute.xlu2 %70  ;;  %v687_v28 = vld [vmem:[#allocation2 + $0x4f0] sm:$0xff] }
  0x64   :  { %269 = vperm.xlu2 %4391, %v227_v29   ;;  %v89_v14 = vmul.f32 %v4537_v54, %v4524_v30  ;;  %v686_v29 = vld [vmem:[#allocation2 + $0x4e8] sm:$0xff] }
  0x6b   :  { %572 = vperm.xlu0 %4392, %v494_v31   ;;  %259 = vperm.xlu1 %4390, %v225_v32  }
  0x6c   :  { %254 = vperm.xlu2 %4391, %v224_v33  }
  0x6d   :  { %v114_v34 = vpop.permute.xlu2 %113 }
  0x6e   :  { %v130_v15 = vmul.f32 %v4535_v52, %v114_v34 }
  0x70   :  { %v138_v20 = vadd.f32 %v130_v15, %v89_v14  ;;  %v206_v14 = vld [vmem:[#allocation2 + $0xc8] sm:$0xff] }
  0x73   :  { %557 = vperm.xlu0 %4392, %v491_v35   ;;  %244 = vperm.xlu1 %4390, %v222_v36   ;;  %v915_v35 = vld [vmem:[#allocation2 + $0x38] sm:$0xff] }
  0x74   :  { %239 = vperm.xlu2 %4391, %v221_v37  }
  0x76   :  { %v4526_v38 = vpop.permute.xlu2 %65 }
  0x77   :  { %v88_v25 = vmul.f32 %v4537_v54, %v4526_v38  ;;  %v684_v38 = vld [vmem:[#allocation2 + $0x4d8] sm:$0xff] }
  0x7a   :  { %v76_v42 = vpop.permute.xlu1 %75 }
  0x7b   :  { %542 = vperm.xlu0 %4392, %v488_v39   ;;  %v81_v43 = vpop.permute.xlu0 %80  ;;  %567 = vperm.xlu1 %4390, %v493_v40   ;;  %v90_v7 = vmul.f32 %v4537_v54, %v76_v42  ;;  %v683_v39 = vld [vmem:[#allocation2 + $0x4d0] sm:$0xff] }
  0x7c   :  { %562 = vperm.xlu2 %4391, %v492_v41   ;;  %v91_v58 = vmul.f32 %v4537_v54, %v81_v43 }
  0x7e   :  { %v4528_v44 = vpop.permute.xlu2 %60 }
  0x7f   :  { %v87_v40 = vmul.f32 %v4537_v54, %v4528_v44  ;;  %v680_v44 = vld [vmem:[#allocation2 + $0x4b8] sm:$0xff] }
  0x83   :  { %527 = vperm.xlu0 %4392, %v485_v45   ;;  %552 = vperm.xlu1 %4390, %v490_v46  }
  0x84   :  { %547 = vperm.xlu2 %4391, %v489_v47   ;;  %v122_v48 = vpop.permute.xlu0 %121  ;;  %v118_v49 = vpop.permute.xlu1 %117 }
  0x85   :  { %v132_v55 = vmul.f32 %v4535_v52, %v122_v48  ;;  %v131_v2 = vmul.f32 %v4535_v52, %v118_v49 }
  0x86   :  { %v4533_v51 = vpop.permute.xlu2 %55 }
  0x87   :  { %v140_v60 = vadd.f32 %v132_v55, %v91_v58  ;;  %v139_v9 = vadd.f32 %v131_v2, %v90_v7  ;;  %v914_v55 = vld [vmem:[#allocation2 + $0x30] sm:$0xff] }
  0x8b   :  { %512 = vperm.xlu0 %4392, %v482_v53   ;;  %537 = vperm.xlu1 %4390, %v487_v56   ;;  %v681_v53 = vld [vmem:[#allocation2 + $0x4c0] sm:$0xff]  ;;  %v86_v56 = vmul.f32 %v4537_v54, %v4533_v51 }
  0x8c   :  { %532 = vperm.xlu2 %4391, %v486_v57   ;;  %v110_v59 = vpop.permute.xlu0 %109 }
  0x8d   :  { %v187_v61 = vpop.permute.xlu1 %186  ;;  %v129_v26 = vmul.f32 %v4535_v52, %v110_v59 }
  0x8e   :  { %v4541_v62 = vpop.permute.xlu2 %50  ;;  %v196_v63 = vadd.f32 %v187_v61, %v140_v60 }
  0x8f   :  { %v137_v31 = vadd.f32 %v129_v26, %v88_v25  ;;  %v85_v48 = vmul.f32 %v4537_v54, %v4541_v62  ;;  %v208_v25 = vld [vmem:[#allocation2 + $0xd8] sm:$0xff] }
  0x90   :  { %v204_v3 = vmax.f32 %v196_v63, 0.0 }
  0x92   :  { %374 = vmatpush.msra.mxu0 %v204_v3 }
  0x93   :  { %497 = vperm.xlu0 %4392, %v479_v1   ;;  %522 = vperm.xlu1 %4390, %v484_v5  }
  0x94   :  { %517 = vperm.xlu2 %4391, %v483_v6   ;;  %v106_v8 = vpop.permute.xlu0 %105  ;;  %v912_v6 = vld [vmem:[#allocation2 + $0x20] sm:$0xff] }
  0x95   :  { %v182_v10 = vpop.permute.xlu1 %181  ;;  %v128_v36 = vmul.f32 %v4535_v52, %v106_v8  ;;  %v205_v8 = vld [vmem:[#allocation2 + $0xc0] sm:$0xff] }
  0x96   :  { %v46_v11 = vpop.permute.xlu2 %45  ;;  %v195_v12 = vadd.f32 %v182_v10, %v139_v9 }
  0x97   :  { %v136_v42 = vadd.f32 %v128_v36, %v87_v40  ;;  %v84_v59 = vmul.f32 %v4537_v54, %v46_v11  ;;  %v913_v11 = vld [vmem:[#allocation2 + $0x28] sm:$0xff]  ;;  %v1230_v36 = vld [vmem:[#allocation2 + $0x2f8] sm:$0xff] }
  0x98   :  { %v203_v16 = vmax.f32 %v195_v12, 0.0  ;;  %v911_v12 = vld [vmem:[#allocation2 + $0x18] sm:$0xff] }
  0x9a   :  { %375 = vmatpush.msra.mxu0 %v203_v16 }
  0x9b   :  { %715 = vperm.xlu0 %4392, %v685_v13   ;;  %507 = vperm.xlu1 %4390, %v481_v17   ;;  %v1237_v17 = vld [vmem:[#allocation2 + $0x330] sm:$0xff] }
  0x9c   :  { %502 = vperm.xlu2 %4391, %v480_v18   ;;  %v102_v19 = vpop.permute.xlu0 %101  ;;  %v910_v18 = vld [vmem:[#allocation2 + $0x10] sm:$0xff] }
  0x9d   :  { %v177_v21 = vpop.permute.xlu1 %176  ;;  %v127_v49 = vmul.f32 %v4535_v52, %v102_v19 }
  0x9e   :  { %v157_v22 = vpop.permute.xlu2 %156  ;;  %v194_v23 = vadd.f32 %v177_v21, %v138_v20  ;;  %v207_v20 = vld [vmem:[#allocation2 + $0xd0] sm:$0xff] }
  0x9f   :  { %v135_v60 = vadd.f32 %v127_v49, %v86_v56  ;;  %v1231_v49 = vld [vmem:[#allocation2 + $0x300] sm:$0xff] }
  0xa0   :  { %v202_v27 = vmax.f32 %v194_v23, 0.0  ;;  %v909_v23 = vld [vmem:[#allocation2 + $0x8] sm:$0xff]  ;;  %v213_v56 = vld [vmem:[#allocation2 + $0x100] sm:$0xff] }
  0xa2   :  { %376 = vmatpush.msra.mxu0 %v202_v27 }
  0xa3   :  { %700 = vperm.xlu0 %4392, %v682_v24   ;;  %725 = vperm.xlu1 %4390, %v687_v28   ;;  %v1235_v28 = vld [vmem:[#allocation2 + $0x320] sm:$0xff] }
  0xa4   :  { %720 = vperm.xlu2 %4391, %v686_v29   ;;  %v98_v30 = vpop.permute.xlu0 %97  ;;  %v908_v29 = vld [vmem:[#allocation2] sm:$0xff] }
  0xa5   :  { %v172_v32 = vpop.permute.xlu1 %171  ;;  %v126_v46 = vmul.f32 %v4535_v52, %v98_v30 }
  0xa6   :  { %v4551_v33 = vpop.permute.xlu2 %309  ;;  %v193_v34 = vadd.f32 %v172_v32, %v137_v31  ;;  %v209_v31 = vld [vmem:[#allocation2 + $0xe0] sm:$0xff] }
  0xa7   :  { %v134_v57 = vadd.f32 %v126_v46, %v85_v48  ;;  %v1232_v48 = vld [vmem:[#allocation2 + $0x308] sm:$0xff] }
  0xa8   :  { %v201_v37 = vmax.f32 %v193_v34, 0.0 }
  0xa9   :  { %v190_v3 = vadd.f32 %v157_v22, %v134_v57  ;;  %v1236_v22 = vld [vmem:[#allocation2 + $0x328] sm:$0xff] }
  0xaa   :  { %377 = vmatpush.msra.mxu0 %v201_v37 }
  0xab   :  { %953 = vperm.xlu0 %4392, %v915_v35   ;;  %710 = vperm.xlu1 %4390, %v684_v38   ;;  %v210_v38 = vld [vmem:[#allocation2 + $0xe8] sm:$0xff] }
  0xac   :  { %705 = vperm.xlu2 %4391, %v683_v39   ;;  %v94_v41 = vpop.permute.xlu0 %93 }
  0xad   :  { %v167_v43 = vpop.permute.xlu1 %166  ;;  %v125_v58 = vmul.f32 %v4535_v52, %v94_v41  ;;  %v198_v52 = vmax.f32 %v190_v3, 0.0  ;;  %v1233_v41 = vld [vmem:[#allocation2 + $0x310] sm:$0xff] }
  0xae   :  { %v4556_v45 = vpop.permute.xlu2 %299  ;;  %v192_v47 = vadd.f32 %v167_v43, %v136_v42  ;;  %v211_v43 = vld [vmem:[#allocation2 + $0xf0] sm:$0xff] }
  0xaf   :  { %v133_v2 = vadd.f32 %v125_v58, %v84_v59  ;;  %v215_v3 = vld [vmem:[#allocation2 + $0x110] sm:$0xff] }
  0xb0   :  { %v200_v50 = vmax.f32 %v192_v47, 0.0 }
  0xb2   :  { %378 = vmatpush.msra.mxu0 %v200_v50 }
  0xb3   :  { %4394 = vset.pattern.permute.xlu0 %v4485_v4  ;;  %695 = vperm.xlu1 %4390, %v681_v53  }
  0xb4   :  { %690 = vperm.xlu2 %4391, %v680_v44   ;;  %1071 = vperm.xlu0 %4394, %v914_v55  }
  0xb5   :  { %v152_v61 = vpop.permute.xlu0 %151  ;;  %v162_v62 = vpop.permute.xlu1 %161 }
  0xb6   :  { %v4567_v63 = vpop.permute.xlu2 %284  ;;  %v191_v1 = vadd.f32 %v162_v62, %v135_v60  ;;  %v189_v5 = vadd.f32 %v152_v61, %v133_v2  ;;  %v214_v60 = vld [vmem:[#allocation2 + $0x108] sm:$0xff] }
  0xb8   :  { %v199_v51 = vmax.f32 %v191_v1, 0.0  ;;  %v197_v7 = vmax.f32 %v189_v5, 0.0  ;;  %v4647_v1 = vld [vmem:[%s7001_s0] sm:$0xff] }
  0xba   :  { %379 = vmatpush.msra.mxu0 %v199_v51  ;;  %v4654_v51 = vld [vmem:[%s7001_s0 + $0x8] sm:$0xff] }
  0xbb   :  { %4393 = vset.pattern.permute.xlu1 %v4485_v4 }
  0xbc   :  { %948 = vperm.xlu2 %4391, %v914_v55   ;;  %1075 = vperm.xlu1 %4393, %v915_v35   ;;  %v1234_v35 = vld [vmem:[#allocation2 + $0x318] sm:$0xff] }
  0xbd   :  { %380 = vmatpush.msra.mxu0 %v198_v52  ;;  %v4570_v54 = vpop.permute.xlu0 %294  ;;  %v4572_v9 = vpop.permute.xlu1 %314  ;;  %1063 = vperm.xlu0 %4394, %v912_v6  }
  0xbe   :  { %v4574_v10 = vpop.permute.xlu2 %269 }
  0xbf   :  { %381 = vmatpush.msra.mxu0 %v197_v7  ;;  %v958_v7 = vperm.slane %v4647_v1, 0 }
  0xc0   :  { %4113 = vmatmul.msk.f32.vlgmr.msra.gmra.mxu0 %vm317_vm0, %v205_v8  ;;  %v961_v8 = vperm.slane %v4647_v1, 6 }
  0xc4   :  { %4396 = vset.pattern.permute.xlu2 %v4485_v4  ;;  %4395 = vset.pattern.permute.xlu1 %v4484_v0 }
  0xc5   :  { %v4579_v13 = vpop.permute.xlu0 %279  ;;  %1067 = vperm.xlu2 %4396, %v913_v11   ;;  %943 = vperm.xlu1 %4395, %v913_v11   ;;  %v4581_v15 = vpop.permute.xlu1 %304  ;;  %v965_v11 = vperm.slane %v4654_v51, 6 }
  0xc6   :  { %v4583_v16 = vpop.permute.xlu2 %254  ;;  %1059 = vperm.xlu0 %4394, %v911_v12  }
  0xc8   :  { %4114 = vmatmul.msk.f32.gmra.mxu0 %vm317_vm0, %v206_v14  ;;  %v4667_v14 = vperm.slane %v958_v7, 0  ;;  %v1083_v7 = vperm.slane %v4654_v51, 3 }
  0xca   :  { %7055 = vst [vmem:[#allocation29_spill] sm:$0xff] %v4667_v14 }
  0xcd   :  { %v4586_v19 = vpop.permute.xlu0 %264  ;;  %4397 = vset.pattern.permute.xlu2 %v4484_v0  ;;  %1275 = vperm.xlu1 %4395, %v1237_v17   ;;  %v4589_v4 = vpop.permute.xlu1 %289  ;;  %v4669_v17 = vperm.slane %v961_v8, 0  ;;  %v1078_v8 = vperm.slane %v4647_v1, 1 }
  0xce   :  { %v4591_v21 = vpop.permute.xlu2 %239  ;;  %1055 = vperm.xlu0 %4394, %v910_v18   ;;  %938 = vperm.xlu2 %4397, %v912_v6   ;;  %v959_v6 = vperm.slane %v4647_v1, 2 }
  0xcf   :  { %7056 = vst [vmem:[#allocation30_spill] sm:$0xff] %v4669_v17 }
  0xd0   :  { %4115 = vmatmul.msk.f32.gmra.mxu0 %vm317_vm0, %v207_v20 }
  0xd5   :  { %v4594_v24 = vpop.permute.xlu0 %249  ;;  %1270 = vperm.xlu1 %4395, %v1236_v22   ;;  %v4596_v26 = vpop.permute.xlu1 %274  ;;  %v216_v22 = vld [vmem:[#allocation2 + $0x118] sm:$0xff] }
  0xd6   :  { %v4598_v27 = vpop.permute.xlu2 %562  ;;  %1051 = vperm.xlu0 %4394, %v909_v23   ;;  %933 = vperm.xlu2 %4397, %v911_v12   ;;  %v4665_v12 = vperm.slane %v959_v6, 0  ;;  %v963_v6 = vperm.slane %v4654_v51, 2 }
  0xd7   :  { %7034 = vst [vmem:[#allocation8_spill] sm:$0xff] %v4598_v27 }
  0xd8   :  { %4116 = vmatmul.msk.f32.gmra.mxu0 %vm317_vm0, %v208_v25  ;;  %7054 = vst [vmem:[#allocation28_spill] sm:$0xff] %v4665_v12 }
  0xdd   :  { %v4601_v30 = vpop.permute.xlu0 %572  ;;  %1265 = vperm.xlu1 %4395, %v1235_v28   ;;  %v4603_v32 = vpop.permute.xlu1 %259 }
  0xde   :  { %7035 = vst [vmem:[#allocation9_spill] sm:$0xff] %v4601_v30  ;;  %v4605_v34 = vpop.permute.xlu2 %547  ;;  %1047 = vperm.xlu0 %4394, %v908_v29   ;;  %928 = vperm.xlu2 %4397, %v910_v18   ;;  %v4671_v18 = vperm.slane %v965_v11, 0  ;;  %v1081_v11 = vperm.slane %v4647_v1, 7 }
  0xdf   :  { %7036 = vst [vmem:[#allocation10_spill] sm:$0xff] %v4605_v34 }
  0xe0   :  { %4117 = vmatmul.msk.f32.gmra.mxu0 %vm317_vm0, %v209_v31  ;;  %7057 = vst [vmem:[#allocation31_spill] sm:$0xff] %v4671_v18 }
  0xe5   :  { %v4608_v37 = vpop.permute.xlu0 %557  ;;  %1260 = vperm.xlu1 %4395, %v1234_v35   ;;  %v4610_v39 = vpop.permute.xlu1 %244 }
  0xe6   :  { %7037 = vst [vmem:[#allocation11_spill] sm:$0xff] %v4608_v37  ;;  %v4612_v40 = vpop.permute.xlu2 %532  ;;  %4398 = vset.pattern.permute.xlu0 %v4484_v0  ;;  %923 = vperm.xlu2 %4397, %v909_v23   ;;  %v212_v0 = vld [vmem:[#allocation2 + $0xf8] sm:$0xff] }
  0xe7   :  { %7038 = vst [vmem:[#allocation12_spill] sm:$0xff] %v4612_v40  ;;  %1240 = vperm.xlu0 %4398, %v1230_v36  }
  0xe8   :  { %4118 = vmatmul.msk.f32.gmra.mxu0 %vm317_vm0, %v210_v38  ;;  %v217_v38 = vld [vmem:[#allocation2 + $0x120] sm:$0xff] }
  0xed   :  { %v4616_v42 = vpop.permute.xlu0 %542  ;;  %1255 = vperm.xlu1 %4395, %v1233_v41   ;;  %v4618_v46 = vpop.permute.xlu1 %567 }
  0xee   :  { %7039 = vst [vmem:[#allocation13_spill] sm:$0xff] %v4616_v42  ;;  %v4620_v47 = vpop.permute.xlu2 %517  ;;  %918 = vperm.xlu2 %4397, %v908_v29   ;;  %v1084_v42 = vperm.slane %v4654_v51, 5 }
  0xef   :  { %7040 = vst [vmem:[#allocation14_spill] sm:$0xff] %v4618_v46 }
  0xf0   :  { %7041 = vst [vmem:[#allocation15_spill] sm:$0xff] %v4620_v47  ;;  %4119 = vmatmul.msk.f32.gmra.mxu0 %vm317_vm0, %v211_v43  ;;  %v219_v47 = vld [vmem:[#allocation2 + $0x130] sm:$0xff]  ;;  %v4893_v27 = vperm.slane %v1084_v42, 1 }
  0xf2   :  { %7081 = vst [vmem:[#allocation55_spill] sm:$0xff] %v4893_v27 }
  0xf5   :  { %v4623_v50 = vpop.permute.xlu0 %527  ;;  %1250 = vperm.xlu1 %4395, %v1232_v48   ;;  %v4625_v53 = vpop.permute.xlu1 %552 }
  0xf6   :  { %7042 = vst [vmem:[#allocation16_spill] sm:$0xff] %v4623_v50  ;;  %v4627_v44 = vpop.permute.xlu2 %502  ;;  %1245 = vperm.xlu2 %4397, %v1231_v49  }
  0xf7   :  { %7043 = vst [vmem:[#allocation17_spill] sm:$0xff] %v4625_v53 }
  0xf8   :  { %7044 = vst [vmem:[#allocation18_spill] sm:$0xff] %v4627_v44  ;;  %4120 = vmatmul.msk.f32.gmra.mxu0 %vm317_vm0, %v212_v0 }
  0xfd   :  { %v4630_v55 = vpop.permute.xlu0 %512  ;;  %v4632_v57 = vpop.permute.xlu1 %537 }
  0xfe   :  { %7045 = vst [vmem:[#allocation19_spill] sm:$0xff] %v4630_v55  ;;  %v4634_v58 = vpop.permute.xlu2 %720 }
  0xff   :  { %7046 = vst [vmem:[#allocation20_spill] sm:$0xff] %v4632_v57 }
 0x100   :  { %7047 = vst [vmem:[#allocation21_spill] sm:$0xff] %v4634_v58  ;;  %4121 = vmatmul.msk.f32.gmra.mxu0 %vm317_vm0, %v213_v56  ;;  %v962_v56 = vperm.slane %v4654_v51, 0 }
 0x105   :  { %v4637_v59 = vpop.permute.xlu0 %497  ;;  %v4639_v61 = vpop.permute.xlu1 %522 }
 0x106   :  { %7048 = vst [vmem:[#allocation22_spill] sm:$0xff] %v4637_v59  ;;  %v4641_v62 = vpop.permute.xlu2 %705 }
 0x107   :  { %7049 = vst [vmem:[#allocation23_spill] sm:$0xff] %v4639_v61 }
 0x108   :  { %7050 = vst [vmem:[#allocation24_spill] sm:$0xff] %v4641_v62  ;;  %4122 = vmatmul.msk.f32.gmra.mxu0 %vm317_vm0, %v214_v60  ;;  %v1082_v60 = vperm.slane %v4654_v51, 1  ;;  %v4719_v62 = vperm.slane %v1078_v8, 1 }
 0x10a   :  { %7064 = vst [vmem:[#allocation38_spill] sm:$0xff] %v4719_v62 }
 0x10d   :  { %v4649_v2 = vpop.permute.xlu0 %715  ;;  %v4656_v5 = vpop.permute.xlu1 %507 }
 0x10e   :  { %7051 = vst [vmem:[#allocation25_spill] sm:$0xff] %v4649_v2  ;;  %v4658_v52 = vpop.permute.xlu2 %690 }
 0x10f   :  { %7052 = vst [vmem:[#allocation26_spill] sm:$0xff] %v4656_v5 }
 0x110   :  { %7053 = vst [vmem:[#allocation27_spill] sm:$0xff] %v4658_v52  ;;  %4123 = vmatmul.msk.f32.gmra.mxu0 %vm317_vm0, %v215_v3  ;;  %v1079_v3 = vperm.slane %v4647_v1, 3  ;;  %v218_v52 = vld [vmem:[#allocation2 + $0x128] sm:$0xff] }
 0x115   :  { %v4673_v20 = vpop.permute.xlu0 %700  ;;  %v4675_v23 = vpop.permute.xlu1 %725 }
 0x116   :  { %7058 = vst [vmem:[#allocation32_spill] sm:$0xff] %v4673_v20  ;;  %v4677_v25 = vpop.permute.xlu2 %948  ;;  %v4717_v20 = vperm.slane %v1083_v7, 1 }
 0x117   :  { %7059 = vst [vmem:[#allocation33_spill] sm:$0xff] %v4675_v23  ;;  %v1031_v28 = vmul.f32 %v4665_v12, %v4677_v25  ;;  %v1030_v29 = vmul.f32 %v4667_v14, %v4677_v25  ;;  %v1033_v31 = vmul.f32 %v4669_v17, %v4677_v25  ;;  %v1037_v35 = vmul.f32 %v4671_v18, %v4677_v25 }
 0x118   :  { %4124 = vmatmul.msk.f32.gmra.mxu0 %vm317_vm0, %v216_v22  ;;  %v1085_v22 = vperm.slane %v4654_v51, 7  ;;  %7063 = vst [vmem:[#allocation37_spill] sm:$0xff] %v4717_v20 }
 0x11a   :  { %v4723_v23 = vperm.slane %v1085_v22, 1 }
 0x11c   :  { %7066 = vst [vmem:[#allocation40_spill] sm:$0xff] %v4723_v23 }
 0x11d   :  { %v4688_v36 = vpop.permute.xlu0 %953  ;;  %v4690_v41 = vpop.permute.xlu1 %710 }
 0x11e   :  { %7060 = vst [vmem:[#allocation34_spill] sm:$0xff] %v4690_v41  ;;  %v1039_v43 = vmul.f32 %v4665_v12, %v4688_v36  ;;  %v1038_v48 = vmul.f32 %v4667_v14, %v4688_v36  ;;  %v1041_v49 = vmul.f32 %v4669_v17, %v4688_v36  ;;  %v1045_v0 = vmul.f32 %v4671_v18, %v4688_v36 }
 0x11f   :  { %v4709_v17 = vperm.slane %v962_v56, 0  ;;  %v4711_v18 = vperm.slane %v1082_v60, 1  ;;  %v4715_v14 = vperm.slane %v963_v6, 0  ;;  %v4721_v41 = vperm.slane %v1081_v11, 1  ;;  %v4730_v56 = vpop.permute.xlu2 %1067 }
 0x120   :  { %4125 = vmatmul.msk.f32.gmra.mxu0 %vm317_vm0, %v217_v38  ;;  %v4713_v38 = vperm.slane %v1079_v3, 1 }
 0x121   :  { %7062 = vst [vmem:[#allocation36_spill] sm:$0xff] %v4715_v14  ;;  %v1034_v60 = vmul.f32 %v4709_v17, %v4677_v25  ;;  %v1035_v7 = vmul.f32 %v4715_v14, %v4677_v25  ;;  %v1042_v50 = vmul.f32 %v4709_v17, %v4688_v36 }
 0x122   :  { %7061 = vst [vmem:[#allocation35_spill] sm:$0xff] %v4713_v38 }
 0x123   :  { %7065 = vst [vmem:[#allocation39_spill] sm:$0xff] %v4721_v41 }
 0x125   :  { %v4725_v2 = vpop.permute.xlu1 %695 }
 0x126   :  { %7067 = vst [vmem:[#allocation41_spill] sm:$0xff] %v4725_v2  ;;  %v4727_v58 = vpop.permute.xlu0 %1071 }
 0x127   :  { %v1154_v3 = vmul.f32 %v4711_v18, %v4727_v58  ;;  %v1151_v6 = vmul.f32 %v4713_v38, %v4727_v58  ;;  %v1155_v8 = vmul.f32 %v4717_v20, %v4727_v58  ;;  %v1153_v11 = vmul.f32 %v4721_v41, %v4727_v58 }
 0x128   :  { %4126 = vmatmul.msk.f32.gmra.mxu0 %vm317_vm0, %v218_v52  ;;  %v1150_v52 = vmul.f32 %v4719_v62, %v4727_v58  ;;  %v1157_v22 = vmul.f32 %v4723_v23, %v4727_v58 }
 0x129   :  { %v1218_v2 = vadd.f32 %v1154_v3, %v1034_v60  ;;  %v1215_v12 = vadd.f32 %v1151_v6, %v1031_v28  ;;  %v1219_v59 = vadd.f32 %v1155_v8, %v1035_v7  ;;  %v1217_v5 = vadd.f32 %v1153_v11, %v1033_v31  ;;  %v4767_v60 = vpop.permute.xlu2 %938 }
 0x12a   :  { %v1214_v44 = vadd.f32 %v1150_v52, %v1030_v29  ;;  %v1221_v55 = vadd.f32 %v1157_v22, %v1037_v35  ;;  %v1043_v28 = vmul.f32 %v4715_v14, %v4688_v36  ;;  %v1080_v14 = vperm.slane %v4647_v1, 5 }
 0x12e   :  { %v4748_v61 = vpop.permute.xlu1 %1075 }
 0x12f   :  { %v1162_v40 = vmul.f32 %v4711_v18, %v4748_v61  ;;  %v1159_v57 = vmul.f32 %v4713_v38, %v4748_v61  ;;  %v1163_v29 = vmul.f32 %v4717_v20, %v4748_v61  ;;  %v1158_v31 = vmul.f32 %v4719_v62, %v4748_v61  ;;  %v4769_v22 = vpop.permute.xlu0 %1063  ;;  %v220_v20 = vld [vmem:[#allocation2 + $0x138] sm:$0xff] }
 0x130   :  { %4127 = vmatmul.msk.f32.gmra.mxu0 %vm317_vm0, %v219_v47  ;;  %v1161_v47 = vmul.f32 %v4721_v41, %v4748_v61  ;;  %v1165_v35 = vmul.f32 %v4723_v23, %v4748_v61  ;;  %v960_v62 = vperm.slane %v4647_v1, 4  ;;  %v4776_v23 = vperm.slane %v1080_v14, 1 }
 0x131   :  { %v1226_v3 = vadd.f32 %v1162_v40, %v1042_v50  ;;  %v1223_v6 = vadd.f32 %v1159_v57, %v1039_v43  ;;  %v1227_v7 = vadd.f32 %v1163_v29, %v1043_v28  ;;  %v1222_v8 = vadd.f32 %v1158_v31, %v1038_v48  ;;  %v4782_v50 = vpop.permute.xlu2 %933 }
 0x132   :  { %v1225_v52 = vadd.f32 %v1161_v47, %v1041_v49  ;;  %v1229_v11 = vadd.f32 %v1165_v35, %v1045_v0  ;;  %v4778_v41 = vperm.slane %v960_v62, 0  ;;  %v1160_v40 = vmul.f32 %v4776_v23, %v4748_v61 }
 0x133   :  { %v1152_v28 = vmul.f32 %v4776_v23, %v4727_v58 }
 0x134   :  { %v1040_v43 = vmul.f32 %v4778_v41, %v4688_v36  ;;  %v1032_v47 = vmul.f32 %v4778_v41, %v4677_v25 }
 0x136   :  { %v1224_v1 = vadd.f32 %v1160_v40, %v1040_v43  ;;  %v1216_v43 = vadd.f32 %v1152_v28, %v1032_v47 }
 0x137   :  { %v4773_v38 = vpop.permute.xlu1 %943 }
 0x138   :  { %4128 = vmatmul.msk.f32.gmra.mxu0 %vm317_vm0, %v220_v20  ;;  %v4788_v48 = vpop.permute.xlu0 %1059 }
 0x13d   :  { %v4784_v57 = vpop.f32.mrf.mxu0 }
 0x13f   :  { %v4790_v49 = vpop.permute.xlu1 %1275 }
 0x140   :  { %v1336_v14 = vadd.f32 %v4790_v49, %v1224_v1  ;;  %v4794_v62 = vadd.f32 %v4790_v49, %v1226_v3  ;;  %v4797_v20 = vadd.f32 %v4790_v49, %v1223_v6  ;;  %v4802_v29 = vadd.f32 %v4790_v49, %v1227_v7  ;;  %v4811_v3 = vpop.permute.xlu2 %928  ;;  %v4821_v1 = vpop.permute.xlu0 %1055 }
 0x141   :  { %v4809_v35 = vadd.f32 %v4790_v49, %v1222_v8  ;;  %v4814_v6 = vadd.f32 %v4790_v49, %v1225_v52  ;;  %v4817_v40 = vadd.f32 %v4790_v49, %v1229_v11  ;;  %v1144_v8 = vmul.f32 %v4776_v23, %v4730_v56 }
 0x142   :  { %7068 = vst [vmem:[#allocation42_spill] sm:$0xff] %v4797_v20  ;;  %v1400_v0 = vmax.f32 %v1336_v14, 0.0  ;;  %v1000_v20 = vmul.f32 %v4778_v41, %v4811_v3  ;;  %v1120_v34 = vmul.f32 %v4776_v23, %v4821_v1 }
 0x143   :  { %7069 = vst [vmem:[#allocation43_spill] sm:$0xff] %v4802_v29 }
 0x144   :  { %1576 = vmatpush.msrb.mxu0 %v1400_v0  ;;  %7070 = vst [vmem:[#allocation44_spill] sm:$0xff] %v4809_v35  ;;  %v1024_v0 = vmul.f32 %v4778_v41, %v4773_v38 }
 0x145   :  { %v4804_v31 = vpop.f32.mrf.mxu0  ;;  %7071 = vst [vmem:[#allocation45_spill] sm:$0xff] %v4814_v6 }
 0x146   :  { %7072 = vst [vmem:[#allocation46_spill] sm:$0xff] %v4817_v40  ;;  %v1208_v6 = vadd.f32 %v1144_v8, %v1024_v0 }
 0x147   :  { %v4819_v7 = vpop.permute.xlu1 %1270 }
 0x148   :  { %v1328_v14 = vadd.f32 %v4819_v7, %v1216_v43  ;;  %v4829_v35 = vadd.f32 %v4819_v7, %v1218_v2  ;;  %v4832_v52 = vadd.f32 %v4819_v7, %v1215_v12  ;;  %v4835_v11 = vadd.f32 %v4819_v7, %v1219_v59  ;;  %v4850_v12 = vpop.permute.xlu2 %923 }
 0x149   :  { %v4838_v47 = vadd.f32 %v4819_v7, %v1214_v44  ;;  %v4841_v43 = vadd.f32 %v4819_v7, %v1217_v5  ;;  %v4846_v2 = vadd.f32 %v4819_v7, %v1221_v55  ;;  %7078 = vst [vmem:[#allocation52_spill] sm:$0xff] %v4850_v12  ;;  %v1016_v44 = vmul.f32 %v4778_v41, %v4767_v60 }
 0x14a   :  { %7073 = vst [vmem:[#allocation47_spill] sm:$0xff] %v4832_v52  ;;  %v1392_v28 = vmax.f32 %v1328_v14, 0.0  ;;  %v1136_v5 = vmul.f32 %v4776_v23, %v4769_v22  ;;  %v4857_v14 = vpop.permute.xlu0 %1051 }
 0x14b   :  { %7074 = vst [vmem:[#allocation48_spill] sm:$0xff] %v4835_v11 }
 0x14c   :  { %7075 = vst [vmem:[#allocation49_spill] sm:$0xff] %v4838_v47  ;;  %1577 = vmatpush.msrb.mxu0 %v1392_v28  ;;  %v1200_v55 = vadd.f32 %v1136_v5, %v1016_v44  ;;  %v992_v44 = vmul.f32 %v4778_v41, %v4850_v12  ;;  %v1112_v5 = vmul.f32 %v4776_v23, %v4857_v14 }
 0x14d   :  { %7076 = vst [vmem:[#allocation50_spill] sm:$0xff] %v4841_v43  ;;  %v4843_v40 = vpop.f32.mrf.mxu0 }
 0x14e   :  { %7077 = vst [vmem:[#allocation51_spill] sm:$0xff] %v4846_v2  ;;  %v1128_v2 = vmul.f32 %v4776_v23, %v4788_v48  ;;  %v1176_v37 = vadd.f32 %v1112_v5, %v992_v44  ;;  %v1156_v44 = vmul.f32 %v4893_v27, %v4727_v58 }
 0x14f   :  { %v4848_v29 = vpop.permute.xlu1 %1265  ;;  %7079 = vst [vmem:[#allocation53_spill] sm:$0xff] %v4857_v14 }
 0x150   :  { %v1320_v59 = vadd.f32 %v4848_v29, %v1208_v6  ;;  %v1008_v6 = vmul.f32 %v4778_v41, %v4782_v50  ;;  %v4868_v47 = vpop.permute.xlu2 %918 }
 0x152   :  { %v1384_v43 = vmax.f32 %v1320_v59, 0.0  ;;  %v4870_v52 = vpop.permute.xlu0 %1047 }
 0x154   :  { %1578 = vmatpush.msrb.mxu0 %v1384_v43  ;;  %v1192_v43 = vadd.f32 %v1128_v2, %v1008_v6  ;;  %v1104_v2 = vmul.f32 %v4776_v23, %v4870_v52  ;;  %v964_v6 = vperm.slane %v4654_v51, 4  ;;  %v1164_v23 = vmul.f32 %v4893_v27, %v4748_v61 }
 0x155   :  { %v4859_v28 = vpop.f32.mrf.mxu0 }
 0x157   :  { %v4861_v0 = vpop.permute.xlu1 %1260 }
 0x158   :  { %v1312_v8 = vadd.f32 %v4861_v0, %v1200_v55  ;;  %v4891_v30 = vpop.permute.xlu2 %1245 }
 0x159   :  { %v1288_v51 = vadd.f32 %v4891_v30, %v1176_v37 }
 0x15a   :  { %v1376_v11 = vmax.f32 %v1312_v8, 0.0  ;;  %v4897_v12 = vpop.permute.xlu0 %1240 }
 0x15b   :  { %v1352_v61 = vmax.f32 %v1288_v51, 0.0 }
 0x15c   :  { %1579 = vmatpush.msrb.mxu0 %v1376_v11  ;;  %v984_v11 = vmul.f32 %v4778_v41, %v4868_v47 }
 0x15d   :  { %v4872_v59 = vpop.f32.mrf.mxu0 }
 0x15e   :  { %v1168_v14 = vadd.f32 %v1104_v2, %v984_v11 }
 0x15f   :  { %v4878_v55 = vpop.permute.xlu1 %1255 }
 0x160   :  { %7080 = vst [vmem:[#allocation54_spill] sm:$0xff] %v4878_v55  ;;  %v1304_v8 = vadd.f32 %v4878_v55, %v1192_v43  ;;  %v1184_v43 = vadd.f32 %v1120_v34, %v1000_v20  ;;  %v4899_v55 = vperm.slane %v964_v6, 0 }
 0x162   :  { %v1368_v53 = vmax.f32 %v1304_v8, 0.0  ;;  %v1044_v42 = vmul.f32 %v4899_v55, %v4688_v36  ;;  %v1036_v5 = vmul.f32 %v4899_v55, %v4677_v25 }
 0x164   :  { %1580 = vmatpush.msrb.mxu0 %v1368_v53  ;;  %v1280_v53 = vadd.f32 %v4897_v12, %v1168_v14  ;;  %v1228_v20 = vadd.f32 %v1164_v23, %v1044_v42  ;;  %v1220_v11 = vadd.f32 %v1156_v44, %v1036_v5 }
 0x165   :  { %v4895_v46 = vpop.f32.mrf.mxu0 }
 0x166   :  { %v1340_v37 = vadd.f32 %v4790_v49, %v1228_v20  ;;  %v1344_v6 = vmax.f32 %v1280_v53, 0.0  ;;  %v1332_v36 = vadd.f32 %v4819_v7, %v1220_v11 }
 0x167   :  { %v4904_v41 = vpop.permute.xlu1 %1250 }
 0x168   :  { %v1296_v34 = vadd.f32 %v4904_v41, %v1184_v43  ;;  %v1404_v58 = vmax.f32 %v1340_v37, 0.0  ;;  %v1396_v43 = vmax.f32 %v1332_v36, 0.0 }
 0x16a   :  { %v1360_v8 = vmax.f32 %v1296_v34, 0.0 }
 0x16c   :  { %1581 = vmatpush.msrb.mxu0 %v1360_v8 }
 0x16d   :  { %v401_v2 = vpop.f32.mrf.mxu0 }
 0x16e   :  { %1582 = vmatpush.msrb.mxu0 %v1352_v61 }
 0x170   :  { %1583 = vmatpush.msrb.mxu0 %v1344_v6 }
 0x172   :  { %1740 = vmatpush.msra.mxu0 %v1404_v58 }
 0x174   :  { %1741 = vmatpush.msra.mxu0 %v1396_v43 }
 0x175   :  { %v404_v14 = vpop.f32.mrf.mxu0 }
 0x17d   :  { %v407_v23 = vpop.f32.mrf.mxu0 }
 0x185   :  { %v410_v42 = vpop.f32.mrf.mxu0 }
 0x18d   :  { %v413_v25 = vpop.f32.mrf.mxu0 }
 0x18e   :  { %v414_v36 = vadd.f32 %v413_v25, %v4589_v4  ;;  %v402_v4 = vadd.f32 %v401_v2, %v4574_v10 }
 0x195   :  { %v416_v34 = vpop.f32.mrf.mxu0 }
 0x196   :  { %v417_v37 = vadd.f32 %v416_v34, %v4570_v54 }
 0x19d   :  { %v419_v51 = vpop.f32.mrf.mxu0 }
 0x19e   :  { %v420_v5 = vadd.f32 %v419_v51, %v4556_v45  ;;  %v405_v51 = vadd.f32 %v404_v14, %v4596_v26  ;;  %v437_v26 = vmul.f32 0.1, %v402_v4  ;;  %v393_v14 = vadd.f32 %v4859_v28, %v4583_v16 }
 0x1a0   :  { %v443_v43 = vmul.f32 0.1, %v420_v5 }
 0x1a2   :  { %v459_v45 = vmax.f32 %v420_v5, %v443_v43  ;;  %v384_v5 = vadd.f32 %v4784_v57, %v4591_v21  ;;  %v1394_v21 = vmax.f32 %v4829_v35, 0.0  ;;  %v464_v57 = vld [vmem:[#allocation2 + $0x148] sm:$0xff]  ;;  %v473_v35 = vld [vmem:[#allocation2 + $0x190] sm:$0xff] }
 0x1a3   :  { %v468_v43 = vld [vmem:[#allocation2 + $0x168] sm:$0xff] }
 0x1a5   :  { %v422_v27 = vpop.f32.mrf.mxu0 }
 0x1a6   :  { %v423_v53 = vadd.f32 %v422_v27, %v4581_v15  ;;  %v442_v15 = vmul.f32 0.1, %v417_v37  ;;  %v441_v27 = vmul.f32 0.1, %v414_v36 }
 0x1a8   :  { %v444_v6 = vmul.f32 0.1, %v423_v53  ;;  %v458_v54 = vmax.f32 %v417_v37, %v442_v15  ;;  %v457_v25 = vmax.f32 %v414_v36, %v441_v27  ;;  %v466_v36 = vld [vmem:[#allocation2 + $0x158] sm:$0xff]  ;;  %v472_v15 = vld [vmem:[#allocation2 + $0x188] sm:$0xff]  ;;  %v1026_v27 = vmul.f32 %v4709_v17, %v4773_v38 }
 0x1ad   :  { %v425_v49 = vpop.f32.mrf.mxu0 }
 0x1ae   :  { %v426_v44 = vadd.f32 %v425_v49, %v4551_v33  ;;  %v411_v33 = vadd.f32 %v410_v42, %v4567_v63  ;;  %v460_v49 = vmax.f32 %v423_v53, %v444_v6  ;;  %v399_v63 = vadd.f32 %v4895_v46, %v4586_v19  ;;  %v465_v6 = vld [vmem:[#allocation2 + $0x150] sm:$0xff] }
 0x1af   :  { %v390_v53 = vadd.f32 %v4843_v40, %v4594_v24  ;;  %v453_v19 = vmax.f32 %v402_v4, %v437_v26  ;;  %v431_v40 = vmul.f32 0.1, %v384_v5  ;;  %v1138_v4 = vmul.f32 %v4711_v18, %v4769_v22 }
 0x1b0   :  { %v445_v61 = vmul.f32 0.1, %v426_v44  ;;  %v440_v34 = vmul.f32 0.1, %v411_v33  ;;  %v436_v2 = vmul.f32 0.1, %v399_v63  ;;  %v1002_v26 = vmul.f32 %v4709_v17, %v4811_v3 }
 0x1b1   :  { %v433_v28 = vmul.f32 0.1, %v390_v53 }
 0x1b2   :  { %v461_v58 = vmax.f32 %v426_v44, %v445_v61  ;;  %v456_v42 = vmax.f32 %v411_v33, %v440_v34  ;;  %v469_v33 = vld [vmem:[#allocation2 + $0x170] sm:$0xff]  ;;  %v1018_v34 = vmul.f32 %v4709_v17, %v4767_v60 }
 0x1b3   :  { %v449_v24 = vmax.f32 %v390_v53, %v433_v28  ;;  %v7082_v53 = vld [vmem:[#allocation54_spill] sm:$0xff] }
 0x1b5   :  { %v428_v20 = vpop.f32.mrf.mxu0 }
 0x1b6   :  { %v429_v7 = vadd.f32 %v428_v20, %v4572_v9  ;;  %v408_v9 = vadd.f32 %v407_v23, %v4579_v13  ;;  %v438_v20 = vmul.f32 0.1, %v405_v51  ;;  %v396_v13 = vadd.f32 %v4872_v59, %v4603_v32 }
 0x1b7   :  { %v452_v32 = vmax.f32 %v399_v63, %v436_v2  ;;  %v434_v59 = vmul.f32 0.1, %v393_v14  ;;  %v1010_v63 = vmul.f32 %v4709_v17, %v4782_v50 }
 0x1b8   :  { %v446_v8 = vmul.f32 0.1, %v429_v7  ;;  %v439_v44 = vmul.f32 0.1, %v408_v9  ;;  %v454_v10 = vmax.f32 %v405_v51, %v438_v20  ;;  %v435_v46 = vmul.f32 0.1, %v396_v13 }
 0x1b9   :  { %v1146_v51 = vmul.f32 %v4711_v18, %v4730_v56 }
 0x1ba   :  { %v462_v11 = vmax.f32 %v429_v7, %v446_v8  ;;  %v455_v23 = vmax.f32 %v408_v9, %v439_v44  ;;  %v387_v7 = vadd.f32 %v4804_v31, %v4610_v39  ;;  %v451_v16 = vmax.f32 %v396_v13, %v435_v46  ;;  %v463_v39 = vld [vmem:[#allocation2 + $0x140] sm:$0xff]  ;;  %v474_v9 = vld [vmem:[#allocation2 + $0x198] sm:$0xff] }
 0x1bb   :  { %v450_v8 = vmax.f32 %v393_v14, %v434_v59  ;;  %v1402_v31 = vmax.f32 %v4794_v62, 0.0  ;;  %v471_v62 = vld [vmem:[#allocation2 + $0x180] sm:$0xff]  ;;  %v1202_v44 = vadd.f32 %v1138_v4, %v1018_v34  ;;  %v476_v14 = vld [vmem:[#allocation2 + $0x1a8] sm:$0xff] }
 0x1bc   :  { %575 = vmatpush.msra.mxu1 %v462_v11  ;;  %v432_v61 = vmul.f32 0.1, %v387_v7  ;;  %v447_v11 = vmax.f32 %v384_v5, %v431_v40  ;;  %v7083_v46 = vld [vmem:[#allocation52_spill] sm:$0xff] }
 0x1bd   :  { %v1314_v13 = vadd.f32 %v4861_v0, %v1202_v44  ;;  %v1419_v4 = vld [vmem:[#allocation2 + $0x3a0] sm:$0xff]  ;;  %v1417_v44 = vld [vmem:[#allocation2 + $0x390] sm:$0xff] }
 0x1be   :  { %576 = vmatpush.msra.mxu1 %v461_v58  ;;  %v448_v37 = vmax.f32 %v387_v7, %v432_v61  ;;  %v467_v58 = vld [vmem:[#allocation2 + $0x160] sm:$0xff]  ;;  %v994_v7 = vmul.f32 %v4709_v17, %v7083_v46  ;;  %v1106_v61 = vmul.f32 %v4711_v18, %v4870_v52  ;;  %1439 = vperm.xlu0 %4398, %v1417_v44  }
 0x1bf   :  { %v1378_v2 = vmax.f32 %v1314_v13, 0.0 }
 0x1c0   :  { %577 = vmatpush.msra.mxu1 %v460_v49  ;;  %v470_v49 = vld [vmem:[#allocation2 + $0x178] sm:$0xff] }
 0x1c2   :  { %578 = vmatpush.msra.mxu1 %v459_v45  ;;  %v475_v45 = vld [vmem:[#allocation2 + $0x1a0] sm:$0xff] }
 0x1c4   :  { %579 = vmatpush.msra.mxu1 %v458_v54  ;;  %v1210_v54 = vadd.f32 %v1146_v51, %v1026_v27  ;;  %v5020_v51 = vld [vmem:[#allocation2 + $0xb8] sm:$0xff] }
 0x1c6   :  { %580 = vmatpush.msra.mxu1 %v457_v25  ;;  %v1322_v25 = vadd.f32 %v4848_v29, %v1210_v54  ;;  %v1421_v54 = vld [vmem:[#allocation2 + $0x3b0] sm:$0xff] }
 0x1c7   :  { %1459 = vperm.xlu1 %4395, %v1421_v54  }
 0x1c8   :  { %581 = vmatpush.msra.mxu1 %v456_v42  ;;  %v1130_v42 = vmul.f32 %v4711_v18, %v4788_v48  ;;  %v1386_v20 = vmax.f32 %v1322_v25, 0.0 }
 0x1ca   :  { %582 = vmatpush.msra.mxu1 %v455_v23  ;;  %v1194_v23 = vadd.f32 %v1130_v42, %v1010_v63  ;;  %v1416_v63 = vld [vmem:[#allocation2 + $0x388] sm:$0xff] }
 0x1cc   :  { %583 = vmatpush.msra.mxu1 %v454_v10  ;;  %v1122_v10 = vmul.f32 %v4711_v18, %v4821_v1 }
 0x1ce   :  { %584 = vmatpush.msra.mxu1 %v453_v19  ;;  %v1306_v19 = vadd.f32 %v7082_v53, %v1194_v23  ;;  %v1186_v5 = vadd.f32 %v1122_v10, %v1002_v26  ;;  %v1420_v23 = vld [vmem:[#allocation2 + $0x3a8] sm:$0xff] }
 0x1cf   :  { %1449 = vperm.xlu1 %4395, %v1419_v4   ;;  %1454 = vperm.xlu2 %4397, %v1420_v23  }
 0x1d0   :  { %585 = vmatpush.msra.mxu1 %v452_v32  ;;  %v7084_v32 = vld [vmem:[#allocation53_spill] sm:$0xff] }
 0x1d1   :  { %v1114_v59 = vmul.f32 %v4711_v18, %v7084_v32  ;;  %v4974_v18 = vld [vmem:[#allocation2 + $0x88] sm:$0xff] }
 0x1d2   :  { %586 = vmatpush.msra.mxu1 %v451_v16  ;;  %v1370_v16 = vmax.f32 %v1306_v19, 0.0 }
 0x1d3   :  { %v1178_v28 = vadd.f32 %v1114_v59, %v994_v7  ;;  %v1028_v59 = vmul.f32 %v4899_v55, %v4773_v38 }
 0x1d4   :  { %587 = vmatpush.msra.mxu1 %v450_v8  ;;  %v986_v8 = vmul.f32 %v4709_v17, %v4868_v47  ;;  %v478_v17 = vld [vmem:[#allocation2 + $0x1b8] sm:$0xff] }
 0x1d5   :  { %v1290_v40 = vadd.f32 %v4891_v30, %v1178_v28 }
 0x1d6   :  { %588 = vmatpush.msra.mxu1 %v449_v24  ;;  %v1298_v24 = vadd.f32 %v4904_v41, %v1186_v5  ;;  %v7085_v5 = vld [vmem:[#allocation55_spill] sm:$0xff] }
 0x1d7   :  { %1434 = vperm.xlu1 %4395, %v1416_v63   ;;  %v1124_v54 = vmul.f32 %v7085_v5, %v4821_v1  ;;  %v996_v63 = vmul.f32 %v4899_v55, %v7083_v46 }
 0x1d8   :  { %589 = vmatpush.msra.mxu1 %v448_v37  ;;  %v1170_v37 = vadd.f32 %v1106_v61, %v986_v8  ;;  %v1020_v8 = vmul.f32 %v4899_v55, %v4767_v60  ;;  %v1140_v61 = vmul.f32 %v7085_v5, %v4769_v22 }
 0x1da   :  { %590 = vmatpush.msra.mxu1 %v447_v11  ;;  %v1362_v11 = vmax.f32 %v1298_v24, 0.0 }
 0x1db   :  { %591 = vmatmul.f32.vlgmr.msra.gmra.mxu1 %v463_v39  ;;  %v1354_v39 = vmax.f32 %v1290_v40, 0.0 }
 0x1dc   :  { %1658 = vmatpush.msrb.mxu1 %v1402_v31  ;;  %v1282_v31 = vadd.f32 %v4897_v12, %v1170_v37  ;;  %v1204_v37 = vadd.f32 %v1140_v61, %v1020_v8 }
 0x1de   :  { %1659 = vmatpush.msrb.mxu1 %v1394_v21  ;;  %v477_v21 = vld [vmem:[#allocation2 + $0x1b0] sm:$0xff] }
 0x1e0   :  { %1660 = vmatpush.msrb.mxu1 %v1386_v20  ;;  %v1414_v20 = vld [vmem:[#allocation2 + $0x378] sm:$0xff] }
 0x1e1   :  { %1424 = vperm.xlu0 %4398, %v1414_v20   ;;  %v1116_v20 = vmul.f32 %v7085_v5, %v7084_v32 }
 0x1e2   :  { %1661 = vmatpush.msrb.mxu1 %v1378_v2  ;;  %v1415_v2 = vld [vmem:[#allocation2 + $0x380] sm:$0xff] }
 0x1e3   :  { %594 = vmatmul.f32.gmra.mxu1 %v464_v57  ;;  %v1346_v57 = vmax.f32 %v1282_v31, 0.0 }
 0x1e4   :  { %1662 = vmatpush.msrb.mxu1 %v1370_v16  ;;  %v1148_v16 = vmul.f32 %v7085_v5, %v4730_v56 }
 0x1e6   :  { %1663 = vmatpush.msrb.mxu1 %v1362_v11  ;;  %v1212_v28 = vadd.f32 %v1148_v16, %v1028_v59  ;;  %v1012_v11 = vmul.f32 %v4899_v55, %v4782_v50  ;;  %v988_v59 = vmul.f32 %v4899_v55, %v4868_v47  ;;  %v1108_v16 = vmul.f32 %v7085_v5, %v4870_v52 }
 0x1e8   :  { %1664 = vmatpush.msrb.mxu1 %v1354_v39  ;;  %v1324_v40 = vadd.f32 %v4848_v29, %v1212_v28  ;;  %v1132_v39 = vmul.f32 %v7085_v5, %v4788_v48  ;;  %v7086_v28 = vld [vmem:[#allocation14_spill] sm:$0xff] }
 0x1ea   :  { %1665 = vmatpush.msrb.mxu1 %v1346_v57  ;;  %v1388_v31 = vmax.f32 %v1324_v40, 0.0  ;;  %v1196_v57 = vadd.f32 %v1132_v39, %v1012_v11  ;;  %v1172_v11 = vadd.f32 %v1108_v16, %v988_v59  ;;  %v7087_v39 = vld [vmem:[#allocation8_spill] sm:$0xff] }
 0x1eb   :  { %597 = vmatmul.f32.gmra.mxu1 %v465_v6  ;;  %v4970_v6 = vld [vmem:[#allocation2 + $0x80] sm:$0xff] }
 0x1ec   :  { %4153 = vmatmul.msk.f32.vlgmr.msrb.gmra.mxu0 %vm317_vm0, %v4970_v6  ;;  %v1308_v44 = vadd.f32 %v7082_v53, %v1196_v57 }
 0x1ed   :  { %1742 = vmatpush.msra.mxu0 %v1388_v31 }
 0x1f3   :  { %600 = vmatmul.f32.gmra.mxu1 %v466_v36 }
 0x1f4   :  { %4154 = vmatmul.msk.f32.gmra.mxu0 %vm317_vm0, %v4974_v18 }
 0x1fb   :  { %603 = vmatmul.f32.gmra.mxu1 %v467_v58  ;;  %v4980_v58 = vld [vmem:[#allocation2 + $0x90] sm:$0xff] }
 0x1fc   :  { %4155 = vmatmul.msk.f32.gmra.mxu0 %vm317_vm0, %v4980_v58 }
 0x203   :  { %606 = vmatmul.f32.gmra.mxu1 %v468_v43 }
 0x20b   :  { %609 = vmatmul.f32.gmra.mxu1 %v469_v33  ;;  %v4988_v33 = vld [vmem:[#allocation2 + $0x98] sm:$0xff] }
 0x20c   :  { %4156 = vmatmul.msk.f32.gmra.mxu0 %vm317_vm0, %v4988_v33 }
 0x213   :  { %612 = vmatmul.f32.gmra.mxu1 %v470_v49 }
 0x21b   :  { %615 = vmatmul.f32.gmra.mxu1 %v471_v62  ;;  %v4996_v62 = vld [vmem:[#allocation2 + $0xa0] sm:$0xff] }
 0x21c   :  { %4157 = vmatmul.msk.f32.gmra.mxu0 %vm317_vm0, %v4996_v62 }
 0x223   :  { %618 = vmatmul.f32.gmra.mxu1 %v472_v15 }
 0x22b   :  { %621 = vmatmul.f32.gmra.mxu1 %v473_v35  ;;  %v5004_v35 = vld [vmem:[#allocation2 + $0xa8] sm:$0xff] }
 0x22c   :  { %4158 = vmatmul.msk.f32.gmra.mxu0 %vm317_vm0, %v5004_v35 }
 0x233   :  { %624 = vmatmul.f32.gmra.mxu1 %v474_v9 }
 0x23b   :  { %627 = vmatmul.f32.gmra.mxu1 %v475_v45  ;;  %v5012_v45 = vld [vmem:[#allocation2 + $0xb0] sm:$0xff] }
 0x23c   :  { %4159 = vmatmul.msk.f32.gmra.mxu0 %vm317_vm0, %v5012_v45 }
 0x243   :  { %630 = vmatmul.f32.gmra.mxu1 %v476_v14  ;;  %v1418_v14 = vld [vmem:[#allocation2 + $0x398] sm:$0xff] }
 0x244   :  { %4160 = vmatmul.msk.f32.gmra.mxu0 %vm317_vm0, %v5020_v51  ;;  %1444 = vperm.xlu2 %4397, %v1418_v14   ;;  %v1372_v14 = vmax.f32 %v1308_v44, 0.0 }
 0x24b   :  { %633 = vmatmul.f32.gmra.mxu1 %v477_v21  ;;  %v1316_v21 = vadd.f32 %v4861_v0, %v1204_v37 }
 0x24c   :  { %1429 = vperm.xlu2 %4397, %v1415_v2   ;;  %v1180_v2 = vadd.f32 %v1116_v20, %v996_v63  ;;  %v7090_v20 = vld [vmem:[#allocation17_spill] sm:$0xff] }
 0x24d   :  { %v1380_v4 = vmax.f32 %v1316_v21, 0.0  ;;  %v7088_v21 = vld [vmem:[#allocation9_spill] sm:$0xff] }
 0x24e   :  { %v1292_v37 = vadd.f32 %v4891_v30, %v1180_v2  ;;  %v7091_v2 = vld [vmem:[#allocation10_spill] sm:$0xff] }
 0x24f   :  { %1743 = vmatpush.msra.mxu0 %v1380_v4  ;;  %v7089_v4 = vld [vmem:[#allocation11_spill] sm:$0xff] }
 0x251   :  { %1744 = vmatpush.msra.mxu0 %v1372_v14 }
 0x253   :  { %636 = vmatmul.f32.gmra.mxu1 %v478_v17  ;;  %v1004_v17 = vmul.f32 %v4899_v55, %v4811_v3  ;;  %v1284_v55 = vadd.f32 %v4897_v12, %v1172_v11  ;;  %v7093_v11 = vld [vmem:[#allocation20_spill] sm:$0xff] }
 0x255   :  { %v1188_v23 = vadd.f32 %v1124_v54, %v1004_v17  ;;  %v1356_v54 = vmax.f32 %v1292_v37, 0.0 }
 0x257   :  { %v1300_v61 = vadd.f32 %v4904_v41, %v1188_v23 }
 0x258   :  { %v4978_v36 = vpop.f32.mrf.mxu1 }
 0x259   :  { %v1364_v17 = vmax.f32 %v1300_v61, 0.0 }
 0x25b   :  { %4169 = vmatmul.msk.f32.vlgmr.msrb.gmra.mxu1 %vm317_vm0, %v4970_v6  ;;  %1745 = vmatpush.msra.mxu0 %v1364_v17 }
 0x25d   :  { %1746 = vmatpush.msra.mxu0 %v1356_v54 }
 0x260   :  { %v4986_v43 = vpop.f32.mrf.mxu1 }
 0x263   :  { %4170 = vmatmul.msk.f32.gmra.mxu1 %vm317_vm0, %v4974_v18 }
 0x268   :  { %v4994_v49 = vpop.f32.mrf.mxu1 }
 0x26b   :  { %4171 = vmatmul.msk.f32.gmra.mxu1 %vm317_vm0, %v4980_v58 }
 0x270   :  { %v5002_v15 = vpop.f32.mrf.mxu1 }
 0x273   :  { %4172 = vmatmul.msk.f32.gmra.mxu1 %vm317_vm0, %v4988_v33 }
 0x278   :  { %v5010_v9 = vpop.f32.mrf.mxu1 }
 0x27b   :  { %4173 = vmatmul.msk.f32.gmra.mxu1 %vm317_vm0, %v4996_v62 }
 0x280   :  { %v5018_v27 = vpop.f32.mrf.mxu1 }
 0x283   :  { %4174 = vmatmul.msk.f32.gmra.mxu1 %vm317_vm0, %v5004_v35 }
 0x288   :  { %v5026_v34 = vpop.f32.mrf.mxu1 }
 0x28b   :  { %4175 = vmatmul.msk.f32.gmra.mxu1 %vm317_vm0, %v5012_v45 }
 0x290   :  { %v5030_v25 = vpop.f32.mrf.mxu1 }
 0x293   :  { %4176 = vmatmul.msk.f32.gmra.mxu1 %vm317_vm0, %v5020_v51 }
 0x298   :  { %v5034_v42 = vpop.f32.mrf.mxu1 }
 0x2a0   :  { %v5036_v13 = vpop.f32.mrf.mxu1 }
 0x2a8   :  { %v622_v26 = vpop.f32.mrf.mxu1 }
 0x2a9   :  { %v623_v59 = vadd.f32 %v622_v26, %v7091_v2 }
 0x2b0   :  { %v625_v10 = vpop.f32.mrf.mxu1 }
 0x2b1   :  { %v626_v23 = vadd.f32 %v625_v10, %v7090_v20 }
 0x2b3   :  { %v651_v10 = vmul.f32 0.1, %v626_v23 }
 0x2b5   :  { %v667_v17 = vmax.f32 %v626_v23, %v651_v10 }
 0x2b8   :  { %v628_v19 = vpop.f32.mrf.mxu1 }
 0x2b9   :  { %v629_v44 = vadd.f32 %v628_v19, %v7089_v4  ;;  %v7092_v19 = vld [vmem:[#allocation13_spill] sm:$0xff] }
 0x2bb   :  { %v652_v16 = vmul.f32 0.1, %v629_v44 }
 0x2bd   :  { %v668_v26 = vmax.f32 %v629_v44, %v652_v16 }
 0x2c0   :  { %v631_v7 = vpop.f32.mrf.mxu1 }
 0x2c1   :  { %v632_v31 = vadd.f32 %v631_v7, %v7087_v39  ;;  %v617_v39 = vadd.f32 %v5034_v42, %v7093_v11  ;;  %v7096_v42 = vld [vmem:[#allocation23_spill] sm:$0xff]  ;;  %v7101_v11 = vld [vmem:[#allocation22_spill] sm:$0xff] }
 0x2c2   :  { %v608_v44 = vadd.f32 %v5018_v27, %v7096_v42 }
 0x2c8   :  { %v634_v24 = vpop.f32.mrf.mxu1 }
 0x2c9   :  { %v635_v8 = vadd.f32 %v634_v24, %v7086_v28  ;;  %v1348_v24 = vmax.f32 %v1284_v55, 0.0  ;;  %v653_v28 = vmul.f32 0.1, %v632_v31  ;;  %v7095_v55 = vld [vmem:[#allocation16_spill] sm:$0xff] }
 0x2ca   :  { %v611_v4 = vadd.f32 %v5026_v34, %v7095_v55 }
 0x2cb   :  { %v654_v63 = vmul.f32 0.1, %v635_v8  ;;  %1747 = vmatpush.msra.mxu0 %v1348_v24  ;;  %v669_v37 = vmax.f32 %v632_v31, %v653_v28  ;;  %v7097_v24 = vld [vmem:[#allocation15_spill] sm:$0xff] }
 0x2cc   :  { %4185 = vmatmul.msk.f32.vlgmr.msra.gmra.mxu0 %vm317_vm0, %v4970_v6  ;;  %v605_v20 = vadd.f32 %v5010_v9, %v7097_v24  ;;  %v646_v34 = vmul.f32 0.1, %v611_v4  ;;  %v7100_v9 = vld [vmem:[#allocation18_spill] sm:$0xff] }
 0x2cd   :  { %v670_v7 = vmax.f32 %v635_v8, %v654_v63  ;;  %v7094_v8 = vld [vmem:[#allocation12_spill] sm:$0xff] }
 0x2ce   :  { %v662_v27 = vmax.f32 %v611_v4, %v646_v34 }
 0x2d0   :  { %v637_v40 = vpop.f32.mrf.mxu1 }
 0x2d1   :  { %v638_v57 = vadd.f32 %v637_v40, %v7088_v21  ;;  %v620_v40 = vadd.f32 %v5036_v13, %v7092_v19  ;;  %v650_v21 = vmul.f32 0.1, %v623_v59  ;;  %v644_v19 = vmul.f32 0.1, %v605_v20 }
 0x2d3   :  { %v655_v5 = vmul.f32 0.1, %v638_v57  ;;  %v649_v54 = vmul.f32 0.1, %v620_v40  ;;  %v666_v13 = vmax.f32 %v623_v59, %v650_v21  ;;  %v645_v59 = vmul.f32 0.1, %v608_v44 }
 0x2d4   :  { %4186 = vmatmul.msk.f32.gmra.mxu0 %vm317_vm0, %v4974_v18  ;;  %v7102_v21 = vld [vmem:[#allocation28_spill] sm:$0xff] }
 0x2d5   :  { %v671_v14 = vmax.f32 %v638_v57, %v655_v5  ;;  %v614_v57 = vadd.f32 %v5030_v25, %v7094_v8  ;;  %v648_v5 = vmul.f32 0.1, %v617_v39  ;;  %v665_v63 = vmax.f32 %v620_v40, %v649_v54 }
 0x2d6   :  { %v661_v10 = vmax.f32 %v608_v44, %v645_v59  ;;  %v1023_v8 = vmul.f32 %v7102_v21, %v4773_v38  ;;  %v1007_v42 = vmul.f32 %v7102_v21, %v4782_v50  ;;  %v991_v59 = vmul.f32 %v7102_v21, %v7083_v46 }
 0x2d7   :  { %728 = vmatpush.msra.mxu2 %v671_v14  ;;  %v647_v25 = vmul.f32 0.1, %v614_v57  ;;  %v664_v23 = vmax.f32 %v617_v39, %v648_v5  ;;  %v7098_v14 = vld [vmem:[#allocation19_spill] sm:$0xff]  ;;  %v593_v39 = vadd.f32 %v4978_v36, %v7101_v11 }
 0x2d8   :  { %v5074_v61 = vpop.f32.mrf.mxu1  ;;  %v602_v28 = vadd.f32 %v5002_v15, %v7098_v14  ;;  %v672_v14 = vld [vmem:[#allocation2 + $0x1c0] sm:$0xff] }
 0x2d9   :  { %729 = vmatpush.msra.mxu2 %v670_v7  ;;  %v663_v2 = vmax.f32 %v614_v57, %v647_v25  ;;  %v7099_v7 = vld [vmem:[#allocation26_spill] sm:$0xff]  ;;  %v7103_v57 = vld [vmem:[#allocation35_spill] sm:$0xff] }
 0x2da   :  { %v599_v16 = vadd.f32 %v4994_v49, %v7099_v7  ;;  %v643_v15 = vmul.f32 0.1, %v602_v28  ;;  %v1135_v4 = vmul.f32 %v7103_v57, %v4769_v22  ;;  %v1127_v44 = vmul.f32 %v7103_v57, %v4788_v48 }
 0x2db   :  { %730 = vmatpush.msra.mxu2 %v669_v37  ;;  %v596_v37 = vadd.f32 %v4986_v43, %v7100_v9  ;;  %v1015_v43 = vmul.f32 %v7102_v21, %v4767_v60  ;;  %v1111_v7 = vmul.f32 %v7103_v57, %v7084_v32 }
 0x2dc   :  { %4187 = vmatmul.msk.f32.gmra.mxu0 %vm317_vm0, %v4980_v58  ;;  %v642_v49 = vmul.f32 0.1, %v599_v16  ;;  %v659_v54 = vmax.f32 %v602_v28, %v643_v15  ;;  %v7105_v15 = vld [vmem:[#allocation47_spill] sm:$0xff] }
 0x2dd   :  { %731 = vmatpush.msra.mxu2 %v668_v26  ;;  %v660_v26 = vmax.f32 %v605_v20, %v644_v19  ;;  %v641_v55 = vmul.f32 0.1, %v596_v37  ;;  %v1199_v24 = vadd.f32 %v1135_v4, %v1015_v43  ;;  %v999_v20 = vmul.f32 %v7102_v21, %v4811_v3 }
 0x2de   :  { %v658_v36 = vmax.f32 %v599_v16, %v642_v49  ;;  %v7104_v16 = vld [vmem:[#allocation42_spill] sm:$0xff]  ;;  %v1391_v11 = vmax.f32 %v7105_v15, 0.0  ;;  %v1175_v49 = vadd.f32 %v1111_v7, %v991_v59 }
 0x2df   :  { %732 = vmatpush.msra.mxu2 %v667_v17  ;;  %v1143_v17 = vmul.f32 %v7103_v57, %v4730_v56  ;;  %v657_v25 = vmax.f32 %v596_v37, %v641_v55  ;;  %v1311_v19 = vadd.f32 %v4861_v0, %v1199_v24  ;;  %v983_v37 = vmul.f32 %v7102_v21, %v4868_v47  ;;  %v673_v55 = vld [vmem:[#allocation2 + $0x1c8] sm:$0xff]  ;;  %v7106_v24 = vld [vmem:[#allocation43_spill] sm:$0xff] }
 0x2e0   :  { %v5086_v31 = vpop.f32.mrf.mxu1  ;;  %v1287_v43 = vadd.f32 %v4891_v30, %v1175_v49  ;;  %v675_v7 = vld [vmem:[#allocation2 + $0x1d8] sm:$0xff] }
 0x2e1   :  { %733 = vmatpush.msra.mxu2 %v666_v13  ;;  %v640_v13 = vmul.f32 0.1, %v593_v39  ;;  %v1207_v5 = vadd.f32 %v1143_v17, %v1023_v8  ;;  %v1375_v17 = vmax.f32 %v1311_v19, 0.0 }
 0x2e3   :  { %734 = vmatpush.msra.mxu2 %v665_v63  ;;  %v656_v34 = vmax.f32 %v593_v39, %v640_v13  ;;  %v1319_v28 = vadd.f32 %v4848_v29, %v1207_v5  ;;  %v1351_v5 = vmax.f32 %v1287_v43, 0.0 }
 0x2e4   :  { %4188 = vmatmul.msk.f32.gmra.mxu0 %vm317_vm0, %v4988_v33 }
 0x2e5   :  { %735 = vmatpush.msra.mxu2 %v664_v23  ;;  %v1119_v23 = vmul.f32 %v7103_v57, %v4821_v1  ;;  %v1383_v39 = vmax.f32 %v1319_v28, 0.0 }
 0x2e7   :  { %736 = vmatpush.msra.mxu2 %v663_v2  ;;  %v1191_v2 = vadd.f32 %v1127_v44, %v1007_v42  ;;  %v1183_v9 = vadd.f32 %v1119_v23, %v999_v20  ;;  %v5146_v44 = vpop.permute.xlu2 %1454  ;;  %v1403_v20 = vmax.f32 %v7106_v24, 0.0  ;;  %v674_v23 = vld [vmem:[#allocation2 + $0x1d0] sm:$0xff] }
 0x2e8   :  { %v5098_v40 = vpop.f32.mrf.mxu1 }
 0x2e9   :  { %737 = vmatpush.msra.mxu2 %v662_v27  ;;  %v1399_v27 = vmax.f32 %v7104_v16, 0.0  ;;  %v5158_v16 = vpop.permute.xlu0 %1439 }
 0x2eb   :  { %738 = vmatpush.msra.mxu2 %v661_v10  ;;  %v1103_v10 = vmul.f32 %v7103_v57, %v4870_v52 }
 0x2ec   :  { %4189 = vmatmul.msk.f32.gmra.mxu0 %vm317_vm0, %v4996_v62 }
 0x2ed   :  { %739 = vmatpush.msra.mxu2 %v660_v26  ;;  %v1303_v26 = vadd.f32 %v7082_v53, %v1191_v2  ;;  %v1167_v21 = vadd.f32 %v1103_v10, %v983_v37 }
 0x2ef   :  { %740 = vmatpush.msra.mxu2 %v659_v54  ;;  %v1295_v54 = vadd.f32 %v4904_v41, %v1183_v9  ;;  %v1367_v57 = vmax.f32 %v1303_v26, 0.0  ;;  %v1279_v13 = vadd.f32 %v4897_v12, %v1167_v21  ;;  %v5156_v59 = vpop.permute.xlu2 %1444 }
 0x2f0   :  { %v5118_v63 = vpop.f32.mrf.mxu1 }
 0x2f1   :  { %741 = vmatpush.msra.mxu2 %v658_v36  ;;  %v1359_v4 = vmax.f32 %v1295_v54, 0.0  ;;  %v5144_v36 = vpop.permute.xlu1 %1459  ;;  %v1677_v49 = vadd.f32 %v5118_v63, %v5158_v16 }
 0x2f3   :  { %742 = vmatpush.msra.mxu2 %v657_v25  ;;  %v1343_v25 = vmax.f32 %v1279_v13, 0.0  ;;  %v1842_v13 = vmul.f32 0.1, %v1677_v49 }
 0x2f4   :  { %4190 = vmatmul.msk.f32.gmra.mxu0 %vm317_vm0, %v5004_v35 }
 0x2f5   :  { %743 = vmatpush.msra.mxu2 %v656_v34  ;;  %v7107_v34 = vld [vmem:[#allocation48_spill] sm:$0xff] }
 0x2f6   :  { %744 = vmatmul.f32.vlgmr.msra.gmra.mxu2 %v672_v14  ;;  %v1395_v14 = vmax.f32 %v7107_v34, 0.0 }
 0x2f7   :  { %1535 = vmatpush.msrb.mxu2 %v1399_v27  ;;  %v5170_v54 = vpop.permute.xlu2 %1429 }
 0x2f8   :  { %v1679_v8 = vpop.f32.mrf.mxu1 }
 0x2f9   :  { %1536 = vmatpush.msrb.mxu2 %v1391_v11  ;;  %v5152_v2 = vpop.permute.xlu1 %1449  ;;  %v1680_v15 = vadd.f32 %v1679_v8, %v5156_v59 }
 0x2fb   :  { %1537 = vmatpush.msrb.mxu2 %v1383_v39 }
 0x2fc   :  { %4191 = vmatmul.msk.f32.gmra.mxu0 %vm317_vm0, %v5012_v45 }
 0x2fd   :  { %1538 = vmatpush.msrb.mxu2 %v1375_v17  ;;  %v676_v17 = vld [vmem:[#allocation2 + $0x1e0] sm:$0xff] }
 0x2fe   :  { %747 = vmatmul.f32.gmra.mxu2 %v673_v55 }
 0x2ff   :  { %1539 = vmatpush.msrb.mxu2 %v1367_v57  ;;  %v1850_v57 = vmul.f32 0.1, %v1680_v15 }
 0x300   :  { %v1682_v42 = vpop.f32.mrf.mxu1 }
 0x301   :  { %1540 = vmatpush.msrb.mxu2 %v1359_v4  ;;  %v1683_v19 = vadd.f32 %v1682_v42, %v5152_v2  ;;  %v5166_v11 = vpop.permute.xlu1 %1434  ;;  %v5174_v4 = vpop.permute.xlu0 %1424  ;;  %v1948_v42 = vld [vmem:[#allocation2 + $0x508] sm:$0xff]  ;;  %v1914_v63 = vmax.f32 %v1680_v15, %v1850_v57  ;;  %v679_v15 = vld [vmem:[#allocation2 + $0x1f8] sm:$0xff] }
 0x302   :  { %v1674_v43 = vadd.f32 %v5098_v40, %v5166_v11  ;;  %1962 = vperm.xlu2 %4397, %v1948_v42   ;;  %v1668_v24 = vadd.f32 %v5074_v61, %v5174_v4  ;;  %v678_v61 = vld [vmem:[#allocation2 + $0x1f0] sm:$0xff]  ;;  %v5194_v57 = vld [vmem:[#allocation2 + $0x258] sm:$0xff] }
 0x303   :  { %1541 = vmatpush.msrb.mxu2 %v1351_v5  ;;  %v1858_v26 = vmul.f32 0.1, %v1683_v19  ;;  %v1671_v5 = vadd.f32 %v5086_v31, %v5170_v54  ;;  %v800_v31 = vld [vmem:[#allocation2 + $0x550] sm:$0xff] }
 0x304   :  { %4192 = vmatmul.msk.f32.gmra.mxu0 %vm317_vm0, %v5020_v51  ;;  %v7109_v42 = vld [vmem:[#allocation37_spill] sm:$0xff] }
 0x305   :  { %1542 = vmatpush.msrb.mxu2 %v1343_v25  ;;  %v1922_v8 = vmax.f32 %v1683_v19, %v1858_v26  ;;  %v1834_v25 = vmul.f32 0.1, %v1674_v43  ;;  %v1826_v40 = vmul.f32 0.1, %v1671_v5  ;;  %v5180_v19 = vld [vmem:[#allocation2 + $0x240] sm:$0xff] }
 0x306   :  { %750 = vmatmul.f32.gmra.mxu2 %v674_v23  ;;  %v677_v23 = vld [vmem:[#allocation2 + $0x1e8] sm:$0xff]  ;;  %v794_v26 = vld [vmem:[#allocation2 + $0x520] sm:$0xff] }
 0x307   :  { %1699 = vmatpush.msra.mxu2 %v1403_v20  ;;  %v1906_v20 = vmax.f32 %v1677_v49, %v1842_v13  ;;  %v1898_v34 = vmax.f32 %v1674_v43, %v1834_v25  ;;  %v5188_v49 = vld [vmem:[#allocation2 + $0x250] sm:$0xff]  ;;  %v799_v43 = vld [vmem:[#allocation2 + $0x548] sm:$0xff] }
 0x308   :  { %v1685_v28 = vpop.f32.mrf.mxu1  ;;  %v7108_v13 = vld [vmem:[#allocation36_spill] sm:$0xff]  ;;  %v796_v25 = vld [vmem:[#allocation2 + $0x530] sm:$0xff] }
 0x309   :  { %1700 = vmatpush.msra.mxu2 %v1395_v14  ;;  %v1686_v27 = vadd.f32 %v1685_v28, %v5146_v44  ;;  %v1818_v14 = vmul.f32 0.1, %v1668_v24  ;;  %v1890_v28 = vmax.f32 %v1671_v5, %v1826_v40  ;;  %v1027_v5 = vmul.f32 %v7108_v13, %v4773_v38 }
 0x30a   :  { %838 = vperm.xlu2 %4397, %v800_v31   ;;  %v1139_v40 = vmul.f32 %v7109_v42, %v4769_v22 }
 0x30b   :  { %v1866_v10 = vmul.f32 0.1, %v1686_v27 }
 0x30d   :  { %v1930_v55 = vmax.f32 %v1686_v27, %v1866_v10  ;;  %v1882_v27 = vmax.f32 %v1668_v24, %v1818_v14  ;;  %v5184_v10 = vld [vmem:[#allocation2 + $0x248] sm:$0xff]  ;;  %v2914_v24 = vld [vmem:[#allocation2 + $0x578] sm:$0xff] }
 0x30e   :  { %753 = vmatmul.f32.gmra.mxu2 %v675_v7  ;;  %v1949_v7 = vld [vmem:[#allocation2 + $0x510] sm:$0xff] }
 0x30f   :  { %1967 = vperm.xlu1 %4395, %v1949_v7   ;;  %v1131_v7 = vmul.f32 %v7109_v42, %v4788_v48 }
 0x310   :  { %v1688_v9 = vpop.f32.mrf.mxu1 }
 0x311   :  { %v1689_v37 = vadd.f32 %v1688_v9, %v5144_v36  ;;  %v1946_v9 = vld [vmem:[#allocation2 + $0x4f8] sm:$0xff] }
 0x313   :  { %v1874_v39 = vmul.f32 0.1, %v1689_v37 }
 0x315   :  { %v1938_v21 = vmax.f32 %v1689_v37, %v1874_v39  ;;  %v797_v37 = vld [vmem:[#allocation2 + $0x538] sm:$0xff]  ;;  %v798_v39 = vld [vmem:[#allocation2 + $0x540] sm:$0xff] }
 0x316   :  { %756 = vmatmul.f32.gmra.mxu2 %v676_v17  ;;  %823 = vperm.xlu2 %4397, %v797_v37   ;;  %v1947_v17 = vld [vmem:[#allocation2 + $0x500] sm:$0xff] }
 0x317   :  { %2106 = vmatpush.msrb.mxu0 %v1938_v21  ;;  %1952 = vperm.xlu1 %4395, %v1946_v9   ;;  %v795_v21 = vld [vmem:[#allocation2 + $0x528] sm:$0xff]  ;;  %v1003_v9 = vmul.f32 %v7108_v13, %v4811_v3 }
 0x318   :  { %1957 = vperm.xlu0 %4398, %v1947_v17   ;;  %v1115_v17 = vmul.f32 %v7109_v42, %v7084_v32 }
 0x319   :  { %2107 = vmatpush.msrb.mxu0 %v1930_v55  ;;  %v2910_v55 = vld [vmem:[#allocation2 + $0x558] sm:$0xff] }
 0x31b   :  { %2108 = vmatpush.msrb.mxu0 %v1922_v8  ;;  %v2912_v8 = vld [vmem:[#allocation2 + $0x568] sm:$0xff] }
 0x31d   :  { %2109 = vmatpush.msrb.mxu0 %v1914_v63  ;;  %v1147_v63 = vmul.f32 %v7109_v42, %v4730_v56 }
 0x31e   :  { %759 = vmatmul.f32.gmra.mxu2 %v677_v23  ;;  %808 = vperm.xlu2 %4397, %v794_v26   ;;  %v995_v26 = vmul.f32 %v7108_v13, %v7083_v46 }
 0x31f   :  { %2110 = vmatpush.msrb.mxu0 %v1906_v20  ;;  %828 = vperm.xlu1 %4395, %v798_v39   ;;  %v1019_v20 = vmul.f32 %v7108_v13, %v4767_v60  ;;  %v1211_v23 = vadd.f32 %v1147_v63, %v1027_v5  ;;  %v1107_v5 = vmul.f32 %v7109_v42, %v4870_v52 }
 0x320   :  { %833 = vperm.xlu0 %4398, %v799_v43   ;;  %v2916_v43 = vld [vmem:[#allocation2 + $0x588] sm:$0xff] }
 0x321   :  { %2111 = vmatpush.msrb.mxu0 %v1898_v34  ;;  %v1203_v34 = vadd.f32 %v1139_v40, %v1019_v20  ;;  %v1323_v14 = vadd.f32 %v4848_v29, %v1211_v23 }
 0x323   :  { %2112 = vmatpush.msrb.mxu0 %v1890_v28  ;;  %v1011_v28 = vmul.f32 %v7108_v13, %v4782_v50  ;;  %v1315_v31 = vadd.f32 %v4861_v0, %v1203_v34 }
 0x325   :  { %2113 = vmatpush.msrb.mxu0 %v1882_v27  ;;  %v1387_v27 = vmax.f32 %v1323_v14, 0.0  ;;  %v1379_v37 = vmax.f32 %v1315_v31, 0.0  ;;  %v2915_v31 = vld [vmem:[#allocation2 + $0x580] sm:$0xff] }
 0x326   :  { %4217 = vmatmul.msk.f32.vlgmr.msrb.gmra.mxu0 %vm317_vm0, %v5180_v19  ;;  %762 = vmatmul.f32.gmra.mxu2 %v678_v61  ;;  %v1195_v61 = vadd.f32 %v1131_v7, %v1011_v28  ;;  %v2918_v28 = vld [vmem:[#allocation2 + $0x598] sm:$0x1]  ;;  %v2913_v7 = vld [vmem:[#allocation2 + $0x570] sm:$0xff] }
 0x327   :  { %813 = vperm.xlu1 %4395, %v795_v21   ;;  %2921 = vperm.xlu2 %4397, %v2910_v55   ;;  %v793_v21 = vld [vmem:[#allocation2 + $0x518] sm:$0xff] }
 0x328   :  { %818 = vperm.xlu0 %4398, %v796_v25   ;;  %1701 = vmatpush.msra.mxu2 %v1387_v27  ;;  %v1307_v39 = vadd.f32 %v7082_v53, %v1195_v61  ;;  %v1179_v25 = vadd.f32 %v1115_v17, %v995_v26  ;;  %v2917_v27 = vld [vmem:[#allocation2 + $0x590] sm:$0xff] }
 0x32a   :  { %1702 = vmatpush.msra.mxu2 %v1379_v37  ;;  %v1371_v63 = vmax.f32 %v1307_v39, 0.0  ;;  %v1291_v40 = vadd.f32 %v4891_v30, %v1179_v25 }
 0x32c   :  { %1703 = vmatpush.msra.mxu2 %v1371_v63  ;;  %v1355_v14 = vmax.f32 %v1291_v40, 0.0 }
 0x32e   :  { %4218 = vmatmul.msk.f32.gmra.mxu0 %vm317_vm0, %v5184_v10  ;;  %765 = vmatmul.f32.gmra.mxu2 %v679_v15  ;;  %v1123_v15 = vmul.f32 %v7109_v42, %v4821_v1  ;;  %v2911_v42 = vld [vmem:[#allocation2 + $0x560] sm:$0xff] }
 0x32f   :  { %2931 = vperm.xlu2 %4397, %v2912_v8   ;;  %v987_v8 = vmul.f32 %v7108_v13, %v4868_v47 }
 0x330   :  { %v1187_v55 = vadd.f32 %v1123_v15, %v1003_v9  ;;  %803 = vperm.xlu0 %4398, %v793_v21  }
 0x331   :  { %v1171_v20 = vadd.f32 %v1107_v5, %v987_v8 }
 0x333   :  { %v1283_v34 = vadd.f32 %v4897_v12, %v1171_v20 }
 0x335   :  { %v1347_v13 = vmax.f32 %v1283_v34, 0.0 }
 0x336   :  { %4219 = vmatmul.msk.f32.gmra.mxu0 %vm317_vm0, %v5188_v49  ;;  %4145 = vmatmul.msk.f32.vlgmr.msrb.gmra.mxu2 %vm317_vm0, %v4970_v6 }
 0x337   :  { %2941 = vperm.xlu2 %4397, %v2914_v24   ;;  %v1299_v24 = vadd.f32 %v4904_v41, %v1187_v55  ;;  %v7112_v55 = vld [vmem:[#allocation33_spill] sm:$0xff] }
 0x338   :  { %2926 = vperm.xlu0 %4398, %v2911_v42  }
 0x339   :  { %v1363_v23 = vmax.f32 %v1299_v24, 0.0 }
 0x33b   :  { %1704 = vmatpush.msra.mxu2 %v1363_v23 }
 0x33d   :  { %1705 = vmatpush.msra.mxu2 %v1355_v14  ;;  %v7116_v14 = vld [vmem:[#allocation41_spill] sm:$0xff] }
 0x33e   :  { %4220 = vmatmul.msk.f32.gmra.mxu0 %vm317_vm0, %v5194_v57  ;;  %4146 = vmatmul.msk.f32.gmra.mxu2 %vm317_vm0, %v4974_v18 }
 0x33f   :  { %2951 = vperm.xlu2 %4397, %v2916_v43   ;;  %1706 = vmatpush.msra.mxu2 %v1347_v13 }
 0x340   :  { %2936 = vperm.xlu0 %4398, %v2913_v7   ;;  %v7117_v7 = vld [vmem:[#allocation27_spill] sm:$0xff] }
 0x346   :  { %4147 = vmatmul.msk.f32.gmra.mxu2 %vm317_vm0, %v4980_v58 }
 0x347   :  { %2961 = vperm.xlu2 %4397, %v2918_v28  }
 0x348   :  { %2946 = vperm.xlu0 %4398, %v2915_v31  }
 0x34e   :  { %4148 = vmatmul.msk.f32.gmra.mxu2 %vm317_vm0, %v4988_v33 }
 0x350   :  { %2956 = vperm.xlu0 %4398, %v2917_v27  }
 0x356   :  { %4149 = vmatmul.msk.f32.gmra.mxu2 %vm317_vm0, %v4996_v62 }
 0x35e   :  { %4150 = vmatmul.msk.f32.gmra.mxu2 %vm317_vm0, %v5004_v35 }
 0x366   :  { %4151 = vmatmul.msk.f32.gmra.mxu2 %vm317_vm0, %v5012_v45 }
 0x36e   :  { %4152 = vmatmul.msk.f32.gmra.mxu2 %vm317_vm0, %v5020_v51 }
 0x376   :  { %4177 = vmatmul.msk.f32.vlgmr.msra.gmra.mxu2 %vm317_vm0, %v4970_v6 }
 0x379   :  { %v745_v61 = vpop.f32.mrf.mxu2 }
 0x37a   :  { %v746_v31 = vadd.f32 %v745_v61, %v7117_v7 }
 0x37e   :  { %4178 = vmatmul.msk.f32.gmra.mxu2 %vm317_vm0, %v4974_v18 }
 0x381   :  { %v748_v9 = vpop.f32.mrf.mxu2 }
 0x382   :  { %v749_v13 = vadd.f32 %v748_v9, %v7116_v14 }
 0x386   :  { %4179 = vmatmul.msk.f32.gmra.mxu2 %vm317_vm0, %v4980_v58  ;;  %v7110_v58 = vld [vmem:[#allocation21_spill] sm:$0xff] }
 0x389   :  { %v751_v37 = vpop.f32.mrf.mxu2 }
 0x38e   :  { %4180 = vmatmul.msk.f32.gmra.mxu2 %vm317_vm0, %v4988_v33  ;;  %v7111_v33 = vld [vmem:[#allocation25_spill] sm:$0xff] }
 0x391   :  { %v754_v15 = vpop.f32.mrf.mxu2 }
 0x396   :  { %4181 = vmatmul.msk.f32.gmra.mxu2 %vm317_vm0, %v4996_v62  ;;  %v7113_v62 = vld [vmem:[#allocation34_spill] sm:$0xff] }
 0x399   :  { %v757_v39 = vpop.f32.mrf.mxu2 }
 0x39a   :  { %v758_v8 = vadd.f32 %v757_v39, %v7113_v62 }
 0x39e   :  { %4182 = vmatmul.msk.f32.gmra.mxu2 %vm317_vm0, %v5004_v35  ;;  %v7114_v35 = vld [vmem:[#allocation24_spill] sm:$0xff] }
 0x39f   :  { %v755_v25 = vadd.f32 %v754_v15, %v7114_v35  ;;  %v7118_v15 = vld [vmem:[#allocation29_spill] sm:$0xff] }
 0x3a0   :  { %v1014_v9 = vmul.f32 %v7118_v15, %v4767_v60 }
 0x3a1   :  { %v760_v6 = vpop.f32.mrf.mxu2  ;;  %v772_v28 = vmul.f32 0.1, %v755_v25 }
 0x3a2   :  { %v761_v21 = vadd.f32 %v760_v6, %v7111_v33  ;;  %v1022_v6 = vmul.f32 %v7118_v15, %v4773_v38  ;;  %v769_v33 = vmul.f32 0.1, %v746_v31 }
 0x3a4   :  { %v774_v20 = vmul.f32 0.1, %v761_v21 }
 0x3a6   :  { %4183 = vmatmul.msk.f32.gmra.mxu2 %vm317_vm0, %v5012_v45  ;;  %v7115_v45 = vld [vmem:[#allocation32_spill] sm:$0xff]  ;;  %v782_v42 = vmax.f32 %v761_v21, %v774_v20 }
 0x3a7   :  { %v752_v40 = vadd.f32 %v751_v37, %v7115_v45  ;;  %v7119_v37 = vld [vmem:[#allocation38_spill] sm:$0xff] }
 0x3a8   :  { %v1118_v35 = vmul.f32 %v7119_v37, %v4821_v1  ;;  %v1102_v7 = vmul.f32 %v7119_v37, %v4870_v52 }
 0x3a9   :  { %v763_v18 = vpop.f32.mrf.mxu2  ;;  %v771_v39 = vmul.f32 0.1, %v752_v40 }
 0x3aa   :  { %v764_v26 = vadd.f32 %v763_v18, %v7110_v58  ;;  %v1142_v18 = vmul.f32 %v7119_v37, %v4730_v56  ;;  %v780_v58 = vmax.f32 %v755_v25, %v772_v28  ;;  %v777_v25 = vmax.f32 %v746_v31, %v769_v33  ;;  %v7121_v31 = vld [vmem:[#allocation49_spill] sm:$0xff] }
 0x3ab   :  { %v779_v61 = vmax.f32 %v752_v40, %v771_v39  ;;  %v990_v40 = vmul.f32 %v7118_v15, %v7083_v46  ;;  %v982_v28 = vmul.f32 %v7118_v15, %v4868_v47 }
 0x3ac   :  { %v775_v63 = vmul.f32 0.1, %v764_v26  ;;  %v1206_v21 = vadd.f32 %v1142_v18, %v1022_v6 }
 0x3ae   :  { %4184 = vmatmul.msk.f32.gmra.mxu2 %vm317_vm0, %v5020_v51  ;;  %v783_v23 = vmax.f32 %v764_v26, %v775_v63  ;;  %v773_v51 = vmul.f32 0.1, %v758_v8  ;;  %v770_v26 = vmul.f32 0.1, %v749_v13  ;;  %v998_v63 = vmul.f32 %v7118_v15, %v4811_v3 }
 0x3af   :  { %v1318_v20 = vadd.f32 %v4848_v29, %v1206_v21 }
 0x3b0   :  { %v781_v27 = vmax.f32 %v758_v8, %v773_v51  ;;  %v778_v8 = vmax.f32 %v749_v13, %v770_v26  ;;  %v7120_v51 = vld [vmem:[#allocation44_spill] sm:$0xff] }
 0x3b1   :  { %v766_v17 = vpop.f32.mrf.mxu2  ;;  %v1398_v14 = vmax.f32 %v7120_v51, 0.0  ;;  %v1382_v39 = vmax.f32 %v1318_v20, 0.0 }
 0x3b2   :  { %v767_v43 = vadd.f32 %v766_v17, %v7112_v55  ;;  %v1134_v17 = vmul.f32 %v7119_v37, %v4769_v22  ;;  %v1006_v55 = vmul.f32 %v7118_v15, %v4782_v50  ;;  %v786_v15 = vld [vmem:[#allocation2 + $0x208] sm:$0xff] }
 0x3b4   :  { %v776_v5 = vmul.f32 0.1, %v767_v43 }
 0x3b6   :  { %v784_v24 = vmax.f32 %v767_v43, %v776_v5  ;;  %v1126_v43 = vmul.f32 %v7119_v37, %v4788_v48  ;;  %v1198_v5 = vadd.f32 %v1134_v17, %v1014_v9  ;;  %v1166_v17 = vadd.f32 %v1102_v7, %v982_v28  ;;  %v787_v7 = vld [vmem:[#allocation2 + $0x210] sm:$0xff] }
 0x3b8   :  { %873 = vmatpush.msra.mxu3 %v784_v24  ;;  %v785_v24 = vld [vmem:[#allocation2 + $0x200] sm:$0xff]  ;;  %v1190_v45 = vadd.f32 %v1126_v43, %v1006_v55  ;;  %v1310_v13 = vadd.f32 %v4861_v0, %v1198_v5  ;;  %v1278_v5 = vadd.f32 %v4897_v12, %v1166_v17 }
 0x3b9   :  { %v5264_v34 = vpop.f32.mrf.mxu2  ;;  %v7123_v55 = vld [vmem:[#allocation39_spill] sm:$0xff] }
 0x3ba   :  { %874 = vmatpush.msra.mxu3 %v783_v23  ;;  %v1110_v23 = vmul.f32 %v7119_v37, %v7084_v32  ;;  %v1302_v6 = vadd.f32 %v7082_v53, %v1190_v45  ;;  %v1374_v26 = vmax.f32 %v1310_v13, 0.0  ;;  %v1145_v43 = vmul.f32 %v7123_v55, %v4730_v56 }
 0x3bb   :  { %v1121_v13 = vmul.f32 %v7123_v55, %v4821_v1 }
 0x3bc   :  { %875 = vmatpush.msra.mxu3 %v782_v42  ;;  %v1182_v42 = vadd.f32 %v1118_v35, %v998_v63  ;;  %v1174_v18 = vadd.f32 %v1110_v23, %v990_v40  ;;  %v1366_v33 = vmax.f32 %v1302_v6, 0.0  ;;  %v1137_v35 = vmul.f32 %v7123_v55, %v4769_v22 }
 0x3bd   :  { %v1129_v40 = vmul.f32 %v7123_v55, %v4788_v48  ;;  %v1342_v23 = vmax.f32 %v1278_v5, 0.0  ;;  %v1113_v6 = vmul.f32 %v7123_v55, %v7084_v32 }
 0x3be   :  { %876 = vmatpush.msra.mxu3 %v781_v27  ;;  %v1390_v27 = vmax.f32 %v7121_v31, 0.0  ;;  %v1294_v9 = vadd.f32 %v4904_v41, %v1182_v42  ;;  %v1286_v37 = vadd.f32 %v4891_v30, %v1174_v18  ;;  %v7124_v42 = vld [vmem:[#allocation45_spill] sm:$0xff]  ;;  %v7125_v18 = vld [vmem:[#allocation50_spill] sm:$0xff] }
 0x3bf   :  { %v1401_v28 = vmax.f32 %v7124_v42, 0.0  ;;  %v790_v42 = vld [vmem:[#allocation2 + $0x228] sm:$0xff] }
 0x3c0   :  { %877 = vmatpush.msra.mxu3 %v780_v58 }
 0x3c1   :  { %v5280_v62 = vpop.f32.mrf.mxu2 }
 0x3c2   :  { %878 = vmatpush.msra.mxu3 %v779_v61  ;;  %v7122_v61 = vld [vmem:[#allocation30_spill] sm:$0xff] }
 0x3c3   :  { %v1025_v21 = vmul.f32 %v7122_v61, %v4773_v38  ;;  %v1017_v63 = vmul.f32 %v7122_v61, %v4767_v60  ;;  %v1009_v45 = vmul.f32 %v7122_v61, %v4782_v50 }
 0x3c4   :  { %879 = vmatpush.msra.mxu3 %v778_v8  ;;  %v1358_v8 = vmax.f32 %v1294_v9, 0.0 }
 0x3c5   :  { %v1209_v20 = vadd.f32 %v1145_v43, %v1025_v21  ;;  %v1201_v51 = vadd.f32 %v1137_v35, %v1017_v63 }
 0x3c6   :  { %880 = vmatpush.msra.mxu3 %v777_v25  ;;  %v1350_v25 = vmax.f32 %v1286_v37, 0.0 }
 0x3c7   :  { %4129 = vmatmul.msk.f32.vlgmr.msra.gmra.mxu3 %vm317_vm0, %v785_v24  ;;  %v1321_v31 = vadd.f32 %v4848_v29, %v1209_v20  ;;  %v1313_v9 = vadd.f32 %v4861_v0, %v1201_v51  ;;  %v788_v20 = vld [vmem:[#allocation2 + $0x218] sm:$0xff] }
 0x3c8   :  { %1494 = vmatpush.msrb.mxu3 %v1398_v14  ;;  %v1001_v14 = vmul.f32 %v7122_v61, %v4811_v3 }
 0x3c9   :  { %v5300_v58 = vpop.f32.mrf.mxu2  ;;  %v1385_v21 = vmax.f32 %v1321_v31, 0.0  ;;  %v1377_v5 = vmax.f32 %v1313_v9, 0.0  ;;  %v791_v9 = vld [vmem:[#allocation2 + $0x230] sm:$0xff] }
 0x3ca   :  { %1495 = vmatpush.msrb.mxu3 %v1390_v27  ;;  %v1193_v27 = vadd.f32 %v1129_v40, %v1009_v45  ;;  %v1185_v17 = vadd.f32 %v1121_v13, %v1001_v14  ;;  %v789_v14 = vld [vmem:[#allocation2 + $0x220] sm:$0xff] }
 0x3cc   :  { %1496 = vmatpush.msrb.mxu3 %v1382_v39  ;;  %v993_v39 = vmul.f32 %v7122_v61, %v7083_v46  ;;  %v1305_v43 = vadd.f32 %v7082_v53, %v1193_v27  ;;  %v1297_v63 = vadd.f32 %v4904_v41, %v1185_v17 }
 0x3ce   :  { %1497 = vmatpush.msrb.mxu3 %v1374_v26  ;;  %v1393_v26 = vmax.f32 %v7125_v18, 0.0 }
 0x3cf   :  { %4130 = vmatmul.msk.f32.gmra.mxu3 %vm317_vm0, %v786_v15  ;;  %v985_v15 = vmul.f32 %v7122_v61, %v4868_v47 }
 0x3d0   :  { %1498 = vmatpush.msrb.mxu3 %v1366_v33  ;;  %v1105_v33 = vmul.f32 %v7123_v55, %v4870_v52  ;;  %v1361_v55 = vmax.f32 %v1297_v63, 0.0 }
 0x3d1   :  { %v1553_v24 = vpop.f32.mrf.mxu2 }
 0x3d2   :  { %1499 = vmatpush.msrb.mxu3 %v1358_v8  ;;  %v1177_v8 = vadd.f32 %v1113_v6, %v993_v39  ;;  %v1169_v35 = vadd.f32 %v1105_v33, %v985_v15  ;;  %v1554_v39 = vadd.f32 %v1553_v24, %v5158_v16  ;;  %v1551_v33 = vadd.f32 %v5300_v58, %v5166_v11  ;;  %v792_v58 = vld [vmem:[#allocation2 + $0x238] sm:$0xff] }
 0x3d3   :  { %v1545_v24 = vadd.f32 %v5264_v34, %v5174_v4 }
 0x3d4   :  { %1500 = vmatpush.msrb.mxu3 %v1350_v25  ;;  %v1369_v25 = vmax.f32 %v1305_v43, 0.0  ;;  %v1289_v61 = vadd.f32 %v4891_v30, %v1177_v8  ;;  %v1281_v45 = vadd.f32 %v4897_v12, %v1169_v35  ;;  %v1831_v35 = vmul.f32 0.1, %v1551_v33 }
 0x3d6   :  { %1501 = vmatpush.msrb.mxu3 %v1342_v23  ;;  %v1353_v23 = vmax.f32 %v1289_v61, 0.0  ;;  %v1345_v51 = vmax.f32 %v1281_v45, 0.0  ;;  %v1815_v61 = vmul.f32 0.1, %v1545_v24  ;;  %v7126_v45 = vld [vmem:[#allocation31_spill] sm:$0xff]  ;;  %v1895_v34 = vmax.f32 %v1551_v33, %v1831_v35 }
 0x3d7   :  { %4131 = vmatmul.msk.f32.gmra.mxu3 %vm317_vm0, %v787_v7 }
 0x3d8   :  { %1617 = vmatpush.msra.mxu3 %v1401_v28 }
 0x3d9   :  { %v1556_v37 = vpop.f32.mrf.mxu2 }
 0x3da   :  { %1618 = vmatpush.msra.mxu3 %v1393_v26  ;;  %v1557_v6 = vadd.f32 %v1556_v37, %v5156_v59  ;;  %v1548_v37 = vadd.f32 %v5280_v62, %v5170_v54 }
 0x3dc   :  { %1619 = vmatpush.msra.mxu3 %v1385_v21  ;;  %v1839_v21 = vmul.f32 0.1, %v1554_v39  ;;  %v1847_v43 = vmul.f32 0.1, %v1557_v6 }
 0x3de   :  { %1620 = vmatpush.msra.mxu3 %v1377_v5 }
 0x3df   :  { %4132 = vmatmul.msk.f32.gmra.mxu3 %vm317_vm0, %v788_v20  ;;  %v1911_v20 = vmax.f32 %v1557_v6, %v1847_v43 }
 0x3e0   :  { %1621 = vmatpush.msra.mxu3 %v1369_v25  ;;  %v1903_v25 = vmax.f32 %v1554_v39, %v1839_v21 }
 0x3e1   :  { %v1559_v40 = vpop.f32.mrf.mxu2 }
 0x3e2   :  { %1622 = vmatpush.msra.mxu3 %v1361_v55  ;;  %v1560_v31 = vadd.f32 %v1559_v40, %v5152_v2  ;;  %v1823_v55 = vmul.f32 0.1, %v1548_v37  ;;  %v1029_v40 = vmul.f32 %v7126_v45, %v4773_v38  ;;  %v1013_v38 = vmul.f32 %v7126_v45, %v4782_v50 }
 0x3e4   :  { %1623 = vmatpush.msra.mxu3 %v1353_v23  ;;  %v1855_v17 = vmul.f32 0.1, %v1560_v31  ;;  %v7127_v23 = vld [vmem:[#allocation40_spill] sm:$0xff] }
 0x3e6   :  { %1624 = vmatpush.msra.mxu3 %v1345_v51  ;;  %v1919_v63 = vmax.f32 %v1560_v31, %v1855_v17  ;;  %v1149_v51 = vmul.f32 %v7127_v23, %v4730_v56  ;;  %v1133_v56 = vmul.f32 %v7127_v23, %v4788_v48  ;;  %v997_v48 = vmul.f32 %v7126_v45, %v7083_v46 }
 0x3e7   :  { %4133 = vmatmul.msk.f32.gmra.mxu3 %vm317_vm0, %v789_v14  ;;  %v1021_v14 = vmul.f32 %v7126_v45, %v4767_v60  ;;  %v1125_v60 = vmul.f32 %v7127_v23, %v4821_v1  ;;  %v1109_v46 = vmul.f32 %v7127_v23, %v4870_v52 }
 0x3e8   :  { %v1197_v50 = vadd.f32 %v1133_v56, %v1013_v38 }
 0x3e9   :  { %v1562_v13 = vpop.f32.mrf.mxu2 }
 0x3ea   :  { %v1563_v28 = vadd.f32 %v1562_v13, %v5146_v44  ;;  %v1141_v13 = vmul.f32 %v7127_v23, %v4769_v22  ;;  %v7128_v22 = vld [vmem:[#allocation46_spill] sm:$0xff]  ;;  %v1309_v33 = vadd.f32 %v7082_v53, %v1197_v50 }
 0x3eb   :  { %v1405_v39 = vmax.f32 %v7128_v22, 0.0 }
 0x3ec   :  { %v1863_v18 = vmul.f32 0.1, %v1563_v28  ;;  %v1205_v31 = vadd.f32 %v1141_v13, %v1021_v14 }
 0x3ee   :  { %v1927_v8 = vmax.f32 %v1563_v28, %v1863_v18  ;;  %v1887_v28 = vmax.f32 %v1548_v37, %v1823_v55  ;;  %v1117_v18 = vmul.f32 %v7127_v23, %v7084_v32  ;;  %v5398_v37 = vld [vmem:[#allocation2 + $0x88] sm:$0xff] }
 0x3ef   :  { %4134 = vmatmul.msk.f32.gmra.mxu3 %vm317_vm0, %v790_v42  ;;  %v1879_v42 = vmax.f32 %v1545_v24, %v1815_v61  ;;  %v5419_v61 = vld [vmem:[#allocation2 + $0xa8] sm:$0xff] }
 0x3f0   :  { %v1181_v21 = vadd.f32 %v1117_v18, %v997_v48 }
 0x3f1   :  { %v1565_v7 = vpop.f32.mrf.mxu2 }
 0x3f2   :  { %v1566_v27 = vadd.f32 %v1565_v7, %v5144_v36  ;;  %v1213_v7 = vadd.f32 %v1149_v51, %v1029_v40  ;;  %v5428_v51 = vld [vmem:[#allocation2 + $0xb8] sm:$0xff] }
 0x3f4   :  { %v1871_v26 = vmul.f32 0.1, %v1566_v27  ;;  %v1325_v6 = vadd.f32 %v4848_v29, %v1213_v7  ;;  %v989_v29 = vmul.f32 %v7126_v45, %v4868_v47  ;;  %v1293_v47 = vadd.f32 %v4891_v30, %v1181_v21  ;;  %v5435_v7 = vpop.f32.mrf.mxu0 }
 0x3f6   :  { %v1935_v15 = vmax.f32 %v1566_v27, %v1871_v26  ;;  %v1005_v27 = vmul.f32 %v7126_v45, %v4811_v3  ;;  %v5383_v26 = vld [vmem:[#allocation2 + $0x80] sm:$0xff]  ;;  %v1389_v32 = vmax.f32 %v1325_v6, 0.0  ;;  %v1173_v24 = vadd.f32 %v1109_v46, %v989_v29  ;;  %v5423_v45 = vld [vmem:[#allocation2 + $0xb0] sm:$0xff] }
 0x3f7   :  { %4135 = vmatmul.msk.f32.gmra.mxu3 %vm317_vm0, %v791_v9  ;;  %v7129_v3 = vld [vmem:[#allocation51_spill] sm:$0xff]  ;;  %v1317_v9 = vadd.f32 %v4861_v0, %v1205_v31  ;;  %v1373_v0 = vmax.f32 %v1309_v33, 0.0 }
 0x3f8   :  { %2019 = vmatpush.msrb.mxu2 %v1935_v15  ;;  %v1397_v1 = vmax.f32 %v7129_v3, 0.0  ;;  %v1189_v17 = vadd.f32 %v1125_v60, %v1005_v27  ;;  %v1285_v53 = vadd.f32 %v4897_v12, %v1173_v24 }
 0x3f9   :  { %v5350_v5 = vpop.f32.mrf.mxu2  ;;  %v1381_v43 = vmax.f32 %v1317_v9, 0.0 }
 0x3fa   :  { %2020 = vmatpush.msrb.mxu2 %v1927_v8  ;;  %v1301_v8 = vadd.f32 %v4904_v41, %v1189_v17  ;;  %v1349_v35 = vmax.f32 %v1285_v53, 0.0  ;;  %v1709_v18 = vadd.f32 %v5350_v5, %v5174_v4 }
 0x3fc   :  { %2021 = vmatpush.msrb.mxu2 %v1919_v63  ;;  %v1365_v52 = vmax.f32 %v1301_v8, 0.0  ;;  %v1357_v63 = vmax.f32 %v1293_v47, 0.0  ;;  %v5449_v29 = vpop.f32.mrf.mxu0  ;;  %v1819_v46 = vmul.f32 0.1, %v1709_v18 }
 0x3fe   :  { %2022 = vmatpush.msrb.mxu2 %v1911_v20  ;;  %v5411_v20 = vld [vmem:[#allocation2 + $0x98] sm:$0xff]  ;;  %v1883_v33 = vmax.f32 %v1709_v18, %v1819_v46 }
 0x3ff   :  { %4136 = vmatmul.msk.f32.gmra.mxu3 %vm317_vm0, %v792_v58  ;;  %v5415_v58 = vld [vmem:[#allocation2 + $0xa0] sm:$0xff] }
 0x400   :  { %2023 = vmatpush.msrb.mxu2 %v1903_v25  ;;  %v5405_v25 = vld [vmem:[#allocation2 + $0x90] sm:$0xff] }
 0x401   :  { %v5361_v62 = vpop.f32.mrf.mxu2 }
 0x402   :  { %2024 = vmatpush.msrb.mxu2 %v1895_v34  ;;  %v1712_v6 = vadd.f32 %v5361_v62, %v5170_v54 }
 0x404   :  { %2025 = vmatpush.msrb.mxu2 %v1887_v28  ;;  %v1827_v9 = vmul.f32 0.1, %v1712_v6  ;;  %v5455_v5 = vpop.f32.mrf.mxu0 }
 0x406   :  { %2026 = vmatpush.msrb.mxu2 %v1879_v42 }
 0x407   :  { %4205 = vmatmul.msk.f32.vlgmr.msrb.gmra.mxu2 %vm317_vm0, %v5180_v19  ;;  %4137 = vmatmul.msk.f32.vlgmr.msrb.gmra.mxu3 %vm317_vm0, %v5383_v26 }
 0x408   :  { %1781 = vmatpush.msrb.mxu3 %v1405_v39 }
 0x409   :  { %v1714_v15 = vpop.f32.mrf.mxu2 }
 0x40a   :  { %1782 = vmatpush.msrb.mxu3 %v1397_v1  ;;  %v1715_v27 = vadd.f32 %v1714_v15, %v5166_v11 }
 0x40c   :  { %1783 = vmatpush.msrb.mxu3 %v1389_v32  ;;  %v1835_v3 = vmul.f32 0.1, %v1715_v27  ;;  %v1891_v32 = vmax.f32 %v1712_v6, %v1827_v9  ;;  %v5463_v8 = vpop.f32.mrf.mxu0 }
 0x40e   :  { %1784 = vmatpush.msrb.mxu3 %v1381_v43  ;;  %v1899_v15 = vmax.f32 %v1715_v27, %v1835_v3 }
 0x40f   :  { %4206 = vmatmul.msk.f32.gmra.mxu2 %vm317_vm0, %v5184_v10  ;;  %4138 = vmatmul.msk.f32.gmra.mxu3 %vm317_vm0, %v5398_v37 }
 0x410   :  { %1785 = vmatpush.msrb.mxu3 %v1373_v0 }
 0x411   :  { %v1717_v41 = vpop.f32.mrf.mxu2 }
 0x412   :  { %1786 = vmatpush.msrb.mxu3 %v1365_v52  ;;  %v1718_v38 = vadd.f32 %v1717_v41, %v5158_v16 }
 0x414   :  { %1787 = vmatpush.msrb.mxu3 %v1357_v63  ;;  %v1843_v50 = vmul.f32 0.1, %v1718_v38  ;;  %v5469_v0 = vpop.f32.mrf.mxu0 }
 0x416   :  { %1788 = vmatpush.msrb.mxu3 %v1349_v35  ;;  %v1907_v17 = vmax.f32 %v1718_v38, %v1843_v50 }
 0x417   :  { %4207 = vmatmul.msk.f32.gmra.mxu2 %vm317_vm0, %v5188_v49  ;;  %4139 = vmatmul.msk.f32.gmra.mxu3 %vm317_vm0, %v5405_v25 }
 0x419   :  { %v1720_v30 = vpop.f32.mrf.mxu2 }
 0x41a   :  { %v1721_v42 = vadd.f32 %v1720_v30, %v5156_v59 }
 0x41c   :  { %v1851_v60 = vmul.f32 0.1, %v1721_v42  ;;  %v5477_v52 = vpop.f32.mrf.mxu0 }
 0x41e   :  { %v1915_v1 = vmax.f32 %v1721_v42, %v1851_v60 }
 0x41f   :  { %4208 = vmatmul.msk.f32.gmra.mxu2 %vm317_vm0, %v5194_v57  ;;  %4140 = vmatmul.msk.f32.gmra.mxu3 %vm317_vm0, %v5411_v20 }
 0x421   :  { %v1723_v12 = vpop.f32.mrf.mxu2 }
 0x422   :  { %v1724_v14 = vadd.f32 %v1723_v12, %v5152_v2 }
 0x424   :  { %v1859_v56 = vmul.f32 0.1, %v1724_v14  ;;  %v5483_v63 = vpop.f32.mrf.mxu0 }
 0x426   :  { %v1923_v48 = vmax.f32 %v1724_v14, %v1859_v56 }
 0x427   :  { %4141 = vmatmul.msk.f32.gmra.mxu3 %vm317_vm0, %v5415_v58 }
 0x429   :  { %v1726_v55 = vpop.f32.mrf.mxu2 }
 0x42a   :  { %v1727_v34 = vadd.f32 %v1726_v55, %v5146_v44 }
 0x42c   :  { %v1867_v28 = vmul.f32 0.1, %v1727_v34  ;;  %v5491_v12 = vpop.f32.mrf.mxu0 }
 0x42e   :  { %v1931_v22 = vmax.f32 %v1727_v34, %v1867_v28  ;;  %v5499_v34 = vpop.permute.xlu1 %1967  ;;  %v5508_v28 = vpop.permute.xlu0 %1957 }
 0x42f   :  { %4142 = vmatmul.msk.f32.gmra.mxu3 %vm317_vm0, %v5419_v61 }
 0x431   :  { %v1729_v40 = vpop.f32.mrf.mxu2 }
 0x432   :  { %v1730_v23 = vadd.f32 %v1729_v40, %v5144_v36 }
 0x434   :  { %v1875_v13 = vmul.f32 0.1, %v1730_v23 }
 0x436   :  { %v1939_v31 = vmax.f32 %v1730_v23, %v1875_v13  ;;  %v5495_v23 = vpop.f32.mrf.mxu0  ;;  %v5512_v27 = vpop.permute.xlu1 %1952 }
 0x437   :  { %4143 = vmatmul.msk.f32.gmra.mxu3 %vm317_vm0, %v5423_v45 }
 0x43e   :  { %v5505_v42 = vpop.f32.mrf.mxu0 }
 0x43f   :  { %4144 = vmatmul.msk.f32.gmra.mxu3 %vm317_vm0, %v5428_v51 }
 0x446   :  { %v5517_v9 = vpop.f32.mrf.mxu0 }
 0x447   :  { %4161 = vmatmul.msk.f32.vlgmr.msra.gmra.mxu3 %vm317_vm0, %v5383_v26 }
 0x448   :  { %2135 = vmatpush.msra.mxu3 %v1939_v31 }
 0x44a   :  { %v5441_v39 = vpop.f32.mrf.mxu3  ;;  %2136 = vmatpush.msra.mxu3 %v1931_v22 }
 0x44c   :  { %2137 = vmatpush.msra.mxu3 %v1923_v48 }
 0x44e   :  { %2138 = vmatpush.msra.mxu3 %v1915_v1 }
 0x44f   :  { %4162 = vmatmul.msk.f32.gmra.mxu3 %vm317_vm0, %v5398_v37 }
 0x450   :  { %2139 = vmatpush.msra.mxu3 %v1907_v17 }
 0x452   :  { %v5451_v62 = vpop.f32.mrf.mxu3  ;;  %2140 = vmatpush.msra.mxu3 %v1899_v15  ;;  %v5521_v15 = vpop.f32.mrf.mxu0 }
 0x454   :  { %2141 = vmatpush.msra.mxu3 %v1891_v32 }
 0x456   :  { %2142 = vmatpush.msra.mxu3 %v1883_v33 }
 0x457   :  { %4163 = vmatmul.msk.f32.gmra.mxu3 %vm317_vm0, %v5405_v25 }
 0x45a   :  { %v5457_v21 = vpop.f32.mrf.mxu3  ;;  %v5525_v32 = vpop.f32.mrf.mxu0 }
 0x45f   :  { %4164 = vmatmul.msk.f32.gmra.mxu3 %vm317_vm0, %v5411_v20 }
 0x462   :  { %v5461_v43 = vpop.f32.mrf.mxu3 }
 0x467   :  { %4165 = vmatmul.msk.f32.gmra.mxu3 %vm317_vm0, %v5415_v58 }
 0x46a   :  { %v5467_v24 = vpop.f32.mrf.mxu3 }
 0x46f   :  { %4166 = vmatmul.msk.f32.gmra.mxu3 %vm317_vm0, %v5419_v61 }
 0x472   :  { %v5473_v47 = vpop.f32.mrf.mxu3 }
 0x477   :  { %4167 = vmatmul.msk.f32.gmra.mxu3 %vm317_vm0, %v5423_v45 }
 0x47a   :  { %v5479_v53 = vpop.f32.mrf.mxu3 }
 0x47f   :  { %4168 = vmatmul.msk.f32.gmra.mxu3 %vm317_vm0, %v5428_v51 }
 0x482   :  { %v5485_v41 = vpop.f32.mrf.mxu3 }
 0x487   :  { %4193 = vmatmul.msk.f32.vlgmr.msrb.gmra.mxu3 %vm317_vm0, %v5383_v26  ;;  %v5501_v26 = vpop.permute.xlu2 %1962 }
 0x48a   :  { %v2028_v35 = vpop.f32.mrf.mxu2  ;;  %v5489_v30 = vpop.f32.mrf.mxu3 }
 0x48b   :  { %v2029_v60 = vadd.f32 %v2028_v35, %v5512_v27 }
 0x48d   :  { %v2215_v48 = vmul.f32 0.1, %v2029_v60 }
 0x48f   :  { %4194 = vmatmul.msk.f32.gmra.mxu3 %vm317_vm0, %v5398_v37  ;;  %v2247_v17 = vmax.f32 %v2029_v60, %v2215_v48  ;;  %v5536_v60 = vpop.f32.mrf.mxu0 }
 0x492   :  { %v2031_v55 = vpop.f32.mrf.mxu2  ;;  %v1506_v40 = vpop.f32.mrf.mxu3 }
 0x493   :  { %v2032_v56 = vadd.f32 %v2031_v55, %v5508_v28 }
 0x495   :  { %v2223_v50 = vmul.f32 0.1, %v2032_v56 }
 0x497   :  { %4195 = vmatmul.msk.f32.gmra.mxu3 %vm317_vm0, %v5405_v25  ;;  %v2255_v3 = vmax.f32 %v2032_v56, %v2223_v50 }
 0x49a   :  { %v2034_v14 = vpop.f32.mrf.mxu2  ;;  %v1509_v13 = vpop.f32.mrf.mxu3 }
 0x49b   :  { %v2035_v37 = vadd.f32 %v2034_v14, %v5501_v26 }
 0x49d   :  { %v2231_v22 = vmul.f32 0.1, %v2035_v37 }
 0x49f   :  { %4196 = vmatmul.msk.f32.gmra.mxu3 %vm317_vm0, %v5411_v20  ;;  %v2263_v18 = vmax.f32 %v2035_v37, %v2231_v22 }
 0x4a2   :  { %v2037_v38 = vpop.f32.mrf.mxu2  ;;  %v1512_v31 = vpop.f32.mrf.mxu3 }
 0x4a3   :  { %v2038_v25 = vadd.f32 %v2037_v38, %v5499_v34  ;;  %v1513_v56 = vadd.f32 %v1512_v31, %v5158_v16  ;;  %v1504_v31 = vadd.f32 %v5489_v30, %v5174_v4  ;;  %v1601_v30 = vadd.f32 %v5477_v52, %v5152_v2 }
 0x4a4   :  { %v1592_v52 = vadd.f32 %v5455_v5, %v5166_v11 }
 0x4a5   :  { %v2239_v6 = vmul.f32 0.1, %v2038_v25  ;;  %v1838_v48 = vmul.f32 0.1, %v1513_v56 }
 0x4a7   :  { %v2271_v20 = vmax.f32 %v2038_v25, %v2239_v6  ;;  %4197 = vmatmul.msk.f32.gmra.mxu3 %vm317_vm0, %v5415_v58 }
 0x4a9   :  { %2371 = vmatpush.msrb.mxu3 %v2271_v20  ;;  %v1507_v20 = vadd.f32 %v1506_v40, %v5170_v54  ;;  %v1604_v40 = vadd.f32 %v5483_v63, %v5146_v44  ;;  %v1595_v63 = vadd.f32 %v5463_v8, %v5158_v16  ;;  %v1589_v8 = vadd.f32 %v5449_v29, %v5170_v54 }
 0x4aa   :  { %v1515_v1 = vpop.f32.mrf.mxu3 }
 0x4ab   :  { %2372 = vmatpush.msrb.mxu3 %v2263_v18 }
 0x4ad   :  { %2373 = vmatpush.msrb.mxu3 %v2255_v3 }
 0x4af   :  { %2374 = vmatpush.msrb.mxu3 %v2247_v17  ;;  %v1607_v17 = vadd.f32 %v5491_v12, %v5144_v36 }
 0x4b0   :  { %4198 = vmatmul.msk.f32.gmra.mxu3 %vm317_vm0, %v5419_v61  ;;  %v1516_v61 = vadd.f32 %v1515_v1, %v5156_v59 }
 0x4b2   :  { %v1518_v46 = vpop.f32.mrf.mxu3  ;;  %v1846_v22 = vmul.f32 0.1, %v1516_v61 }
 0x4b3   :  { %v1519_v55 = vadd.f32 %v1518_v46, %v5152_v2  ;;  %v1902_v46 = vmax.f32 %v1513_v56, %v1838_v48  ;;  %v1856_v56 = vmul.f32 0.1, %v1601_v30 }
 0x4b4   :  { %v1910_v1 = vmax.f32 %v1516_v61, %v1846_v22  ;;  %v1598_v61 = vadd.f32 %v5469_v0, %v5156_v59  ;;  %v1840_v22 = vmul.f32 0.1, %v1595_v63 }
 0x4b8   :  { %4199 = vmatmul.msk.f32.gmra.mxu3 %vm317_vm0, %v5423_v45  ;;  %v1854_v45 = vmul.f32 0.1, %v1519_v55 }
 0x4ba   :  { %v1521_v58 = vpop.f32.mrf.mxu3  ;;  %v1918_v18 = vmax.f32 %v1519_v55, %v1854_v45  ;;  %v1872_v55 = vmul.f32 0.1, %v1607_v17 }
 0x4bb   :  { %v1522_v33 = vadd.f32 %v1521_v58, %v5146_v44  ;;  %v1814_v58 = vmul.f32 0.1, %v1504_v31 }
 0x4bc   :  { %v1936_v45 = vmax.f32 %v1607_v17, %v1872_v55 }
 0x4bd   :  { %v1862_v37 = vmul.f32 0.1, %v1522_v33 }
 0x4bf   :  { %v1926_v6 = vmax.f32 %v1522_v33, %v1862_v37  ;;  %v1864_v37 = vmul.f32 0.1, %v1604_v40 }
 0x4c0   :  { %4200 = vmatmul.msk.f32.gmra.mxu3 %vm317_vm0, %v5428_v51  ;;  %v1510_v51 = vadd.f32 %v1509_v13, %v5166_v11  ;;  %v1822_v13 = vmul.f32 0.1, %v1507_v20 }
 0x4c1   :  { %v1928_v0 = vmax.f32 %v1604_v40, %v1864_v37  ;;  %v1762_v40 = vadd.f32 %v5525_v32, %v5156_v59 }
 0x4c2   :  { %v1524_v35 = vpop.f32.mrf.mxu3  ;;  %v1830_v3 = vmul.f32 0.1, %v1510_v51  ;;  %v1886_v12 = vmax.f32 %v1507_v20, %v1822_v13  ;;  %v1832_v20 = vmul.f32 0.1, %v1592_v52 }
 0x4c3   :  { %v1525_v14 = vadd.f32 %v1524_v35, %v5144_v36 }
 0x4c4   :  { %v1894_v33 = vmax.f32 %v1510_v51, %v1830_v3 }
 0x4c5   :  { %v1870_v38 = vmul.f32 0.1, %v1525_v14 }
 0x4c7   :  { %v1934_v25 = vmax.f32 %v1525_v14, %v1870_v38  ;;  %v1767_v14 = vpop.f32.mrf.mxu0  ;;  %v1878_v38 = vmax.f32 %v1504_v31, %v1814_v58  ;;  %v1904_v31 = vmax.f32 %v1595_v63, %v1840_v22  ;;  %v1750_v63 = vadd.f32 %v5495_v23, %v5174_v4 }
 0x4c8   :  { %4221 = vmatmul.msk.f32.vlgmr.msra.gmra.mxu3 %vm317_vm0, %v5180_v19  ;;  %v1768_v29 = vadd.f32 %v1767_v14, %v5146_v44  ;;  %v1852_v14 = vmul.f32 0.1, %v1762_v40 }
 0x4c9   :  { %1990 = vmatpush.msra.mxu1 %v1934_v25  ;;  %v1848_v25 = vmul.f32 0.1, %v1598_v61 }
 0x4ca   :  { %v5539_v50 = vpop.f32.mrf.mxu3  ;;  %v1868_v58 = vmul.f32 0.1, %v1768_v29 }
 0x4cb   :  { %1991 = vmatpush.msra.mxu1 %v1926_v6  ;;  %v1920_v6 = vmax.f32 %v1601_v30, %v1856_v56  ;;  %v1912_v48 = vmax.f32 %v1598_v61, %v1848_v25 }
 0x4cc   :  { %v1932_v32 = vmax.f32 %v1768_v29, %v1868_v58 }
 0x4cd   :  { %1992 = vmatpush.msra.mxu1 %v1918_v18  ;;  %v1824_v18 = vmul.f32 0.1, %v1589_v8 }
 0x4cf   :  { %1993 = vmatpush.msra.mxu1 %v1910_v1  ;;  %v1896_v1 = vmax.f32 %v1592_v52, %v1832_v20  ;;  %v5608_v20 = vld [vmem:[#allocation2 + $0x240] sm:$0xff] }
 0x4d0   :  { %4222 = vmatmul.msk.f32.gmra.mxu3 %vm317_vm0, %v5184_v10 }
 0x4d1   :  { %1994 = vmatpush.msra.mxu1 %v1902_v46  ;;  %v1888_v46 = vmax.f32 %v1589_v8, %v1824_v18  ;;  %v5600_v8 = vld [vmem:[#allocation2 + $0x258] sm:$0xff]  ;;  %v5617_v18 = vld [vmem:[#allocation2 + $0x248] sm:$0xff] }
 0x4d2   :  { %v5550_v35 = vpop.f32.mrf.mxu3 }
 0x4d3   :  { %1995 = vmatpush.msra.mxu1 %v1894_v33 }
 0x4d5   :  { %1996 = vmatpush.msra.mxu1 %v1886_v12  ;;  %v5588_v12 = vld [vmem:[#allocation2 + $0x250] sm:$0xff] }
 0x4d7   :  { %1997 = vmatpush.msra.mxu1 %v1878_v38 }
 0x4d8   :  { %4223 = vmatmul.msk.f32.gmra.mxu3 %vm317_vm0, %v5188_v49  ;;  %4201 = vmatmul.msk.f32.vlgmr.msra.gmra.mxu1 %vm317_vm0, %v5180_v19  ;;  %v1586_v49 = vadd.f32 %v5435_v7, %v5174_v4  ;;  %v1770_v19 = vpop.f32.mrf.mxu0  ;;  %v1765_v7 = vadd.f32 %v5536_v60, %v5152_v2  ;;  %v1756_v60 = vadd.f32 %v5517_v9, %v5166_v11 }
 0x4d9   :  { %2048 = vmatpush.msrb.mxu1 %v1936_v45  ;;  %v1771_v5 = vadd.f32 %v1770_v19, %v5144_v36  ;;  %v1916_v9 = vmax.f32 %v1762_v40, %v1852_v14  ;;  %v5596_v45 = vld [vmem:[#allocation2 + $0x268] sm:$0xff]  ;;  %v5612_v19 = vld [vmem:[#allocation2 + $0x278] sm:$0xff]  ;;  %v1630_v14 = vadd.f32 %v5550_v35, %v5170_v54 }
 0x4da   :  { %v5564_v51 = vpop.f32.mrf.mxu3  ;;  %v1816_v3 = vmul.f32 0.1, %v1586_v49  ;;  %v1860_v30 = vmul.f32 0.1, %v1765_v7  ;;  %v1836_v56 = vmul.f32 0.1, %v1756_v60 }
 0x4db   :  { %2049 = vmatpush.msrb.mxu1 %v1928_v0  ;;  %v1876_v17 = vmul.f32 0.1, %v1771_v5  ;;  %v1820_v0 = vmul.f32 0.1, %v1750_v63 }
 0x4dc   :  { %v1880_v33 = vmax.f32 %v1586_v49, %v1816_v3  ;;  %v1924_v37 = vmax.f32 %v1765_v7, %v1860_v30  ;;  %v5604_v49 = vld [vmem:[#allocation2 + $0x270] sm:$0xff] }
 0x4dd   :  { %2050 = vmatpush.msrb.mxu1 %v1920_v6  ;;  %v1940_v55 = vmax.f32 %v1771_v5, %v1876_v17  ;;  %v1884_v6 = vmax.f32 %v1750_v63, %v1820_v0 }
 0x4df   :  { %2051 = vmatpush.msrb.mxu1 %v1912_v48 }
 0x4e0   :  { %4224 = vmatmul.msk.f32.gmra.mxu3 %vm317_vm0, %v5194_v57  ;;  %4202 = vmatmul.msk.f32.gmra.mxu1 %vm317_vm0, %v5184_v10  ;;  %v5580_v57 = vld [vmem:[#allocation2 + $0x260] sm:$0xff]  ;;  %v1759_v10 = vadd.f32 %v5521_v15, %v5158_v16  ;;  %v1753_v15 = vadd.f32 %v5505_v42, %v5170_v54  ;;  %v1900_v42 = vmax.f32 %v1756_v60, %v1836_v56 }
 0x4e1   :  { %2052 = vmatpush.msrb.mxu1 %v1904_v31 }
 0x4e2   :  { %v1635_v13 = vpop.f32.mrf.mxu3  ;;  %v1844_v61 = vmul.f32 0.1, %v1759_v10  ;;  %v1828_v52 = vmul.f32 0.1, %v1753_v15 }
 0x4e3   :  { %2053 = vmatpush.msrb.mxu1 %v1896_v1  ;;  %v5623_v1 = vld [vmem:[#allocation2 + $0x280] sm:$0xff]  ;;  %v1636_v40 = vadd.f32 %v1635_v13, %v5158_v16 }
 0x4e4   :  { %v1908_v25 = vmax.f32 %v1759_v10, %v1844_v61  ;;  %v1892_v23 = vmax.f32 %v1753_v15, %v1828_v52  ;;  %v1633_v10 = vadd.f32 %v5564_v51, %v5166_v11  ;;  %v5635_v15 = vld [vmem:[#allocation2 + $0x288] sm:$0xff]  ;;  %v1627_v61 = vadd.f32 %v5539_v50, %v5174_v4 }
 0x4e5   :  { %2054 = vmatpush.msrb.mxu1 %v1888_v46 }
 0x4e6   :  { %v1817_v56 = vmul.f32 0.1, %v1627_v61 }
 0x4e7   :  { %2055 = vmatpush.msrb.mxu1 %v1880_v33 }
 0x4e8   :  { %4242 = vmatmul.msk.f32.vlgmr.msrb.gmra.mxu3 %vm2287_vm1, %v5580_v57  ;;  %4203 = vmatmul.msk.f32.gmra.mxu1 %vm317_vm0, %v5588_v12  ;;  %v1881_v50 = vmax.f32 %v1627_v61, %v1817_v56 }
 0x4e9   :  { %2164 = vmatpush.msra.mxu1 %v1940_v55 }
 0x4ea   :  { %v1638_v38 = vpop.f32.mrf.mxu3 }
 0x4eb   :  { %2165 = vmatpush.msra.mxu1 %v1932_v32  ;;  %v1639_v7 = vadd.f32 %v1638_v38, %v5156_v59  ;;  %v1841_v32 = vmul.f32 0.1, %v1636_v40  ;;  %v1825_v38 = vmul.f32 0.1, %v1630_v14 }
 0x4ed   :  { %2166 = vmatpush.msra.mxu1 %v1924_v37  ;;  %v1849_v30 = vmul.f32 0.1, %v1639_v7  ;;  %v1833_v37 = vmul.f32 0.1, %v1633_v10  ;;  %v1905_v63 = vmax.f32 %v1636_v40, %v1841_v32  ;;  %v1889_v52 = vmax.f32 %v1630_v14, %v1825_v38  ;;  %v2115_v38 = vpop.f32.mrf.mxu0 }
 0x4ef   :  { %2167 = vmatpush.msra.mxu1 %v1916_v9  ;;  %v1913_v51 = vmax.f32 %v1639_v7, %v1849_v30  ;;  %v1897_v9 = vmax.f32 %v1633_v10, %v1833_v37 }
 0x4f0   :  { %4243 = vmatmul.msk.f32.gmra.mxu3 %vm2287_vm1, %v5596_v45  ;;  %4204 = vmatmul.msk.f32.gmra.mxu1 %vm317_vm0, %v5600_v8 }
 0x4f1   :  { %2168 = vmatpush.msra.mxu1 %v1908_v25  ;;  %v5643_v25 = vld [vmem:[#allocation2 + $0x290] sm:$0xff] }
 0x4f2   :  { %v1641_v22 = vpop.f32.mrf.mxu3 }
 0x4f3   :  { %2169 = vmatpush.msra.mxu1 %v1900_v42  ;;  %v1642_v29 = vadd.f32 %v1641_v22, %v5152_v2  ;;  %v5651_v42 = vld [vmem:[#allocation2 + $0x298] sm:$0xff] }
 0x4f5   :  { %2170 = vmatpush.msra.mxu1 %v1892_v23  ;;  %v1857_v58 = vmul.f32 0.1, %v1642_v29 }
 0x4f7   :  { %2171 = vmatpush.msra.mxu1 %v1884_v6  ;;  %v1921_v13 = vmax.f32 %v1642_v29, %v1857_v58 }
 0x4f8   :  { %4244 = vmatmul.msk.f32.gmra.mxu3 %vm2287_vm1, %v5604_v49  ;;  %4209 = vmatmul.msk.f32.vlgmr.msrb.gmra.mxu1 %vm317_vm0, %v5608_v20 }
 0x4fa   :  { %v1644_v48 = vpop.f32.mrf.mxu3 }
 0x4fb   :  { %v1645_v5 = vadd.f32 %v1644_v48, %v5146_v44 }
 0x4fd   :  { %v1865_v17 = vmul.f32 0.1, %v1645_v5 }
 0x4ff   :  { %v1929_v55 = vmax.f32 %v1645_v5, %v1865_v17 }
 0x500   :  { %4245 = vmatmul.msk.f32.gmra.mxu3 %vm2287_vm1, %v5612_v19  ;;  %4210 = vmatmul.msk.f32.gmra.mxu1 %vm317_vm0, %v5617_v18 }
 0x502   :  { %v1647_v31 = vpop.f32.mrf.mxu3 }
 0x503   :  { %v1648_v3 = vadd.f32 %v1647_v31, %v5144_v36 }
 0x505   :  { %v1873_v46 = vmul.f32 0.1, %v1648_v3 }
 0x507   :  { %v1937_v33 = vmax.f32 %v1648_v3, %v1873_v46 }
 0x508   :  { %4246 = vmatmul.msk.f32.gmra.mxu3 %vm2287_vm1, %v5623_v1  ;;  %4211 = vmatmul.msk.f32.gmra.mxu1 %vm317_vm0, %v5588_v12 }
 0x509   :  { %2077 = vmatpush.msra.mxu2 %v1937_v33 }
 0x50a   :  { %v1790_v60 = vpop.f32.mrf.mxu3 }
 0x50b   :  { %2078 = vmatpush.msra.mxu2 %v1929_v55 }
 0x50d   :  { %2079 = vmatpush.msra.mxu2 %v1921_v13 }
 0x50f   :  { %2080 = vmatpush.msra.mxu2 %v1913_v51 }
 0x510   :  { %4247 = vmatmul.msk.f32.gmra.mxu3 %vm2287_vm1, %v5635_v15  ;;  %4212 = vmatmul.msk.f32.gmra.mxu1 %vm317_vm0, %v5600_v8 }
 0x511   :  { %2081 = vmatpush.msra.mxu2 %v1905_v63 }
 0x512   :  { %v1793_v35 = vpop.f32.mrf.mxu3 }
 0x513   :  { %2082 = vmatpush.msra.mxu2 %v1897_v9 }
 0x515   :  { %2083 = vmatpush.msra.mxu2 %v1889_v52 }
 0x517   :  { %2084 = vmatpush.msra.mxu2 %v1881_v50 }
 0x518   :  { %4248 = vmatmul.msk.f32.gmra.mxu3 %vm2287_vm1, %v5643_v25  ;;  %4213 = vmatmul.msk.f32.vlgmr.msra.gmra.mxu2 %vm317_vm0, %v5608_v20 }
 0x519   :  { %4225 = vmatmul.msk.f32.vlgmr.msra.gmra.mxu1 %vm317_vm0, %v5608_v20 }
 0x51a   :  { %v1796_v0 = vpop.f32.mrf.mxu3 }
 0x51b   :  { %v1797_v10 = vadd.f32 %v1796_v0, %v5166_v11 }
 0x520   :  { %4249 = vmatmul.msk.f32.gmra.mxu3 %vm2287_vm1, %v5651_v42  ;;  %4214 = vmatmul.msk.f32.gmra.mxu2 %vm317_vm0, %v5617_v18 }
 0x521   :  { %4226 = vmatmul.msk.f32.gmra.mxu1 %vm317_vm0, %v5617_v18 }
 0x522   :  { %v1799_v23 = vpop.f32.mrf.mxu3 }
 0x523   :  { %v1800_v40 = vadd.f32 %v1799_v23, %v5158_v16  ;;  %v1837_v16 = vmul.f32 0.1, %v1797_v10 }
 0x525   :  { %v1845_v32 = vmul.f32 0.1, %v1800_v40  ;;  %v1901_v51 = vmax.f32 %v1797_v10, %v1837_v16 }
 0x527   :  { %v1909_v61 = vmax.f32 %v1800_v40, %v1845_v32 }
 0x528   :  { %4215 = vmatmul.msk.f32.gmra.mxu2 %vm317_vm0, %v5588_v12 }
 0x529   :  { %4227 = vmatmul.msk.f32.gmra.mxu1 %vm317_vm0, %v5588_v12 }
 0x52a   :  { %v1802_v22 = vpop.f32.mrf.mxu3 }
 0x52b   :  { %v1803_v7 = vadd.f32 %v1802_v22, %v5156_v59  ;;  %v1791_v59 = vadd.f32 %v1790_v60, %v5174_v4  ;;  %v2118_v60 = vpop.f32.mrf.mxu0 }
 0x52d   :  { %v1853_v30 = vmul.f32 0.1, %v1803_v7  ;;  %v1821_v37 = vmul.f32 0.1, %v1791_v59 }
 0x52f   :  { %v1917_v13 = vmax.f32 %v1803_v7, %v1853_v30  ;;  %v1885_v56 = vmax.f32 %v1791_v59, %v1821_v37 }
 0x530   :  { %4216 = vmatmul.msk.f32.gmra.mxu2 %vm317_vm0, %v5600_v8 }
 0x531   :  { %4228 = vmatmul.msk.f32.gmra.mxu1 %vm317_vm0, %v5600_v8 }
 0x533   :  { %v1805_v6 = vpop.f32.mrf.mxu3 }
 0x534   :  { %v1806_v29 = vadd.f32 %v1805_v6, %v5152_v2  ;;  %v1794_v2 = vadd.f32 %v1793_v35, %v5170_v54 }
 0x536   :  { %v1861_v58 = vmul.f32 0.1, %v1806_v29  ;;  %v1829_v11 = vmul.f32 0.1, %v1794_v2 }
 0x538   :  { %v1893_v54 = vmax.f32 %v1794_v2, %v1829_v11 }
 0x53b   :  { %v1808_v48 = vpop.f32.mrf.mxu3 }
 0x53c   :  { %v1809_v5 = vadd.f32 %v1808_v48, %v5146_v44  ;;  %v5673_v44 = vld [vmem:[#allocation2 + $0x2a0] sm:$0x1] }
 0x53d   :  { %4250 = vmatmul.msk.f32.gmra.mxu3 %vm2287_vm1, %v5673_v44 }
 0x53e   :  { %v1869_v17 = vmul.f32 0.1, %v1809_v5 }
 0x540   :  { %v1933_v55 = vmax.f32 %v1809_v5, %v1869_v17  ;;  %v2121_v5 = vpop.f32.mrf.mxu0 }
 0x541   :  { %v2122_v16 = vadd.f32 %v2121_v5, %v5501_v26 }
 0x543   :  { %v1811_v31 = vpop.f32.mrf.mxu3 }
 0x544   :  { %v1812_v3 = vadd.f32 %v1811_v31, %v5144_v36  ;;  %v1925_v36 = vmax.f32 %v1806_v29, %v1861_v58 }
 0x546   :  { %v1877_v46 = vmul.f32 0.1, %v1812_v3 }
 0x548   :  { %v1941_v33 = vmax.f32 %v1812_v3, %v1877_v46  ;;  %v2124_v30 = vpop.f32.mrf.mxu0 }
 0x549   :  { %v2125_v32 = vadd.f32 %v2124_v30, %v5499_v34 }
 0x54a   :  { %2193 = vmatpush.msrb.mxu2 %v1941_v33 }
 0x54b   :  { %v2144_v14 = vpop.f32.mrf.mxu3 }
 0x54c   :  { %2194 = vmatpush.msrb.mxu2 %v1933_v55  ;;  %v2145_v22 = vadd.f32 %v2144_v14, %v5512_v27 }
 0x54e   :  { %2195 = vmatpush.msrb.mxu2 %v1925_v36  ;;  %v2219_v3 = vmul.f32 0.1, %v2145_v22 }
 0x550   :  { %2196 = vmatpush.msrb.mxu2 %v1917_v13  ;;  %v2251_v46 = vmax.f32 %v2145_v22, %v2219_v3 }
 0x552   :  { %2197 = vmatpush.msrb.mxu2 %v1909_v61 }
 0x553   :  { %v2147_v63 = vpop.f32.mrf.mxu3 }
 0x554   :  { %2198 = vmatpush.msrb.mxu2 %v1901_v51  ;;  %v2148_v0 = vadd.f32 %v2147_v63, %v5508_v28  ;;  %v2119_v51 = vadd.f32 %v2118_v60, %v5508_v28  ;;  %v2234_v63 = vmul.f32 0.1, %v2122_v16 }
 0x555   :  { %v1999_v9 = vpop.f32.mrf.mxu1 }
 0x556   :  { %2199 = vmatpush.msrb.mxu2 %v1893_v54 }
 0x558   :  { %2200 = vmatpush.msrb.mxu2 %v1885_v56  ;;  %v2116_v56 = vadd.f32 %v2115_v38, %v5512_v27 }
 0x559   :  { %4229 = vmatmul.msk.f32.vlgmr.msrb.gmra.mxu2 %vm317_vm0, %v5608_v20  ;;  %v2227_v20 = vmul.f32 0.1, %v2148_v0 }
 0x55b   :  { %v2150_v4 = vpop.f32.mrf.mxu3  ;;  %v2259_v17 = vmax.f32 %v2148_v0, %v2227_v20 }
 0x55c   :  { %v2151_v52 = vadd.f32 %v2150_v4, %v5501_v26 }
 0x55d   :  { %v2002_v35 = vpop.f32.mrf.mxu1 }
 0x55e   :  { %v2235_v6 = vmul.f32 0.1, %v2151_v52  ;;  %v2003_v33 = vadd.f32 %v2002_v35, %v5508_v28  ;;  %v2226_v35 = vmul.f32 0.1, %v2119_v51 }
 0x560   :  { %v2222_v36 = vmul.f32 0.1, %v2003_v33  ;;  %v2258_v0 = vmax.f32 %v2119_v51, %v2226_v35 }
 0x561   :  { %4230 = vmatmul.msk.f32.gmra.mxu2 %vm317_vm0, %v5617_v18  ;;  %v2267_v18 = vmax.f32 %v2151_v52, %v2235_v6  ;;  %v2266_v52 = vmax.f32 %v2122_v16, %v2234_v63 }
 0x562   :  { %v2254_v37 = vmax.f32 %v2003_v33, %v2222_v36  ;;  %v834_v33 = vpop.permute.xlu0 %833 }
 0x563   :  { %v2153_v50 = vpop.f32.mrf.mxu3 }
 0x564   :  { %v2154_v23 = vadd.f32 %v2153_v50, %v5499_v34  ;;  %v2218_v50 = vmul.f32 0.1, %v2116_v56 }
 0x565   :  { %v2005_v31 = vpop.f32.mrf.mxu1 }
 0x566   :  { %v2243_v48 = vmul.f32 0.1, %v2154_v23  ;;  %v2006_v40 = vadd.f32 %v2005_v31, %v5501_v26 }
 0x568   :  { %v2275_v29 = vmax.f32 %v2154_v23, %v2243_v48  ;;  %v2230_v55 = vmul.f32 0.1, %v2006_v40  ;;  %v2250_v23 = vmax.f32 %v2116_v56, %v2218_v50 }
 0x569   :  { %4231 = vmatmul.msk.f32.gmra.mxu2 %vm317_vm0, %v5588_v12  ;;  %v2000_v12 = vadd.f32 %v1999_v9, %v5512_v27 }
 0x56a   :  { %2547 = vmatpush.msra.mxu3 %v2275_v29  ;;  %v2262_v11 = vmax.f32 %v2006_v40, %v2230_v55 }
 0x56b   :  { %v5689_v7 = vpop.f32.mrf.mxu3  ;;  %v2214_v13 = vmul.f32 0.1, %v2000_v12 }
 0x56c   :  { %2548 = vmatpush.msra.mxu3 %v2267_v18 }
 0x56d   :  { %v2008_v58 = vpop.f32.mrf.mxu1  ;;  %v2246_v54 = vmax.f32 %v2000_v12, %v2214_v13 }
 0x56e   :  { %2549 = vmatpush.msra.mxu3 %v2259_v17  ;;  %v2009_v10 = vadd.f32 %v2008_v58, %v5499_v34  ;;  %v839_v58 = vpop.permute.xlu2 %838 }
 0x570   :  { %2550 = vmatpush.msra.mxu3 %v2251_v46  ;;  %v2238_v14 = vmul.f32 0.1, %v2009_v10 }
 0x571   :  { %4232 = vmatmul.msk.f32.gmra.mxu2 %vm317_vm0, %v5600_v8  ;;  %4278 = vmatmul.msk.f32.vlgmr.msra.gmra.mxu3 %vm2287_vm1, %v5580_v57  ;;  %v2242_v8 = vmul.f32 0.1, %v2125_v32 }
 0x572   :  { %v2270_v59 = vmax.f32 %v2009_v10, %v2238_v14 }
 0x573   :  { %v5699_v2 = vpop.f32.mrf.mxu3  ;;  %v2274_v4 = vmax.f32 %v2125_v32, %v2242_v8 }
 0x574   :  { %2327 = vmatpush.msra.mxu0 %v2270_v59  ;;  %v829_v59 = vpop.permute.xlu1 %828 }
 0x575   :  { %v2057_v61 = vpop.f32.mrf.mxu1  ;;  %v5743_v8 = vadd.f32 %v5473_v47, %v829_v59 }
 0x576   :  { %2328 = vmatpush.msra.mxu0 %v2262_v11  ;;  %v2058_v29 = vadd.f32 %v2057_v61, %v5512_v27  ;;  %v824_v16 = vpop.permute.xlu2 %823  ;;  %v819_v11 = vpop.permute.xlu0 %818  ;;  %v5738_v61 = vadd.f32 %v5479_v53, %v834_v33 }
 0x577   :  { %v5759_v47 = vadd.f32 %v5461_v43, %v819_v11 }
 0x578   :  { %2329 = vmatpush.msra.mxu0 %v2254_v37  ;;  %v2216_v10 = vmul.f32 0.1, %v2058_v29  ;;  %v5746_v37 = vadd.f32 %v5485_v41, %v839_v58 }
 0x579   :  { %4279 = vmatmul.msk.f32.gmra.mxu3 %vm2287_vm1, %v5596_v45 }
 0x57a   :  { %2330 = vmatpush.msra.mxu0 %v2246_v54  ;;  %v2248_v14 = vmax.f32 %v2058_v29, %v2216_v10  ;;  %v5750_v54 = vadd.f32 %v5467_v24, %v824_v16 }
 0x57b   :  { %v5707_v9 = vpop.f32.mrf.mxu3  ;;  %4233 = vmatmul.msk.f32.vlgmr.msra.gmra.mxu0 %vm2287_vm1, %v5580_v57 }
 0x57c   :  { %2503 = vmatpush.msrb.mxu0 %v2274_v4  ;;  %v814_v24 = vpop.permute.xlu1 %813 }
 0x57d   :  { %v2060_v60 = vpop.f32.mrf.mxu1 }
 0x57e   :  { %2504 = vmatpush.msrb.mxu0 %v2266_v52  ;;  %v2061_v31 = vadd.f32 %v2060_v60, %v5508_v28  ;;  %v5763_v60 = vadd.f32 %v5457_v21, %v814_v24 }
 0x580   :  { %2505 = vmatpush.msrb.mxu0 %v2258_v0  ;;  %v2224_v46 = vmul.f32 0.1, %v2061_v31 }
 0x581   :  { %4280 = vmatmul.msk.f32.gmra.mxu3 %vm2287_vm1, %v5604_v49 }
 0x582   :  { %2506 = vmatpush.msrb.mxu0 %v2250_v23  ;;  %v2256_v55 = vmax.f32 %v2061_v31, %v2224_v46 }
 0x583   :  { %v2385_v38 = vpop.f32.mrf.mxu3  ;;  %4234 = vmatmul.msk.f32.gmra.mxu0 %vm2287_vm1, %v5596_v45 }
 0x584   :  { %v2734_v0 = vadd.f32 %v2385_v38, %v5759_v47 }
 0x585   :  { %v2063_v22 = vpop.f32.mrf.mxu1 }
 0x586   :  { %v2064_v48 = vadd.f32 %v2063_v22, %v5501_v26  ;;  %v2798_v29 = vmul.f32 0.1, %v2734_v0 }
 0x588   :  { %v2232_v3 = vmul.f32 0.1, %v2064_v48 }
 0x589   :  { %4281 = vmatmul.msk.f32.gmra.mxu3 %vm2287_vm1, %v5612_v19 }
 0x58a   :  { %v2264_v30 = vmax.f32 %v2064_v48, %v2232_v3  ;;  %v809_v48 = vpop.permute.xlu2 %808 }
 0x58b   :  { %v2388_v6 = vpop.f32.mrf.mxu3  ;;  %4235 = vmatmul.msk.f32.gmra.mxu0 %vm2287_vm1, %v5604_v49  ;;  %v5769_v43 = vadd.f32 %v5451_v62, %v809_v48 }
 0x58c   :  { %v2742_v41 = vadd.f32 %v2388_v6, %v5750_v54  ;;  %v2726_v6 = vadd.f32 %v5707_v9, %v5763_v60 }
 0x58d   :  { %v2066_v5 = vpop.f32.mrf.mxu1  ;;  %v2718_v38 = vadd.f32 %v5699_v2, %v5769_v43 }
 0x58e   :  { %v2067_v20 = vadd.f32 %v2066_v5, %v5499_v34  ;;  %v804_v5 = vpop.permute.xlu0 %803  ;;  %v2806_v31 = vmul.f32 0.1, %v2742_v41  ;;  %v2790_v9 = vmul.f32 0.1, %v2726_v6 }
 0x58f   :  { %v5774_v21 = vadd.f32 %v5441_v39, %v804_v5  ;;  %v2782_v2 = vmul.f32 0.1, %v2718_v38  ;;  %v5808_v5 = vld [vmem:[#allocation2 + $0x2b0] sm:$0xff] }
 0x590   :  { %v2240_v18 = vmul.f32 0.1, %v2067_v20  ;;  %v2854_v10 = vmax.f32 %v2726_v6, %v2790_v9 }
 0x591   :  { %4282 = vmatmul.msk.f32.gmra.mxu3 %vm2287_vm1, %v5623_v1  ;;  %v2710_v62 = vadd.f32 %v5689_v7, %v5774_v21 }
 0x592   :  { %v2272_v40 = vmax.f32 %v2067_v20, %v2240_v18 }
 0x593   :  { %v2391_v17 = vpop.f32.mrf.mxu3  ;;  %4236 = vmatmul.msk.f32.gmra.mxu0 %vm2287_vm1, %v5612_v19  ;;  %v2774_v7 = vmul.f32 0.1, %v2710_v62 }
 0x594   :  { %2415 = vmatpush.msrb.mxu1 %v2272_v40  ;;  %v2750_v56 = vadd.f32 %v2391_v17, %v5743_v8  ;;  %v2870_v17 = vmax.f32 %v2742_v41, %v2806_v31  ;;  %v2862_v40 = vmax.f32 %v2734_v0, %v2798_v29  ;;  %v5798_v41 = vld [vmem:[#allocation2 + $0x2a8] sm:$0xff]  ;;  %v5818_v31 = vld [vmem:[#allocation2 + $0x2b8] sm:$0xff] }
 0x596   :  { %v5727_v12 = vpop.f32.mrf.mxu1  ;;  %2416 = vmatpush.msrb.mxu1 %v2264_v30  ;;  %v2814_v23 = vmul.f32 0.1, %v2750_v56 }
 0x597   :  { %v2174_v30 = vadd.f32 %v5727_v12, %v5512_v27 }
 0x598   :  { %2417 = vmatpush.msrb.mxu1 %v2256_v55  ;;  %v2878_v3 = vmax.f32 %v2750_v56, %v2814_v23 }
 0x599   :  { %4283 = vmatmul.msk.f32.gmra.mxu3 %vm2287_vm1, %v5635_v15  ;;  %v2220_v12 = vmul.f32 0.1, %v2174_v30 }
 0x59a   :  { %2418 = vmatpush.msrb.mxu1 %v2248_v14 }
 0x59b   :  { %v2394_v32 = vpop.f32.mrf.mxu3  ;;  %v5731_v36 = vpop.f32.mrf.mxu2  ;;  %4237 = vmatmul.msk.f32.gmra.mxu0 %vm2287_vm1, %v5623_v1  ;;  %4251 = vmatmul.msk.f32.vlgmr.msrb.gmra.mxu1 %vm2287_vm1, %v5580_v57  ;;  %v2252_v23 = vmax.f32 %v2174_v30, %v2220_v12 }
 0x59c   :  { %v2758_v51 = vadd.f32 %v2394_v32, %v5738_v61  ;;  %v2846_v32 = vmax.f32 %v2718_v38, %v2782_v2  ;;  %v5838_v38 = vld [vmem:[#allocation2 + $0x2c8] sm:$0xff] }
 0x59e   :  { %v2176_v13 = vpop.f32.mrf.mxu1  ;;  %v2822_v35 = vmul.f32 0.1, %v2758_v51 }
 0x59f   :  { %v2177_v58 = vadd.f32 %v2176_v13, %v5508_v28 }
 0x5a0   :  { %v2886_v20 = vmax.f32 %v2758_v51, %v2822_v35 }
 0x5a1   :  { %4284 = vmatmul.msk.f32.gmra.mxu3 %vm2287_vm1, %v5643_v25  ;;  %v2228_v59 = vmul.f32 0.1, %v2177_v58 }
 0x5a3   :  { %v2397_v63 = vpop.f32.mrf.mxu3  ;;  %v2089_v4 = vpop.f32.mrf.mxu2  ;;  %4238 = vmatmul.msk.f32.gmra.mxu0 %vm2287_vm1, %v5635_v15  ;;  %4252 = vmatmul.msk.f32.gmra.mxu1 %vm2287_vm1, %v5596_v45  ;;  %v2260_v24 = vmax.f32 %v2177_v58, %v2228_v59 }
 0x5a4   :  { %v2766_v53 = vadd.f32 %v2397_v63, %v5746_v37  ;;  %v2838_v63 = vmax.f32 %v2710_v62, %v2774_v7  ;;  %v2090_v56 = vadd.f32 %v2089_v4, %v5508_v28  ;;  %v5858_v62 = vld [vmem:[#allocation2 + $0x2d8] sm:$0xff]  ;;  %v5885_v7 = vld [vmem:[#allocation2 + $0x2e8] sm:$0x1] }
 0x5a6   :  { %v2830_v52 = vmul.f32 0.1, %v2766_v53  ;;  %v2179_v50 = vpop.f32.mrf.mxu1 }
 0x5a7   :  { %v2180_v39 = vadd.f32 %v2179_v50, %v5501_v26 }
 0x5a8   :  { %v2894_v22 = vmax.f32 %v2766_v53, %v2830_v52  ;;  %v2087_v52 = vadd.f32 %v5731_v36, %v5512_v27 }
 0x5a9   :  { %4285 = vmatmul.msk.f32.gmra.mxu3 %vm2287_vm1, %v5651_v42  ;;  %v2236_v55 = vmul.f32 0.1, %v2180_v39 }
 0x5aa   :  { %3043 = vmatpush.msrb.mxu3 %v2894_v22  ;;  %v2225_v22 = vmul.f32 0.1, %v2090_v56  ;;  %v2217_v4 = vmul.f32 0.1, %v2087_v52 }
 0x5ab   :  { %v2092_v18 = vpop.f32.mrf.mxu2  ;;  %4239 = vmatmul.msk.f32.gmra.mxu0 %vm2287_vm1, %v5643_v25  ;;  %4253 = vmatmul.msk.f32.gmra.mxu1 %vm2287_vm1, %v5604_v49  ;;  %v2268_v53 = vmax.f32 %v2180_v39, %v2236_v55  ;;  %v5870_v39 = vld [vmem:[#allocation2 + $0x2e0] sm:$0xff] }
 0x5ac   :  { %3044 = vmatpush.msrb.mxu3 %v2886_v20  ;;  %v2093_v16 = vadd.f32 %v2092_v18, %v5501_v26  ;;  %v2257_v36 = vmax.f32 %v2090_v56, %v2225_v22  ;;  %v2249_v6 = vmax.f32 %v2087_v52, %v2217_v4  ;;  %v5828_v20 = vld [vmem:[#allocation2 + $0x2c0] sm:$0xff] }
 0x5ae   :  { %3045 = vmatpush.msrb.mxu3 %v2878_v3  ;;  %v2182_v46 = vpop.f32.mrf.mxu1  ;;  %v2233_v50 = vmul.f32 0.1, %v2093_v16  ;;  %v5848_v3 = vld [vmem:[#allocation2 + $0x2d0] sm:$0xff] }
 0x5af   :  { %v2183_v33 = vadd.f32 %v2182_v46, %v5499_v34 }
 0x5b0   :  { %3046 = vmatpush.msrb.mxu3 %v2870_v17  ;;  %v2265_v48 = vmax.f32 %v2093_v16, %v2233_v50 }
 0x5b1   :  { %4286 = vmatmul.msk.f32.gmra.mxu3 %vm2287_vm1, %v5673_v44  ;;  %v2244_v14 = vmul.f32 0.1, %v2183_v33 }
 0x5b2   :  { %3047 = vmatpush.msrb.mxu3 %v2862_v40 }
 0x5b3   :  { %v2276_v11 = vmax.f32 %v2183_v33, %v2244_v14  ;;  %v2095_v13 = vpop.f32.mrf.mxu2  ;;  %4240 = vmatmul.msk.f32.gmra.mxu0 %vm2287_vm1, %v5651_v42  ;;  %4254 = vmatmul.msk.f32.gmra.mxu1 %vm2287_vm1, %v5612_v19 }
 0x5b4   :  { %3048 = vmatpush.msrb.mxu3 %v2854_v10  ;;  %v2096_v51 = vadd.f32 %v2095_v13, %v5499_v34 }
 0x5b5   :  { %2591 = vmatpush.msra.mxu1 %v2276_v11 }
 0x5b6   :  { %3049 = vmatpush.msrb.mxu3 %v2846_v32  ;;  %v2241_v35 = vmul.f32 0.1, %v2096_v51 }
 0x5b7   :  { %2592 = vmatpush.msra.mxu1 %v2268_v53 }
 0x5b8   :  { %3050 = vmatpush.msrb.mxu3 %v2838_v63  ;;  %v2273_v0 = vmax.f32 %v2096_v51, %v2241_v35 }
 0x5b9   :  { %4314 = vmatmul.msk.f32.vlgmr.msrb.gmra.mxu3 %vm317_vm0, %v5798_v41  ;;  %2593 = vmatpush.msra.mxu1 %v2260_v24 }
 0x5ba   :  { %2459 = vmatpush.msra.mxu2 %v2273_v0 }
 0x5bb   :  { %2594 = vmatpush.msra.mxu1 %v2252_v23  ;;  %4241 = vmatmul.msk.f32.gmra.mxu0 %vm2287_vm1, %v5673_v44 }
 0x5bc   :  { %4255 = vmatmul.msk.f32.gmra.mxu1 %vm2287_vm1, %v5623_v1  ;;  %2460 = vmatpush.msra.mxu2 %v2265_v48 }
 0x5be   :  { %2461 = vmatpush.msra.mxu2 %v2257_v36 }
 0x5c0   :  { %2462 = vmatpush.msra.mxu2 %v2249_v6  ;;  %v5862_v9 = vpop.f32.mrf.mxu3 }
 0x5c1   :  { %4315 = vmatmul.msk.f32.gmra.mxu3 %vm317_vm0, %v5808_v5  ;;  %4260 = vmatmul.msk.f32.vlgmr.msra.gmra.mxu2 %vm2287_vm1, %v5580_v57 }
 0x5c3   :  { %4269 = vmatmul.msk.f32.vlgmr.msrb.gmra.mxu0 %vm2287_vm1, %v5580_v57 }
 0x5c4   :  { %4256 = vmatmul.msk.f32.gmra.mxu1 %vm2287_vm1, %v5635_v15 }
 0x5c9   :  { %4316 = vmatmul.msk.f32.gmra.mxu3 %vm317_vm0, %v5818_v31  ;;  %4261 = vmatmul.msk.f32.gmra.mxu2 %vm2287_vm1, %v5596_v45 }
 0x5cb   :  { %4270 = vmatmul.msk.f32.gmra.mxu0 %vm2287_vm1, %v5596_v45 }
 0x5cc   :  { %4257 = vmatmul.msk.f32.gmra.mxu1 %vm2287_vm1, %v5643_v25 }
 0x5d1   :  { %4317 = vmatmul.msk.f32.gmra.mxu3 %vm317_vm0, %v5828_v20  ;;  %4262 = vmatmul.msk.f32.gmra.mxu2 %vm2287_vm1, %v5604_v49 }
 0x5d3   :  { %4271 = vmatmul.msk.f32.gmra.mxu0 %vm2287_vm1, %v5604_v49 }
 0x5d4   :  { %4258 = vmatmul.msk.f32.gmra.mxu1 %vm2287_vm1, %v5651_v42 }
 0x5d9   :  { %4318 = vmatmul.msk.f32.gmra.mxu3 %vm317_vm0, %v5838_v38  ;;  %4263 = vmatmul.msk.f32.gmra.mxu2 %vm2287_vm1, %v5612_v19 }
 0x5db   :  { %4272 = vmatmul.msk.f32.gmra.mxu0 %vm2287_vm1, %v5612_v19 }
 0x5dc   :  { %v2202_v29 = vpop.f32.mrf.mxu2  ;;  %4259 = vmatmul.msk.f32.gmra.mxu1 %vm2287_vm1, %v5673_v44 }
 0x5dd   :  { %v2203_v30 = vadd.f32 %v2202_v29, %v5512_v27 }
 0x5df   :  { %v2221_v32 = vmul.f32 0.1, %v2203_v30 }
 0x5e1   :  { %4319 = vmatmul.msk.f32.gmra.mxu3 %vm317_vm0, %v5848_v3  ;;  %4264 = vmatmul.msk.f32.gmra.mxu2 %vm2287_vm1, %v5623_v1  ;;  %v2253_v16 = vmax.f32 %v2203_v30, %v2221_v32 }
 0x5e3   :  { %4273 = vmatmul.msk.f32.gmra.mxu0 %vm2287_vm1, %v5623_v1 }
 0x5e4   :  { %v2205_v18 = vpop.f32.mrf.mxu2  ;;  %4287 = vmatmul.msk.f32.vlgmr.msra.gmra.mxu1 %vm2287_vm1, %v5580_v57 }
 0x5e5   :  { %v2206_v33 = vadd.f32 %v2205_v18, %v5508_v28 }
 0x5e7   :  { %v2229_v14 = vmul.f32 0.1, %v2206_v33 }
 0x5e9   :  { %4320 = vmatmul.msk.f32.gmra.mxu3 %vm317_vm0, %v5858_v62  ;;  %4265 = vmatmul.msk.f32.gmra.mxu2 %vm2287_vm1, %v5635_v15  ;;  %v2261_v27 = vmax.f32 %v2206_v33, %v2229_v14 }
 0x5eb   :  { %4274 = vmatmul.msk.f32.gmra.mxu0 %vm2287_vm1, %v5635_v15 }
 0x5ec   :  { %v2208_v17 = vpop.f32.mrf.mxu2  ;;  %4288 = vmatmul.msk.f32.gmra.mxu1 %vm2287_vm1, %v5596_v45 }
 0x5ed   :  { %v2209_v46 = vadd.f32 %v2208_v17, %v5501_v26 }
 0x5ef   :  { %v2237_v55 = vmul.f32 0.1, %v2209_v46 }
 0x5f1   :  { %4321 = vmatmul.msk.f32.gmra.mxu3 %vm317_vm0, %v5870_v39  ;;  %4266 = vmatmul.msk.f32.gmra.mxu2 %vm2287_vm1, %v5643_v25  ;;  %v2269_v59 = vmax.f32 %v2209_v46, %v2237_v55 }
 0x5f3   :  { %4275 = vmatmul.msk.f32.gmra.mxu0 %vm2287_vm1, %v5643_v25 }
 0x5f4   :  { %v2211_v2 = vpop.f32.mrf.mxu2  ;;  %v5877_v40 = vpop.f32.mrf.mxu3  ;;  %4289 = vmatmul.msk.f32.gmra.mxu1 %vm2287_vm1, %v5604_v49 }
 0x5f5   :  { %v2212_v58 = vadd.f32 %v2211_v2, %v5499_v34 }
 0x5f7   :  { %v2245_v10 = vmul.f32 0.1, %v2212_v58 }
 0x5f8   :  { %v5890_v34 = vpop.f32.mrf.mxu0 }
 0x5f9   :  { %v2277_v26 = vmax.f32 %v2212_v58, %v2245_v10  ;;  %4322 = vmatmul.msk.f32.gmra.mxu3 %vm317_vm0, %v5885_v7  ;;  %4267 = vmatmul.msk.f32.gmra.mxu2 %vm2287_vm1, %v5651_v42 }
 0x5fb   :  { %2635 = vmatpush.msrb.mxu2 %v2277_v26  ;;  %4276 = vmatmul.msk.f32.gmra.mxu0 %vm2287_vm1, %v5651_v42 }
 0x5fc   :  { %v2555_v28 = vpop.f32.mrf.mxu3  ;;  %4290 = vmatmul.msk.f32.gmra.mxu1 %vm2287_vm1, %v5612_v19 }
 0x5fd   :  { %2636 = vmatpush.msrb.mxu2 %v2269_v59  ;;  %v2722_v59 = vadd.f32 %v2555_v28, %v5769_v43 }
 0x5ff   :  { %2637 = vmatpush.msrb.mxu2 %v2261_v27 }
 0x600   :  { %v5898_v11 = vpop.f32.mrf.mxu0 }
 0x601   :  { %2638 = vmatpush.msrb.mxu2 %v2253_v16 }
 0x602   :  { %4268 = vmatmul.msk.f32.gmra.mxu2 %vm2287_vm1, %v5673_v44 }
 0x603   :  { %4277 = vmatmul.msk.f32.gmra.mxu0 %vm2287_vm1, %v5673_v44 }
 0x604   :  { %v2558_v13 = vpop.f32.mrf.mxu3  ;;  %4291 = vmatmul.msk.f32.gmra.mxu1 %vm2287_vm1, %v5623_v1 }
 0x605   :  { %v2730_v30 = vadd.f32 %v2558_v13, %v5763_v60 }
 0x608   :  { %v2338_v51 = vpop.f32.mrf.mxu0 }
 0x609   :  { %v2725_v13 = vadd.f32 %v2338_v51, %v5763_v60 }
 0x60a   :  { %4296 = vmatmul.msk.f32.vlgmr.msrb.gmra.mxu2 %vm2287_vm1, %v5580_v57 }
 0x60c   :  { %v2561_v63 = vpop.f32.mrf.mxu3  ;;  %4292 = vmatmul.msk.f32.gmra.mxu1 %vm2287_vm1, %v5635_v15 }
 0x60d   :  { %v2738_v17 = vadd.f32 %v2561_v63, %v5759_v47 }
 0x60f   :  { %v2802_v27 = vmul.f32 0.1, %v2738_v17 }
 0x610   :  { %v2341_v12 = vpop.f32.mrf.mxu0 }
 0x611   :  { %v2733_v16 = vadd.f32 %v2341_v12, %v5759_v47  ;;  %v2717_v12 = vadd.f32 %v5898_v11, %v5769_v43 }
 0x612   :  { %4297 = vmatmul.msk.f32.gmra.mxu2 %vm2287_vm1, %v5596_v45 }
 0x614   :  { %v2564_v56 = vpop.f32.mrf.mxu3  ;;  %4293 = vmatmul.msk.f32.gmra.mxu1 %vm2287_vm1, %v5643_v25 }
 0x615   :  { %v2746_v48 = vadd.f32 %v2564_v56, %v5750_v54 }
 0x617   :  { %v2810_v58 = vmul.f32 0.1, %v2746_v48 }
 0x618   :  { %v2344_v53 = vpop.f32.mrf.mxu0  ;;  %v5914_v35 = vpop.f32.mrf.mxu1 }
 0x619   :  { %v2741_v55 = vadd.f32 %v2344_v53, %v5750_v54  ;;  %v2874_v63 = vmax.f32 %v2746_v48, %v2810_v58  ;;  %v2709_v48 = vadd.f32 %v5890_v34, %v5774_v21 }
 0x61a   :  { %4298 = vmatmul.msk.f32.gmra.mxu2 %vm2287_vm1, %v5604_v49 }
 0x61b   :  { %v2805_v53 = vmul.f32 0.1, %v2741_v55 }
 0x61c   :  { %v2567_v52 = vpop.f32.mrf.mxu3  ;;  %4294 = vmatmul.msk.f32.gmra.mxu1 %vm2287_vm1, %v5651_v42 }
 0x61d   :  { %v2754_v22 = vadd.f32 %v2567_v52, %v5743_v8 }
 0x61f   :  { %v2818_v6 = vmul.f32 0.1, %v2754_v22 }
 0x620   :  { %v2347_v57 = vpop.f32.mrf.mxu0  ;;  %v5920_v24 = vpop.f32.mrf.mxu1 }
 0x621   :  { %v2882_v26 = vmax.f32 %v2754_v22, %v2818_v6  ;;  %v2797_v22 = vmul.f32 0.1, %v2733_v16 }
 0x622   :  { %4299 = vmatmul.msk.f32.gmra.mxu2 %vm2287_vm1, %v5612_v19 }
 0x624   :  { %v2570_v45 = vpop.f32.mrf.mxu3  ;;  %4295 = vmatmul.msk.f32.gmra.mxu1 %vm2287_vm1, %v5673_v44 }
 0x625   :  { %v2762_v23 = vadd.f32 %v2570_v45, %v5738_v61 }
 0x627   :  { %v2826_v19 = vmul.f32 0.1, %v2762_v23 }
 0x628   :  { %v2350_v50 = vpop.f32.mrf.mxu0  ;;  %v5926_v0 = vpop.f32.mrf.mxu1 }
 0x629   :  { %v2757_v29 = vadd.f32 %v2350_v50, %v5738_v61  ;;  %v2890_v33 = vmax.f32 %v2762_v23, %v2826_v19  ;;  %v2786_v50 = vmul.f32 0.1, %v2722_v59  ;;  %v2866_v23 = vmax.f32 %v2738_v17, %v2802_v27 }
 0x62a   :  { %4300 = vmatmul.msk.f32.gmra.mxu2 %vm2287_vm1, %v5623_v1  ;;  %v2749_v1 = vadd.f32 %v2347_v57, %v5743_v8  ;;  %v2794_v57 = vmul.f32 0.1, %v2730_v30  ;;  %v2789_v19 = vmul.f32 0.1, %v2725_v13  ;;  %v2773_v17 = vmul.f32 0.1, %v2709_v48 }
 0x62b   :  { %v2821_v14 = vmul.f32 0.1, %v2757_v29  ;;  %v2850_v6 = vmax.f32 %v2722_v59, %v2786_v50 }
 0x62c   :  { %v2573_v49 = vpop.f32.mrf.mxu3  ;;  %v2813_v56 = vmul.f32 0.1, %v2749_v1  ;;  %v2858_v51 = vmax.f32 %v2730_v30, %v2794_v57  ;;  %v2837_v34 = vmax.f32 %v2709_v48, %v2773_v17  ;;  %v2727_v57 = vadd.f32 %v5926_v0, %v5763_v60 }
 0x62d   :  { %v2770_v4 = vadd.f32 %v2573_v49, %v5746_v37  ;;  %v2885_v45 = vmax.f32 %v2757_v29, %v2821_v14  ;;  %v2781_v29 = vmul.f32 0.1, %v2717_v12 }
 0x62f   :  { %v2834_v36 = vmul.f32 0.1, %v2770_v4 }
 0x630   :  { %v2353_v46 = vpop.f32.mrf.mxu0  ;;  %v5936_v2 = vpop.f32.mrf.mxu1 }
 0x631   :  { %v2898_v18 = vmax.f32 %v2770_v4, %v2834_v36  ;;  %v2765_v10 = vadd.f32 %v2353_v46, %v5746_v37  ;;  %v2877_v4 = vmax.f32 %v2749_v1, %v2813_v56  ;;  %v2869_v36 = vmax.f32 %v2741_v55, %v2805_v53 }
 0x632   :  { %4301 = vmatmul.msk.f32.gmra.mxu2 %vm2287_vm1, %v5635_v15  ;;  %v2714_v15 = vadd.f32 %v5877_v40, %v5774_v21  ;;  %v2853_v46 = vmax.f32 %v2725_v13, %v2789_v19  ;;  %v2845_v1 = vmax.f32 %v2717_v12, %v2781_v29  ;;  %v2735_v56 = vadd.f32 %v5936_v2, %v5759_v47 }
 0x633   :  { %3219 = vmatpush.msra.mxu3 %v2898_v18  ;;  %v2829_v32 = vmul.f32 0.1, %v2765_v10  ;;  %v2861_v18 = vmax.f32 %v2733_v16, %v2797_v22  ;;  %v2711_v2 = vadd.f32 %v5914_v35, %v5774_v21  ;;  %v2791_v22 = vmul.f32 0.1, %v2727_v57 }
 0x634   :  { %v2778_v40 = vmul.f32 0.1, %v2714_v15 }
 0x635   :  { %3220 = vmatpush.msra.mxu3 %v2890_v33  ;;  %v2893_v52 = vmax.f32 %v2765_v10, %v2829_v32  ;;  %v2855_v48 = vmax.f32 %v2727_v57, %v2791_v22 }
 0x636   :  { %v2842_v11 = vmax.f32 %v2714_v15, %v2778_v40 }
 0x637   :  { %3221 = vmatpush.msra.mxu3 %v2882_v26  ;;  %2999 = vmatpush.msra.mxu0 %v2893_v52 }
 0x638   :  { %v5949_v28 = vpop.f32.mrf.mxu0 }
 0x639   :  { %3222 = vmatpush.msra.mxu3 %v2874_v63  ;;  %v2432_v49 = vpop.f32.mrf.mxu1  ;;  %3000 = vmatpush.msra.mxu0 %v2885_v45 }
 0x63a   :  { %4302 = vmatmul.msk.f32.gmra.mxu2 %vm2287_vm1, %v5643_v25 }
 0x63b   :  { %3223 = vmatpush.msra.mxu3 %v2866_v23  ;;  %3001 = vmatpush.msra.mxu0 %v2877_v4  ;;  %v2719_v23 = vadd.f32 %v5920_v24, %v5769_v43  ;;  %v2775_v24 = vmul.f32 0.1, %v2711_v2 }
 0x63d   :  { %3224 = vmatpush.msra.mxu3 %v2858_v51  ;;  %3002 = vmatpush.msra.mxu0 %v2869_v36  ;;  %v2783_v40 = vmul.f32 0.1, %v2719_v23  ;;  %v2839_v35 = vmax.f32 %v2711_v2, %v2775_v24 }
 0x63f   :  { %3225 = vmatpush.msra.mxu3 %v2850_v6  ;;  %3003 = vmatpush.msra.mxu0 %v2861_v18  ;;  %v2847_v6 = vmax.f32 %v2719_v23, %v2783_v40 }
 0x640   :  { %v5957_v58 = vpop.f32.mrf.mxu0 }
 0x641   :  { %v2435_v25 = vpop.f32.mrf.mxu1  ;;  %3226 = vmatpush.msra.mxu3 %v2842_v11  ;;  %3004 = vmatpush.msra.mxu0 %v2853_v46 }
 0x642   :  { %4303 = vmatmul.msk.f32.gmra.mxu2 %vm2287_vm1, %v5651_v42  ;;  %4350 = vmatmul.msk.f32.vlgmr.msra.gmra.mxu3 %vm317_vm0, %v5798_v41  ;;  %v2751_v32 = vadd.f32 %v2435_v25, %v5743_v8 }
 0x643   :  { %3005 = vmatpush.msra.mxu0 %v2845_v1 }
 0x644   :  { %v5963_v33 = vpop.f32.mrf.mxu2  ;;  %v2815_v52 = vmul.f32 0.1, %v2751_v32 }
 0x645   :  { %3006 = vmatpush.msra.mxu0 %v2837_v34 }
 0x646   :  { %4305 = vmatmul.msk.f32.vlgmr.msra.gmra.mxu0 %vm317_vm0, %v5798_v41  ;;  %v2879_v12 = vmax.f32 %v2751_v32, %v2815_v52 }
 0x648   :  { %v5967_v30 = vpop.f32.mrf.mxu0 }
 0x649   :  { %v2438_v10 = vpop.f32.mrf.mxu1 }
 0x64a   :  { %4304 = vmatmul.msk.f32.gmra.mxu2 %vm2287_vm1, %v5673_v44  ;;  %4351 = vmatmul.msk.f32.gmra.mxu3 %vm317_vm0, %v5808_v5  ;;  %v2759_v55 = vadd.f32 %v2438_v10, %v5738_v61  ;;  %v2743_v44 = vadd.f32 %v2432_v49, %v5750_v54  ;;  %v2799_v49 = vmul.f32 0.1, %v2735_v56 }
 0x64c   :  { %v5973_v42 = vpop.f32.mrf.mxu2  ;;  %v2823_v27 = vmul.f32 0.1, %v2759_v55  ;;  %v2807_v13 = vmul.f32 0.1, %v2743_v44  ;;  %v2863_v51 = vmax.f32 %v2735_v56, %v2799_v49 }
 0x64e   :  { %4306 = vmatmul.msk.f32.gmra.mxu0 %vm317_vm0, %v5808_v5  ;;  %v2887_v53 = vmax.f32 %v2759_v55, %v2823_v27  ;;  %v2871_v0 = vmax.f32 %v2743_v44, %v2807_v13 }
 0x650   :  { %v5978_v14 = vpop.f32.mrf.mxu0 }
 0x651   :  { %v2441_v26 = vpop.f32.mrf.mxu1  ;;  %v2729_v23 = vadd.f32 %v5978_v14, %v5763_v60 }
 0x652   :  { %v2767_v59 = vadd.f32 %v2441_v26, %v5746_v37  ;;  %4352 = vmatmul.msk.f32.gmra.mxu3 %vm317_vm0, %v5818_v31 }
 0x654   :  { %v2831_v16 = vmul.f32 0.1, %v2767_v59  ;;  %v5985_v63 = vpop.f32.mrf.mxu2 }
 0x656   :  { %v2895_v15 = vmax.f32 %v2767_v59, %v2831_v16  ;;  %4307 = vmatmul.msk.f32.gmra.mxu0 %vm317_vm0, %v5818_v31 }
 0x658   :  { %3087 = vmatpush.msrb.mxu1 %v2895_v15  ;;  %v2517_v50 = vpop.f32.mrf.mxu0 }
 0x659   :  { %v5993_v45 = vpop.f32.mrf.mxu1  ;;  %v2737_v56 = vadd.f32 %v2517_v50, %v5759_v47 }
 0x65a   :  { %3088 = vmatpush.msrb.mxu1 %v2887_v53  ;;  %4353 = vmatmul.msk.f32.gmra.mxu3 %vm317_vm0, %v5828_v20 }
 0x65b   :  { %v2801_v40 = vmul.f32 0.1, %v2737_v56 }
 0x65c   :  { %3089 = vmatpush.msrb.mxu1 %v2879_v12  ;;  %v2473_v4 = vpop.f32.mrf.mxu2 }
 0x65d   :  { %v2736_v14 = vadd.f32 %v2473_v4, %v5759_v47 }
 0x65e   :  { %3090 = vmatpush.msrb.mxu1 %v2871_v0  ;;  %4308 = vmatmul.msk.f32.gmra.mxu0 %vm317_vm0, %v5828_v20  ;;  %v2721_v0 = vadd.f32 %v5967_v30, %v5769_v43 }
 0x660   :  { %3091 = vmatpush.msrb.mxu1 %v2863_v51  ;;  %v2520_v19 = vpop.f32.mrf.mxu0  ;;  %v2785_v4 = vmul.f32 0.1, %v2721_v0 }
 0x661   :  { %v6003_v36 = vpop.f32.mrf.mxu1  ;;  %v2745_v59 = vadd.f32 %v2520_v19, %v5750_v54 }
 0x662   :  { %3092 = vmatpush.msrb.mxu1 %v2855_v48  ;;  %4354 = vmatmul.msk.f32.gmra.mxu3 %vm317_vm0, %v5838_v38 }
 0x663   :  { %v2809_v49 = vmul.f32 0.1, %v2745_v59 }
 0x664   :  { %3093 = vmatpush.msrb.mxu1 %v2847_v6  ;;  %v2476_v29 = vpop.f32.mrf.mxu2  ;;  %v2713_v6 = vadd.f32 %v5957_v58, %v5774_v21  ;;  %v2800_v58 = vmul.f32 0.1, %v2736_v14 }
 0x665   :  { %v2744_v12 = vadd.f32 %v2476_v29, %v5750_v54  ;;  %v2728_v29 = vadd.f32 %v5985_v63, %v5763_v60  ;;  %v2712_v63 = vadd.f32 %v5963_v33, %v5774_v21 }
 0x666   :  { %3094 = vmatpush.msrb.mxu1 %v2839_v35  ;;  %4309 = vmatmul.msk.f32.gmra.mxu0 %vm317_vm0, %v5838_v38  ;;  %v2793_v35 = vmul.f32 0.1, %v2729_v23 }
 0x667   :  { %4323 = vmatmul.msk.f32.vlgmr.msrb.gmra.mxu1 %vm317_vm0, %v5798_v41  ;;  %v2808_v30 = vmul.f32 0.1, %v2744_v12 }
 0x668   :  { %v2523_v18 = vpop.f32.mrf.mxu0 }
 0x669   :  { %v6011_v11 = vpop.f32.mrf.mxu1  ;;  %v2753_v26 = vadd.f32 %v2523_v18, %v5743_v8  ;;  %v2873_v18 = vmax.f32 %v2745_v59, %v2809_v49  ;;  %v2792_v59 = vmul.f32 0.1, %v2728_v29 }
 0x66a   :  { %4355 = vmatmul.msk.f32.gmra.mxu3 %vm317_vm0, %v5848_v3 }
 0x66b   :  { %v2817_v15 = vmul.f32 0.1, %v2753_v26 }
 0x66c   :  { %v2479_v17 = vpop.f32.mrf.mxu2 }
 0x66d   :  { %v2752_v57 = vadd.f32 %v2479_v17, %v5743_v8  ;;  %v2881_v24 = vmax.f32 %v2753_v26, %v2817_v15  ;;  %v2777_v26 = vmul.f32 0.1, %v2713_v6  ;;  %v2776_v15 = vmul.f32 0.1, %v2712_v63 }
 0x66e   :  { %4310 = vmatmul.msk.f32.gmra.mxu0 %vm317_vm0, %v5848_v3 }
 0x66f   :  { %4324 = vmatmul.msk.f32.gmra.mxu1 %vm317_vm0, %v5808_v5  ;;  %v2816_v48 = vmul.f32 0.1, %v2752_v57  ;;  %v2840_v33 = vmax.f32 %v2712_v63, %v2776_v15 }
 0x670   :  { %v2526_v46 = vpop.f32.mrf.mxu0 }
 0x671   :  { %v6019_v25 = vpop.f32.mrf.mxu1  ;;  %v2761_v34 = vadd.f32 %v2526_v46, %v5738_v61 }
 0x672   :  { %4356 = vmatmul.msk.f32.gmra.mxu3 %vm317_vm0, %v5858_v62 }
 0x673   :  { %v2825_v44 = vmul.f32 0.1, %v2761_v34 }
 0x674   :  { %v2482_v1 = vpop.f32.mrf.mxu2 }
 0x675   :  { %v2760_v27 = vadd.f32 %v2482_v1, %v5738_v61  ;;  %v2889_v50 = vmax.f32 %v2761_v34, %v2825_v44  ;;  %v2720_v1 = vadd.f32 %v5973_v42, %v5769_v43  ;;  %v2865_v34 = vmax.f32 %v2737_v56, %v2801_v40 }
 0x676   :  { %4311 = vmatmul.msk.f32.gmra.mxu0 %vm317_vm0, %v5858_v62  ;;  %v2872_v44 = vmax.f32 %v2744_v12, %v2808_v30  ;;  %v2864_v56 = vmax.f32 %v2736_v14, %v2800_v58 }
 0x677   :  { %4325 = vmatmul.msk.f32.gmra.mxu1 %vm317_vm0, %v5818_v31  ;;  %v2824_v2 = vmul.f32 0.1, %v2760_v27 }
 0x678   :  { %v2529_v10 = vpop.f32.mrf.mxu0 }
 0x679   :  { %v6028_v55 = vpop.f32.mrf.mxu1  ;;  %v2769_v32 = vadd.f32 %v2529_v10, %v5746_v37  ;;  %v2888_v17 = vmax.f32 %v2760_v27, %v2824_v2  ;;  %v2880_v10 = vmax.f32 %v2752_v57, %v2816_v48  ;;  %v2849_v27 = vmax.f32 %v2721_v0, %v2785_v4 }
 0x67a   :  { %4357 = vmatmul.msk.f32.gmra.mxu3 %vm317_vm0, %v5870_v39  ;;  %v2856_v57 = vmax.f32 %v2728_v29, %v2792_v59  ;;  %v2739_v48 = vadd.f32 %v6028_v55, %v5759_v47  ;;  %v2715_v55 = vadd.f32 %v6003_v36, %v5774_v21 }
 0x67b   :  { %v2833_v16 = vmul.f32 0.1, %v2769_v32 }
 0x67c   :  { %v2485_v52 = vpop.f32.mrf.mxu2  ;;  %v2803_v30 = vmul.f32 0.1, %v2739_v48 }
 0x67d   :  { %v2897_v13 = vmax.f32 %v2769_v32, %v2833_v16  ;;  %v2768_v53 = vadd.f32 %v2485_v52, %v5746_v37  ;;  %v2857_v32 = vmax.f32 %v2729_v23, %v2793_v35  ;;  %v2784_v16 = vmul.f32 0.1, %v2720_v1 }
 0x67e   :  { %4312 = vmatmul.msk.f32.gmra.mxu0 %vm317_vm0, %v5870_v39  ;;  %v2841_v52 = vmax.f32 %v2713_v6, %v2777_v26  ;;  %v2731_v35 = vadd.f32 %v6019_v25, %v5763_v60  ;;  %v2867_v58 = vmax.f32 %v2739_v48, %v2803_v30  ;;  %v2670_v48 = vsel %vm2667_vm2, %v5993_v45, -inf }
 0x67f   :  { %4326 = vmatmul.msk.f32.gmra.mxu1 %vm317_vm0, %v5828_v20  ;;  %v2832_v22 = vmul.f32 0.1, %v2768_v53  ;;  %3175 = vmatpush.msrb.mxu0 %v2897_v13 }
 0x680   :  { %v2795_v4 = vmul.f32 0.1, %v2731_v35 }
 0x681   :  { %v2608_v51 = vpop.f32.mrf.mxu1  ;;  %v2896_v19 = vmax.f32 %v2768_v53, %v2832_v22  ;;  %3176 = vmatpush.msrb.mxu0 %v2889_v50  ;;  %v2848_v53 = vmax.f32 %v2720_v1, %v2784_v16 }
 0x682   :  { %4358 = vmatmul.msk.f32.gmra.mxu3 %vm317_vm0, %v5885_v7  ;;  %v2747_v0 = vadd.f32 %v2608_v51, %v5750_v54 }
 0x683   :  { %3131 = vmatpush.msra.mxu2 %v2896_v19  ;;  %3177 = vmatpush.msrb.mxu0 %v2881_v24 }
 0x684   :  { %v2811_v29 = vmul.f32 0.1, %v2747_v0 }
 0x685   :  { %v6055_v46 = vpop.f32.mrf.mxu2  ;;  %3132 = vmatpush.msra.mxu2 %v2888_v17  ;;  %3178 = vmatpush.msrb.mxu0 %v2873_v18  ;;  %v2723_v18 = vadd.f32 %v6011_v11, %v5769_v43  ;;  %v2779_v11 = vmul.f32 0.1, %v2715_v55 }
 0x686   :  { %4313 = vmatmul.msk.f32.gmra.mxu0 %vm317_vm0, %v5885_v7  ;;  %v2875_v1 = vmax.f32 %v2747_v0, %v2811_v29 }
 0x687   :  { %4327 = vmatmul.msk.f32.gmra.mxu1 %vm317_vm0, %v5838_v38  ;;  %3133 = vmatpush.msra.mxu2 %v2880_v10  ;;  %v2787_v25 = vmul.f32 0.1, %v2723_v18  ;;  %v2859_v10 = vmax.f32 %v2731_v35, %v2795_v4  ;;  %v2843_v36 = vmax.f32 %v2715_v55, %v2779_v11 }
 0x688   :  { %3179 = vmatpush.msrb.mxu0 %v2865_v34 }
 0x689   :  { %v2611_v42 = vpop.f32.mrf.mxu1  ;;  %3134 = vmatpush.msra.mxu2 %v2872_v44  ;;  %v2851_v26 = vmax.f32 %v2723_v18, %v2787_v25 }
 0x68a   :  { %3180 = vmatpush.msrb.mxu0 %v2857_v32  ;;  %v2755_v2 = vadd.f32 %v2611_v42, %v5743_v8 }
 0x68b   :  { %3135 = vmatpush.msra.mxu2 %v2864_v56  ;;  %v6128_v56 = vpop.f32.mrf.mxu0 }
 0x68c   :  { %3181 = vmatpush.msrb.mxu0 %v2849_v27  ;;  %v2819_v19 = vmul.f32 0.1, %v2755_v2 }
 0x68d   :  { %v6065_v13 = vpop.f32.mrf.mxu2  ;;  %3136 = vmatpush.msra.mxu2 %v2856_v57 }
 0x68e   :  { %3182 = vmatpush.msrb.mxu0 %v2841_v52  ;;  %v2883_v17 = vmax.f32 %v2755_v2, %v2819_v19  ;;  %v6134_v52 = vpop.f32.mrf.mxu3  ;;  %v2716_v30 = vadd.f32 %v6065_v13, %v5774_v21  ;;  %v3596_v13 = vld [vmem:[%s7003_s2 + $0xe8] sm:$0xff] }
 0x68f   :  { %4328 = vmatmul.msk.f32.gmra.mxu1 %vm317_vm0, %v5848_v3  ;;  %4341 = vmatmul.msk.f32.vlgmr.msrb.gmra.mxu0 %vm317_vm0, %v5798_v41 }
 0x690   :  { %3137 = vmatpush.msra.mxu2 %v2848_v53  ;;  %v2669_v53 = vsel %vm2667_vm2, %v5862_v9, -inf  ;;  %v2780_v25 = vmul.f32 0.1, %v2716_v30 }
 0x691   :  { %v2614_v23 = vpop.f32.mrf.mxu1 }
 0x692   :  { %3138 = vmatpush.msra.mxu2 %v2840_v33  ;;  %v2763_v12 = vadd.f32 %v2614_v23, %v5738_v61  ;;  %v2672_v23 = vsel %vm2667_vm2, %v6128_v56, -inf  ;;  %v2844_v21 = vmax.f32 %v2716_v30, %v2780_v25  ;;  %v3605_v30 = vld [vmem:[%s7003_s2 + $0x130] sm:$0xff]  ;;  %v3571_v25 = vld [vmem:[%s7003_s2 + $0x20] sm:$0xff] }
 0x693   :  { %4332 = vmatmul.msk.f32.vlgmr.msra.gmra.mxu2 %vm317_vm0, %v5798_v41 }
 0x694   :  { %v2827_v40 = vmul.f32 0.1, %v2763_v12 }
 0x695   :  { %v6073_v49 = vpop.f32.mrf.mxu2 }
 0x696   :  { %v2891_v51 = vmax.f32 %v2763_v12, %v2827_v40  ;;  %v2724_v35 = vadd.f32 %v6073_v49, %v5769_v43 }
 0x697   :  { %4329 = vmatmul.msk.f32.gmra.mxu1 %vm317_vm0, %v5858_v62  ;;  %4342 = vmatmul.msk.f32.gmra.mxu0 %vm317_vm0, %v5808_v5 }
 0x698   :  { %v2788_v4 = vmul.f32 0.1, %v2724_v35 }
 0x699   :  { %v2617_v50 = vpop.f32.mrf.mxu1 }
 0x69a   :  { %v2771_v22 = vadd.f32 %v2617_v50, %v5746_v37  ;;  %v2852_v11 = vmax.f32 %v2724_v35, %v2788_v4  ;;  %v3574_v35 = vld [vmem:[%s7003_s2 + $0x38] sm:$0xff]  ;;  %v3604_v4 = vld [vmem:[%s7003_s2 + $0x128] sm:$0xff] }
 0x69b   :  { %4333 = vmatmul.msk.f32.gmra.mxu2 %vm317_vm0, %v5808_v5 }
 0x69c   :  { %v2835_v14 = vmul.f32 0.1, %v2771_v22 }
 0x69d   :  { %v6085_v24 = vpop.f32.mrf.mxu2 }
 0x69e   :  { %v2899_v6 = vmax.f32 %v2771_v22, %v2835_v14  ;;  %v2732_v2 = vadd.f32 %v6085_v24, %v5763_v60 }
 0x69f   :  { %4330 = vmatmul.msk.f32.gmra.mxu1 %vm317_vm0, %v5870_v39  ;;  %4343 = vmatmul.msk.f32.gmra.mxu0 %vm317_vm0, %v5818_v31 }
 0x6a0   :  { %3263 = vmatpush.msra.mxu1 %v2899_v6 }
 0x6a1   :  { %v6143_v33 = vpop.f32.mrf.mxu1 }
 0x6a2   :  { %3264 = vmatpush.msra.mxu1 %v2891_v51  ;;  %v2676_v22 = vsel %vm2667_vm2, %v6143_v33, -inf }
 0x6a3   :  { %4334 = vmatmul.msk.f32.gmra.mxu2 %vm317_vm0, %v5818_v31  ;;  %v2677_v51 = vmax.f32 %v2670_v48, %v2676_v22  ;;  %v3591_v22 = vld [vmem:[%s7003_s2 + $0xc0] sm:$0xff]  ;;  %v6300_v48 = vpop.f32.mrf.mxu3 }
 0x6a4   :  { %3265 = vmatpush.msra.mxu1 %v2883_v17  ;;  %v2796_v17 = vmul.f32 0.1, %v2732_v2 }
 0x6a5   :  { %v2649_v34 = vpop.f32.mrf.mxu2 }
 0x6a6   :  { %3266 = vmatpush.msra.mxu1 %v2875_v1  ;;  %v2740_v12 = vadd.f32 %v2649_v34, %v5759_v47  ;;  %v2671_v47 = vsel %vm2667_vm2, %v6055_v46, -inf }
 0x6a7   :  { %4331 = vmatmul.msk.f32.gmra.mxu1 %vm317_vm0, %v5885_v7  ;;  %4344 = vmatmul.msk.f32.gmra.mxu0 %vm317_vm0, %v5828_v20 }
 0x6a8   :  { %3267 = vmatpush.msra.mxu1 %v2867_v58  ;;  %v2804_v60 = vmul.f32 0.1, %v2740_v12  ;;  %v2860_v58 = vmax.f32 %v2732_v2, %v2796_v17  ;;  %v3575_v2 = vld [vmem:[%s7003_s2 + $0x40] sm:$0xff] }
 0x6aa   :  { %3268 = vmatpush.msra.mxu1 %v2859_v10  ;;  %v2868_v1 = vmax.f32 %v2740_v12, %v2804_v60  ;;  %v3612_v10 = vld [vmem:[%s7003_s2 + $0x168] sm:$0xff]  ;;  %v3590_v60 = vld [vmem:[%s7003_s2 + $0xb8] sm:$0xff] }
 0x6ab   :  { %4335 = vmatmul.msk.f32.gmra.mxu2 %vm317_vm0, %v5828_v20  ;;  %v3592_v12 = vld [vmem:[%s7003_s2 + $0xc8] sm:$0xff] }
 0x6ac   :  { %3269 = vmatpush.msra.mxu1 %v2851_v26  ;;  %v3628_v26 = vld [vmem:[%s7003_s2 + $0x1e8] sm:$0xff] }
 0x6ad   :  { %v2652_v63 = vpop.f32.mrf.mxu2 }
 0x6ae   :  { %3270 = vmatpush.msra.mxu1 %v2843_v36  ;;  %v2748_v15 = vadd.f32 %v2652_v63, %v5750_v54  ;;  %v3579_v36 = vld [vmem:[%s7003_s2 + $0x60] sm:$0xff] }
 0x6af   :  { %4345 = vmatmul.msk.f32.gmra.mxu0 %vm317_vm0, %v5838_v38  ;;  %4359 = vmatmul.msk.f32.vlgmr.msra.gmra.mxu1 %vm317_vm0, %v5798_v41  ;;  %v3595_v63 = vld [vmem:[%s7003_s2 + $0xe0] sm:$0xff] }
 0x6b0   :  { %v2812_v0 = vmul.f32 0.1, %v2748_v15 }
 0x6b2   :  { %v2876_v55 = vmax.f32 %v2748_v15, %v2812_v0  ;;  %v3577_v15 = vld [vmem:[%s7003_s2 + $0x50] sm:$0xff]  ;;  %v3607_v0 = vld [vmem:[%s7003_s2 + $0x140] sm:$0xff] }
 0x6b3   :  { %4336 = vmatmul.msk.f32.gmra.mxu2 %vm317_vm0, %v5838_v38 }
 0x6b5   :  { %v2655_v32 = vpop.f32.mrf.mxu2 }
 0x6b6   :  { %v2756_v27 = vadd.f32 %v2655_v32, %v5743_v8  ;;  %v2674_v8 = vsel %vm2667_vm2, %v6134_v52, -inf  ;;  %v3611_v32 = vld [vmem:[%s7003_s2 + $0x160] sm:$0xff] }
 0x6b7   :  { %4346 = vmatmul.msk.f32.gmra.mxu0 %vm317_vm0, %v5848_v3  ;;  %4360 = vmatmul.msk.f32.gmra.mxu1 %vm317_vm0, %v5808_v5  ;;  %v2675_v14 = vmax.f32 %v2669_v53, %v2674_v8  ;;  %v3609_v53 = vld [vmem:[%s7003_s2 + $0x150] sm:$0xff] }
 0x6b8   :  { %v2820_v50 = vmul.f32 0.1, %v2756_v27  ;;  %v3625_v8 = vld [vmem:[%s7003_s2 + $0x1d0] sm:$0xff] }
 0x6ba   :  { %v2884_v24 = vmax.f32 %v2756_v27, %v2820_v50  ;;  %v3610_v27 = vld [vmem:[%s7003_s2 + $0x158] sm:$0xff]  ;;  %v3608_v50 = vld [vmem:[%s7003_s2 + $0x148] sm:$0xff] }
 0x6bb   :  { %4337 = vmatmul.msk.f32.gmra.mxu2 %vm317_vm0, %v5848_v3 }
 0x6bd   :  { %v2658_v59 = vpop.f32.mrf.mxu2 }
 0x6be   :  { %v2764_v44 = vadd.f32 %v2658_v59, %v5738_v61  ;;  %v3627_v59 = vld [vmem:[%s7003_s2 + $0x1e0] sm:$0xff] }
 0x6bf   :  { %4347 = vmatmul.msk.f32.gmra.mxu0 %vm317_vm0, %v5858_v62  ;;  %4361 = vmatmul.msk.f32.gmra.mxu1 %vm317_vm0, %v5818_v31 }
 0x6c0   :  { %v2828_v57 = vmul.f32 0.1, %v2764_v44 }
 0x6c2   :  { %v2892_v40 = vmax.f32 %v2764_v44, %v2828_v57  ;;  %v3578_v44 = vld [vmem:[%s7003_s2 + $0x58] sm:$0xff]  ;;  %v3593_v57 = vld [vmem:[%s7003_s2 + $0xd0] sm:$0xff] }
 0x6c3   :  { %4338 = vmatmul.msk.f32.gmra.mxu2 %vm317_vm0, %v5858_v62 }
 0x6c5   :  { %v2661_v42 = vpop.f32.mrf.mxu2 }
 0x6c6   :  { %v2772_v16 = vadd.f32 %v2661_v42, %v5746_v37  ;;  %v2668_v37 = vsel %vm2667_vm2, %v5949_v28, -inf  ;;  %v3594_v42 = vld [vmem:[%s7003_s2 + $0xd8] sm:$0xff] }
 0x6c7   :  { %4348 = vmatmul.msk.f32.gmra.mxu0 %vm317_vm0, %v5870_v39  ;;  %4362 = vmatmul.msk.f32.gmra.mxu1 %vm317_vm0, %v5828_v20  ;;  %v2673_v19 = vmax.f32 %v2668_v37, %v2672_v23  ;;  %v3576_v23 = vld [vmem:[%s7003_s2 + $0x48] sm:$0xff] }
 0x6c8   :  { %v2836_v61 = vmul.f32 0.1, %v2772_v16 }
 0x6c9   :  { %v2680_v43 = vmax.f32 %v2673_v19, %v2675_v14  ;;  %v3623_v14 = vld [vmem:[%s7003_s2 + $0x1c0] sm:$0xff] }
 0x6ca   :  { %v2900_v54 = vmax.f32 %v2772_v16, %v2836_v61  ;;  %v3626_v16 = vld [vmem:[%s7003_s2 + $0x1d8] sm:$0xff]  ;;  %v6264_v61 = vpop.f32.mrf.mxu0 }
 0x6cb   :  { %4339 = vmatmul.msk.f32.gmra.mxu2 %vm317_vm0, %v5870_v39 }
 0x6cc   :  { %3307 = vmatpush.msrb.mxu2 %v2900_v54  ;;  %v3624_v54 = vld [vmem:[%s7003_s2 + $0x1c8] sm:$0xff] }
 0x6cd   :  { %v6158_v6 = vpop.f32.mrf.mxu2 }
 0x6ce   :  { %v2678_v29 = vsel %vm2667_vm2, %v6158_v6, -inf  ;;  %3308 = vmatpush.msrb.mxu2 %v2892_v40 }
 0x6cf   :  { %v2679_v18 = vmax.f32 %v2671_v47, %v2678_v29  ;;  %4349 = vmatmul.msk.f32.gmra.mxu0 %vm317_vm0, %v5885_v7  ;;  %4363 = vmatmul.msk.f32.gmra.mxu1 %vm317_vm0, %v5838_v38  ;;  %v3622_v29 = vld [vmem:[%s7003_s2 + $0x1b8] sm:$0xff] }
 0x6d0   :  { %3309 = vmatpush.msrb.mxu2 %v2884_v24  ;;  %v3606_v24 = vld [vmem:[%s7003_s2 + $0x138] sm:$0xff] }
 0x6d1   :  { %v2681_v49 = vmax.f32 %v2677_v51, %v2679_v18  ;;  %v3573_v51 = vld [vmem:[%s7003_s2 + $0x30] sm:$0xff] }
 0x6d2   :  { %3310 = vmatpush.msrb.mxu2 %v2876_v55  ;;  %v6302_v47 = vpop.f32.mrf.mxu0  ;;  %v3589_v18 = vld [vmem:[%s7003_s2 + $0xb0] sm:$0xff] }
 0x6d3   :  { %4340 = vmatmul.msk.f32.gmra.mxu2 %vm317_vm0, %v5885_v7  ;;  %v2682_v34 = vmax.f32 %v2680_v43, %v2681_v49  ;;  %v3621_v55 = vld [vmem:[%s7003_s2 + $0x1b0] sm:$0xff]  ;;  %v3572_v43 = vld [vmem:[%s7003_s2 + $0x28] sm:$0xff] }
 0x6d4   :  { %3311 = vmatpush.msrb.mxu2 %v2868_v1  ;;  %v3588_v49 = vld [vmem:[%s7003_s2 + $0xa8] sm:$0xff]  ;;  %v6341_v1 = vpop.f32.mrf.mxu3 }
 0x6d5   :  { %2683 = vmax.xlane.f32.xlu1 %v2682_v34  ;;  %v3620_v34 = vld [vmem:[%s7003_s2 + $0x1a8] sm:$0xff] }
 0x6d6   :  { %3312 = vmatpush.msrb.mxu2 %v2860_v58  ;;  %v3587_v58 = vld [vmem:[%s7003_s2 + $0xa0] sm:$0xff] }
 0x6d7   :  { %4364 = vmatmul.msk.f32.gmra.mxu1 %vm317_vm0, %v5848_v3 }
 0x6d8   :  { %3313 = vmatpush.msrb.mxu2 %v2852_v11  ;;  %v3603_v11 = vld [vmem:[%s7003_s2 + $0x120] sm:$0xff] }
 0x6da   :  { %3314 = vmatpush.msrb.mxu2 %v2844_v21  ;;  %v3619_v21 = vld [vmem:[%s7003_s2 + $0x1a0] sm:$0xff] }
 0x6db   :  { %4368 = vmatmul.msk.f32.vlgmr.msrb.gmra.mxu2 %vm317_vm0, %v5798_v41  ;;  %v3582_v41 = vld [vmem:[%s7003_s2 + $0x78] sm:$0xff] }
 0x6dc   :  { %3695 = vmatpush.msra.mxu0 %v3582_v41  ;;  %v6358_v41 = vpop.f32.mrf.mxu0 }
 0x6df   :  { %4365 = vmatmul.msk.f32.gmra.mxu1 %vm317_vm0, %v5858_v62 }
 0x6e3   :  { %4369 = vmatmul.msk.f32.gmra.mxu2 %vm317_vm0, %v5808_v5  ;;  %v3598_v5 = vld [vmem:[%s7003_s2 + $0xf8] sm:$0xff] }
 0x6e4   :  { %3739 = vmatpush.msrb.mxu3 %v3598_v5  ;;  %v6272_v37 = vpop.f32.mrf.mxu1  ;;  %v3570_v5 = vld [vmem:[%s7003_s2 + $0x18] sm:$0xff] }
 0x6e7   :  { %4366 = vmatmul.msk.f32.gmra.mxu1 %vm317_vm0, %v5870_v39 }
 0x6eb   :  { %4370 = vmatmul.msk.f32.gmra.mxu2 %vm317_vm0, %v5818_v31  ;;  %v3614_v31 = vld [vmem:[%s7003_s2 + $0x178] sm:$0xff] }
 0x6ec   :  { %3783 = vmatpush.msrb.mxu1 %v3614_v31  ;;  %v6304_v19 = vpop.f32.mrf.mxu1  ;;  %v3586_v31 = vld [vmem:[%s7003_s2 + $0x98] sm:$0xff] }
 0x6ef   :  { %4367 = vmatmul.msk.f32.gmra.mxu1 %vm317_vm0, %v5885_v7 }
 0x6f3   :  { %4371 = vmatmul.msk.f32.gmra.mxu2 %vm317_vm0, %v5828_v20  ;;  %v3630_v20 = vld [vmem:[%s7003_s2 + $0x1f8] sm:$0xff] }
 0x6f4   :  { %3827 = vmatpush.msra.mxu2 %v3630_v20  ;;  %v3602_v20 = vld [vmem:[%s7003_s2 + $0x118] sm:$0xff] }
 0x6fb   :  { %4372 = vmatmul.msk.f32.gmra.mxu2 %vm317_vm0, %v5838_v38  ;;  %v3581_v38 = vld [vmem:[%s7003_s2 + $0x70] sm:$0xff] }
 0x6fc   :  { %3696 = vmatpush.msra.mxu0 %v3581_v38  ;;  %v3618_v38 = vld [vmem:[%s7003_s2 + $0x198] sm:$0xff] }
 0x703   :  { %4373 = vmatmul.msk.f32.gmra.mxu2 %vm317_vm0, %v5848_v3  ;;  %v3597_v3 = vld [vmem:[%s7003_s2 + $0xf0] sm:$0xff] }
 0x704   :  { %3740 = vmatpush.msrb.mxu3 %v3597_v3  ;;  %v6372_v3 = vpop.f32.mrf.mxu1 }
 0x706   :  { %3741 = vmatpush.msrb.mxu3 %v3596_v13  ;;  %v3617_v13 = vld [vmem:[%s7003_s2 + $0x190] sm:$0xff] }
 0x708   :  { %3742 = vmatpush.msrb.mxu3 %v3595_v63 }
 0x70a   :  { %3743 = vmatpush.msrb.mxu3 %v3594_v42  ;;  %v3599_v42 = vld [vmem:[%s7003_s2 + $0x100] sm:$0xff] }
 0x70b   :  { %4374 = vmatmul.msk.f32.gmra.mxu2 %vm317_vm0, %v5858_v62  ;;  %v3613_v62 = vld [vmem:[%s7003_s2 + $0x170] sm:$0xff] }
 0x70c   :  { %3784 = vmatpush.msrb.mxu1 %v3613_v62  ;;  %3744 = vmatpush.msrb.mxu3 %v3593_v57  ;;  %v3569_v62 = vld [vmem:[%s7003_s2 + $0x10] sm:$0xff]  ;;  %v6416_v57 = vpop.f32.mrf.mxu1 }
 0x70e   :  { %3785 = vmatpush.msrb.mxu1 %v3612_v10  ;;  %3745 = vmatpush.msrb.mxu3 %v3592_v12  ;;  %v3568_v10 = vld [vmem:[%s7003_s2 + $0x8] sm:$0xff] }
 0x710   :  { %3786 = vmatpush.msrb.mxu1 %v3611_v32  ;;  %3746 = vmatpush.msrb.mxu3 %v3591_v22  ;;  %v3616_v32 = vld [vmem:[%s7003_s2 + $0x188] sm:$0xff]  ;;  %v6432_v22 = vpop.permute.xlu2 %2921 }
 0x712   :  { %3787 = vmatpush.msrb.mxu1 %v3610_v27  ;;  %3747 = vmatpush.msrb.mxu3 %v3590_v60  ;;  %v3615_v27 = vld [vmem:[%s7003_s2 + $0x180] sm:$0xff] }
 0x713   :  { %4375 = vmatmul.msk.f32.gmra.mxu2 %vm317_vm0, %v5870_v39  ;;  %v3629_v39 = vld [vmem:[%s7003_s2 + $0x1f0] sm:$0xff] }
 0x714   :  { %3828 = vmatpush.msra.mxu2 %v3629_v39  ;;  %3788 = vmatpush.msrb.mxu1 %v3609_v53  ;;  %v3585_v39 = vld [vmem:[%s7003_s2 + $0x90] sm:$0xff] }
 0x715   :  { %3748 = vmatpush.msrb.mxu3 %v3589_v18 }
 0x716   :  { %3829 = vmatpush.msra.mxu2 %v3628_v26  ;;  %3789 = vmatpush.msrb.mxu1 %v3608_v50  ;;  %v6295_v40 = vpop.f32.mrf.mxu2  ;;  %v3584_v26 = vld [vmem:[%s7003_s2 + $0x88] sm:$0xff] }
 0x717   :  { %3749 = vmatpush.msrb.mxu3 %v3588_v49 }
 0x718   :  { %3830 = vmatpush.msra.mxu2 %v3627_v59  ;;  %3790 = vmatpush.msrb.mxu1 %v3607_v0  ;;  %v3567_v59 = vld [vmem:[%s7003_s2] sm:$0xff] }
 0x719   :  { %3750 = vmatpush.msrb.mxu3 %v3587_v58 }
 0x71a   :  { %3831 = vmatpush.msra.mxu2 %v3626_v16  ;;  %3791 = vmatpush.msrb.mxu1 %v3606_v24  ;;  %v6412_v16 = vpop.f32.mrf.mxu3  ;;  %v3009_v24 = vadd.f32 %v6264_v61, %v6432_v22 }
 0x71b   :  { %4376 = vmatmul.msk.f32.gmra.mxu2 %vm317_vm0, %v5885_v7  ;;  %v3580_v7 = vld [vmem:[%s7003_s2 + $0x68] sm:$0xff]  ;;  %3751 = vmatpush.msrb.mxu3 %v3586_v31 }
 0x71c   :  { %3697 = vmatpush.msra.mxu0 %v3580_v7  ;;  %3832 = vmatpush.msra.mxu2 %v3625_v8  ;;  %v3601_v7 = vld [vmem:[%s7003_s2 + $0x110] sm:$0xff] }
 0x71d   :  { %3792 = vmatpush.msrb.mxu1 %v3605_v30  ;;  %3752 = vmatpush.msrb.mxu3 %v3585_v39 }
 0x71e   :  { %3698 = vmatpush.msra.mxu0 %v3579_v36  ;;  %3833 = vmatpush.msra.mxu2 %v3624_v54  ;;  %v6327_v17 = vpop.f32.mrf.mxu2  ;;  %v3600_v36 = vld [vmem:[%s7003_s2 + $0x108] sm:$0xff] }
 0x71f   :  { %3793 = vmatpush.msrb.mxu1 %v3604_v4  ;;  %3753 = vmatpush.msrb.mxu3 %v3584_v26 }
 0x720   :  { %3699 = vmatpush.msra.mxu0 %v3578_v44  ;;  %3834 = vmatpush.msra.mxu2 %v3623_v14  ;;  %v3583_v44 = vld [vmem:[%s7003_s2 + $0x80] sm:$0xff] }
 0x721   :  { %3794 = vmatpush.msrb.mxu1 %v3603_v11  ;;  %3754 = vmatpush.msrb.mxu3 %v3583_v44 }
 0x722   :  { %3700 = vmatpush.msra.mxu0 %v3577_v15  ;;  %3835 = vmatpush.msra.mxu2 %v3622_v29  ;;  %v6414_v15 = vpop.f32.mrf.mxu0  ;;  %v6440_v29 = vpop.f32.mrf.mxu1 }
 0x723   :  { %3795 = vmatpush.msrb.mxu1 %v3602_v20 }
 0x724   :  { %3701 = vmatpush.msra.mxu0 %v3576_v23  ;;  %3836 = vmatpush.msra.mxu2 %v3621_v55  ;;  %v6422_v23 = vpop.f32.mrf.mxu3 }
 0x725   :  { %3796 = vmatpush.msrb.mxu1 %v3601_v7 }
 0x726   :  { %3702 = vmatpush.msra.mxu0 %v3575_v2  ;;  %3837 = vmatpush.msra.mxu2 %v3620_v34  ;;  %v6395_v63 = vpop.f32.mrf.mxu2 }
 0x727   :  { %3797 = vmatpush.msrb.mxu1 %v3600_v36 }
 0x728   :  { %3703 = vmatpush.msra.mxu0 %v3574_v35  ;;  %3838 = vmatpush.msra.mxu2 %v3619_v21 }
 0x729   :  { %3798 = vmatpush.msrb.mxu1 %v3599_v42  ;;  %v6478_v42 = vpop.permute.xlu2 %2931 }
 0x72a   :  { %3704 = vmatpush.msra.mxu0 %v3573_v51  ;;  %3839 = vmatpush.msra.mxu2 %v3618_v38  ;;  %v6434_v0 = vpop.f32.mrf.mxu0  ;;  %v3343_v51 = vmul.f32 0.1, %v3009_v24  ;;  %v6467_v39 = vpop.f32.mrf.mxu1 }
 0x72c   :  { %3705 = vmatpush.msra.mxu0 %v3572_v43  ;;  %3840 = vmatpush.msra.mxu2 %v3617_v13  ;;  %v6448_v30 = vpop.f32.mrf.mxu3  ;;  %v6450_v43 = vpop.permute.xlu0 %2926  ;;  %v3415_v34 = vmax.f32 %v3009_v24, %v3343_v51 }
 0x72d   :  { %v3056_v11 = vadd.f32 %v6341_v1, %v6450_v43  ;;  %v3100_v38 = vadd.f32 %v6304_v19, %v6450_v43  ;;  %v3144_v13 = vadd.f32 %v6327_v17, %v6450_v43 }
 0x72e   :  { %3706 = vmatpush.msra.mxu0 %v3571_v25  ;;  %3841 = vmatpush.msra.mxu2 %v3616_v32  ;;  %v6418_v53 = vpop.f32.mrf.mxu2 }
 0x72f   :  { %v3352_v32 = vmul.f32 0.1, %v3056_v11 }
 0x730   :  { %3707 = vmatpush.msra.mxu0 %v3570_v5  ;;  %3842 = vmatpush.msra.mxu2 %v3615_v27  ;;  %v3354_v27 = vmul.f32 0.1, %v3144_v13 }
 0x732   :  { %3708 = vmatpush.msra.mxu0 %v3569_v62  ;;  %v6458_v21 = vpop.f32.mrf.mxu0 }
 0x734   :  { %3709 = vmatpush.msra.mxu0 %v3568_v10  ;;  %v6480_v17 = vpop.f32.mrf.mxu3 }
 0x736   :  { %3710 = vmatpush.msra.mxu0 %v3567_v59  ;;  %v6446_v18 = vpop.f32.mrf.mxu2  ;;  %v3353_v59 = vmul.f32 0.1, %v3100_v38 }
 0x73a   :  { %v6489_v24 = vpop.f32.mrf.mxu0 }
 0x73e   :  { %v6476_v44 = vpop.f32.mrf.mxu2 }
 0x748   :  { %v6420_v8 = vpop.xlane.xlu1 %2683 }
 0x749   :  { %v2685_v12 = vsub.f32 %v5949_v28, %v6420_v8  ;;  %v2686_v50 = vsub.f32 %v5862_v9, %v6420_v8  ;;  %v2687_v54 = vsub.f32 %v5993_v45, %v6420_v8  ;;  %v2688_v2 = vsub.f32 %v6055_v46, %v6420_v8 }
 0x74a   :  { %v3053_v9 = vadd.f32 %v6300_v48, %v6432_v22  ;;  %v3097_v45 = vadd.f32 %v6272_v37, %v6432_v22  ;;  %v3141_v46 = vadd.f32 %v6295_v40, %v6432_v22  ;;  %v3012_v37 = vadd.f32 %v6302_v47, %v6450_v43 }
 0x74b   :  { %v2693_v14 = vmul.f32 1.442695, %v2685_v12  ;;  %v2695_v35 = vmul.f32 1.442695, %v2686_v50  ;;  %v2697_v60 = vmul.f32 1.442695, %v2687_v54  ;;  %v3015_v50 = vadd.f32 %v6358_v41, %v6478_v42 }
 0x74c   :  { %v2699_v28 = vmul.f32 1.442695, %v2688_v2  ;;  %v3344_v61 = vmul.f32 0.1, %v3053_v9  ;;  %v3345_v55 = vmul.f32 0.1, %v3097_v45  ;;  %v3424_v54 = vmax.f32 %v3056_v11, %v3352_v32 }
 0x74d   :  { %4399 = vpow2.f32 %v2693_v14  ;;  %v3346_v49 = vmul.f32 0.1, %v3141_v46  ;;  %v3351_v26 = vmul.f32 0.1, %v3012_v37  ;;  %v3059_v2 = vadd.f32 %v6412_v16, %v6478_v42  ;;  %v6495_v16 = vpop.f32.mrf.mxu1  ;;  %v3645_v11 = vld [vmem:[%s7003_s2 + $0x270] sm:$0xff] }
 0x74e   :  { %4401 = vpow2.f32 %v2695_v35  ;;  %v3416_v58 = vmax.f32 %v3053_v9, %v3344_v61  ;;  %v3417_v20 = vmax.f32 %v3097_v45, %v3345_v55  ;;  %v3425_v14 = vmax.f32 %v3100_v38, %v3353_v59  ;;  %v6498_v55 = vpop.permute.xlu0 %2936  ;;  %v3677_v38 = vld [vmem:[%s7003_s2 + $0x370] sm:$0xff] }
 0x74f   :  { %4403 = vpow2.f32 %v2697_v60  ;;  %v3418_v7 = vmax.f32 %v3141_v46, %v3346_v49  ;;  %v3423_v12 = vmax.f32 %v3012_v37, %v3351_v26  ;;  %v3103_v35 = vadd.f32 %v6372_v3, %v6478_v42  ;;  %v3662_v49 = vld [vmem:[%s7003_s2 + $0x2f8] sm:$0xff]  ;;  %v3644_v26 = vld [vmem:[%s7003_s2 + $0x268] sm:$0xff] }
 0x750   :  { %4405 = vpow2.f32 %v2699_v28  ;;  %v3426_v28 = vmax.f32 %v3144_v13, %v3354_v27  ;;  %v3147_v9 = vadd.f32 %v6395_v63, %v6478_v42  ;;  %v3359_v46 = vmul.f32 0.1, %v3015_v50  ;;  %v3646_v63 = vld [vmem:[%s7003_s2 + $0x278] sm:$0xff]  ;;  %3915 = vmatpush.msra.mxu3 %v3662_v49 }
 0x751   :  { %v3360_v51 = vmul.f32 0.1, %v3059_v2  ;;  %v3361_v61 = vmul.f32 0.1, %v3103_v35  ;;  %v6511_v37 = vadd.f32 %v6414_v15, %v6498_v55  ;;  %3871 = vmatpush.msrb.mxu0 %v3646_v63  ;;  %v6526_v15 = vadd.f32 %v6422_v23, %v6498_v55  ;;  %v3674_v63 = vld [vmem:[%s7003_s2 + $0x358] sm:$0xff] }
 0x752   :  { %v3690_v49 = vld [vmem:[%s7003_s2 + $0x3d8] sm:$0xff] }
 0x753   :  { %v4400_v48 = vpop.eup %4399  ;;  %v3433_v13 = vmax.f32 %v3103_v35, %v3361_v61  ;;  %3872 = vmatpush.msrb.mxu0 %v3645_v11  ;;  %v3367_v27 = vmul.f32 0.1, %v6511_v37  ;;  %v3643_v35 = vld [vmem:[%s7003_s2 + $0x260] sm:$0xff] }
 0x754   :  { %v4402_v4 = vpop.eup %4401  ;;  %v6454_v25 = vperm.slane %v4400_v48, 0  ;;  %v3362_v48 = vmul.f32 0.1, %v3147_v9 }
 0x755   :  { %v4404_v40 = vpop.eup %4403  ;;  %v6460_v5 = vperm.slane %v4402_v4, 0  ;;  %v3678_v4 = vld [vmem:[%s7003_s2 + $0x378] sm:$0xff]  ;;  %3873 = vmatpush.msrb.mxu0 %v3644_v26  ;;  %v3439_v61 = vmax.f32 %v6511_v37, %v3367_v27 }
 0x756   :  { %v4406_v31 = vpop.eup %4405  ;;  %v6464_v62 = vperm.slane %v4404_v40, 0  ;;  %v3495_v47 = vmul.f32 %v6454_v25, %v3415_v34  ;;  %v3503_v60 = vmul.f32 %v6454_v25, %v3423_v12  ;;  %v3431_v34 = vmax.f32 %v3015_v50, %v3359_v46  ;;  %v6513_v40 = vpop.f32.mrf.mxu2  ;;  %3959 = vmatpush.msra.mxu1 %v3678_v4  ;;  %v3676_v50 = vld [vmem:[%s7003_s2 + $0x368] sm:$0xff] }
 0x757   :  { %v6471_v1 = vperm.slane %v4406_v31, 0  ;;  %v3496_v10 = vmul.f32 %v6460_v5, %v3416_v58  ;;  %v3504_v45 = vmul.f32 %v6460_v5, %v3424_v54  ;;  %v3694_v58 = vld [vmem:[%s7003_s2 + $0x3f8] sm:$0xff]  ;;  %v3661_v31 = vld [vmem:[%s7003_s2 + $0x2f0] sm:$0xff]  ;;  %v3434_v32 = vmax.f32 %v3147_v9, %v3362_v48  ;;  %v6559_v54 = vpop.f32.mrf.mxu0  ;;  %v6572_v9 = vpop.permute.xlu2 %2941  ;;  %3874 = vmatpush.msrb.mxu0 %v3643_v35 }
 0x758   :  { %3711 = vmatmul.f32.vlgmr.msra.gmra.mxu0 %v3495_v47  ;;  %v3497_v36 = vmul.f32 %v6464_v62, %v3417_v20  ;;  %v3505_v41 = vmul.f32 %v6464_v62, %v3425_v14  ;;  %v3432_v20 = vmax.f32 %v3059_v2, %v3360_v51  ;;  %4003 = vmatpush.msrb.mxu2 %v3694_v58  ;;  %v3693_v47 = vld [vmem:[%s7003_s2 + $0x3f0] sm:$0xff]  ;;  %v3642_v51 = vld [vmem:[%s7003_s2 + $0x258] sm:$0xff]  ;;  %v6637_v27 = vpop.permute.xlu0 %2946 }
 0x759   :  { %3755 = vmatmul.f32.vlgmr.msrb.gmra.mxu3 %v3496_v10  ;;  %v3498_v19 = vmul.f32 %v6471_v1, %v3418_v7  ;;  %v3506_v3 = vmul.f32 %v6471_v1, %v3426_v28  ;;  %v6534_v7 = vpop.f32.mrf.mxu3  ;;  %v6538_v10 = vadd.f32 %v6416_v57, %v6498_v55  ;;  %v3511_v23 = vmul.f32 %v6454_v25, %v3431_v34  ;;  %v3692_v57 = vld [vmem:[%s7003_s2 + $0x3e8] sm:$0xff]  ;;  %v3675_v28 = vld [vmem:[%s7003_s2 + $0x360] sm:$0xff] }
 0x75a   :  { %3799 = vmatmul.f32.vlgmr.msrb.gmra.mxu1 %v3497_v36  ;;  %3916 = vmatpush.msra.mxu3 %v3661_v31  ;;  %v3660_v36 = vld [vmem:[%s7003_s2 + $0x2e8] sm:$0xff]  ;;  %v3512_v59 = vmul.f32 %v6460_v5, %v3432_v20  ;;  %v3513_v12 = vmul.f32 %v6464_v62, %v3433_v13  ;;  %v3514_v2 = vmul.f32 %v6471_v1, %v3434_v32 }
 0x75b   :  { %3843 = vmatmul.f32.vlgmr.msra.gmra.mxu2 %v3498_v19  ;;  %v3150_v19 = vadd.f32 %v6418_v53, %v6498_v55  ;;  %3960 = vmatpush.msra.mxu1 %v3677_v38  ;;  %v3368_v53 = vmul.f32 0.1, %v6526_v15  ;;  %v3369_v14 = vmul.f32 0.1, %v6538_v10  ;;  %v3021_v48 = vadd.f32 %v6434_v0, %v6572_v9  ;;  %v3657_v0 = vld [vmem:[%s7003_s2 + $0x2d0] sm:$0xff]  ;;  %v3656_v32 = vld [vmem:[%s7003_s2 + $0x2c8] sm:$0xff] }
 0x75c   :  { %4004 = vmatpush.msrb.mxu2 %v3693_v47  ;;  %3917 = vmatpush.msra.mxu3 %v3660_v36  ;;  %v3065_v34 = vadd.f32 %v6448_v30, %v6572_v9  ;;  %v6603_v58 = vadd.f32 %v6440_v29, %v6572_v9  ;;  %v3519_v31 = vmul.f32 %v6454_v25, %v3439_v61  ;;  %v3641_v30 = vld [vmem:[%s7003_s2 + $0x250] sm:$0xff]  ;;  %v3640_v36 = vld [vmem:[%s7003_s2 + $0x248] sm:$0xff] }
 0x75d   :  { %v3370_v46 = vmul.f32 0.1, %v3150_v19  ;;  %3961 = vmatpush.msra.mxu1 %v3676_v50  ;;  %v3440_v4 = vmax.f32 %v6526_v15, %v3368_v53  ;;  %v3441_v37 = vmax.f32 %v6538_v10, %v3369_v14  ;;  %3875 = vmatpush.msrb.mxu0 %v3642_v51  ;;  %v3153_v15 = vadd.f32 %v6446_v18, %v6572_v9  ;;  %v3689_v29 = vld [vmem:[%s7003_s2 + $0x3d0] sm:$0xff]  ;;  %v3639_v53 = vld [vmem:[%s7003_s2 + $0x240] sm:$0xff] }
 0x75e   :  { %4005 = vmatpush.msrb.mxu2 %v3692_v57  ;;  %v6605_v11 = vpop.f32.mrf.mxu2  ;;  %v3375_v13 = vmul.f32 0.1, %v3021_v48  ;;  %v3376_v18 = vmul.f32 0.1, %v3065_v34  ;;  %v3688_v57 = vld [vmem:[%s7003_s2 + $0x3c8] sm:$0xff]  ;;  %v3024_v35 = vadd.f32 %v6458_v21, %v6637_v27  ;;  %v3654_v21 = vld [vmem:[%s7003_s2 + $0x2b8] sm:$0xff]  ;;  %v6667_v61 = vadd.f32 %v6467_v39, %v6637_v27 }
 0x75f   :  { %3962 = vmatpush.msra.mxu1 %v3675_v28  ;;  %v3442_v20 = vmax.f32 %v3150_v19, %v3370_v46  ;;  %v3520_v38 = vmul.f32 %v6460_v5, %v3440_v4  ;;  %v3521_v10 = vmul.f32 %v6464_v62, %v3441_v37  ;;  %3876 = vmatpush.msrb.mxu0 %v3641_v30  ;;  %v3377_v19 = vmul.f32 0.1, %v6603_v58  ;;  %v3687_v28 = vld [vmem:[%s7003_s2 + $0x3c0] sm:$0xff]  ;;  %v3686_v39 = vld [vmem:[%s7003_s2 + $0x3b8] sm:$0xff]  ;;  %v3637_v30 = vld [vmem:[%s7003_s2 + $0x230] sm:$0xff] }
 0x760   :  { %3714 = vmatmul.f32.gmra.mxu0 %v3503_v60  ;;  %v3659_v60 = vld [vmem:[%s7003_s2 + $0x2e0] sm:$0xff]  ;;  %v3378_v50 = vmul.f32 0.1, %v3153_v15  ;;  %v3447_v14 = vmax.f32 %v3021_v48, %v3375_v13  ;;  %v3448_v46 = vmax.f32 %v3065_v34, %v3376_v18  ;;  %v3383_v34 = vmul.f32 0.1, %v3024_v35  ;;  %v3685_v13 = vld [vmem:[%s7003_s2 + $0x3b0] sm:$0xff] }
 0x761   :  { %3758 = vmatmul.f32.gmra.mxu3 %v3504_v45  ;;  %v6574_v45 = vpop.f32.mrf.mxu1  ;;  %3963 = vmatpush.msra.mxu1 %v3674_v63  ;;  %v6617_v47 = vpop.f32.mrf.mxu3  ;;  %v3522_v26 = vmul.f32 %v6471_v1, %v3442_v20  ;;  %v3653_v20 = vld [vmem:[%s7003_s2 + $0x2b0] sm:$0xff]  ;;  %v3636_v18 = vld [vmem:[%s7003_s2 + $0x228] sm:$0xff] }
 0x762   :  { %3802 = vmatmul.f32.gmra.mxu1 %v3505_v41  ;;  %v3691_v41 = vld [vmem:[%s7003_s2 + $0x3e0] sm:$0xff]  ;;  %3918 = vmatpush.msra.mxu3 %v3659_v60  ;;  %v3527_v48 = vmul.f32 %v6454_v25, %v3447_v14  ;;  %v3450_v63 = vmax.f32 %v3153_v15, %v3378_v50  ;;  %v3528_v4 = vmul.f32 %v6460_v5, %v3448_v46 }
 0x763   :  { %3846 = vmatmul.f32.gmra.mxu2 %v3506_v3  ;;  %v3658_v3 = vld [vmem:[%s7003_s2 + $0x2d8] sm:$0xff]  ;;  %3877 = vmatpush.msrb.mxu0 %v3640_v36  ;;  %v3671_v60 = vld [vmem:[%s7003_s2 + $0x340] sm:$0xff]  ;;  %v3455_v36 = vmax.f32 %v3024_v35, %v3383_v34 }
 0x764   :  { %4006 = vmatpush.msrb.mxu2 %v3691_v41  ;;  %3919 = vmatpush.msra.mxu3 %v3658_v3  ;;  %v6657_v41 = vadd.f32 %v6480_v17, %v6637_v27  ;;  %v3449_v3 = vmax.f32 %v6603_v58, %v3377_v19  ;;  %v3638_v17 = vld [vmem:[%s7003_s2 + $0x238] sm:$0xff]  ;;  %v3668_v19 = vld [vmem:[%s7003_s2 + $0x328] sm:$0xff] }
 0x765   :  { %3878 = vmatpush.msrb.mxu0 %v3639_v53  ;;  %v3535_v35 = vmul.f32 %v6454_v25, %v3455_v36 }
 0x766   :  { %4007 = vmatpush.msrb.mxu2 %v3690_v49  ;;  %3920 = vmatpush.msra.mxu3 %v3657_v0  ;;  %v6675_v49 = vadd.f32 %v6476_v44, %v6637_v27  ;;  %v6681_v0 = vpop.f32.mrf.mxu2  ;;  %v3529_v37 = vmul.f32 %v6464_v62, %v3449_v3  ;;  %v3670_v44 = vld [vmem:[%s7003_s2 + $0x338] sm:$0xff]  ;;  %v3384_v58 = vmul.f32 0.1, %v6657_v41 }
 0x767   :  { %3879 = vmatpush.msrb.mxu0 %v3638_v17 }
 0x768   :  { %3717 = vmatmul.f32.gmra.mxu0 %v3511_v23  ;;  %v3673_v23 = vld [vmem:[%s7003_s2 + $0x350] sm:$0xff]  ;;  %4008 = vmatpush.msrb.mxu2 %v3689_v29 }
 0x769   :  { %3761 = vmatmul.f32.gmra.mxu3 %v3512_v59  ;;  %v3672_v59 = vld [vmem:[%s7003_s2 + $0x348] sm:$0xff]  ;;  %3964 = vmatpush.msra.mxu1 %v3673_v23  ;;  %v6659_v51 = vpop.f32.mrf.mxu1  ;;  %v6695_v15 = vpop.f32.mrf.mxu3  ;;  %v3669_v29 = vld [vmem:[%s7003_s2 + $0x330] sm:$0xff]  ;;  %v3386_v23 = vmul.f32 0.1, %v6675_v49 }
 0x76a   :  { %3805 = vmatmul.f32.gmra.mxu1 %v3513_v12  ;;  %v6639_v12 = vpop.f32.mrf.mxu0  ;;  %3921 = vmatpush.msra.mxu3 %v3656_v32 }
 0x76b   :  { %3849 = vmatmul.f32.gmra.mxu2 %v3514_v2  ;;  %v3655_v2 = vld [vmem:[%s7003_s2 + $0x2c0] sm:$0xff]  ;;  %3965 = vmatpush.msra.mxu1 %v3672_v59  ;;  %v3684_v59 = vld [vmem:[%s7003_s2 + $0x3a8] sm:$0xff] }
 0x76c   :  { %4009 = vmatpush.msrb.mxu2 %v3688_v57  ;;  %3922 = vmatpush.msra.mxu3 %v3655_v2  ;;  %v3456_v57 = vmax.f32 %v6657_v41, %v3384_v58 }
 0x76d   :  { %3966 = vmatpush.msra.mxu1 %v3671_v60  ;;  %3880 = vmatpush.msrb.mxu0 %v3637_v30  ;;  %v3633_v30 = vld [vmem:[%s7003_s2 + $0x210] sm:$0xff] }
 0x76e   :  { %4010 = vmatpush.msrb.mxu2 %v3687_v28  ;;  %3923 = vmatpush.msra.mxu3 %v3654_v21  ;;  %v3458_v28 = vmax.f32 %v6675_v49, %v3386_v23  ;;  %v3536_v41 = vmul.f32 %v6460_v5, %v3456_v57  ;;  %v3650_v49 = vld [vmem:[%s7003_s2 + $0x298] sm:$0xff]  ;;  %v6771_v34 = vpop.f32.mrf.mxu2 }
 0x76f   :  { %3967 = vmatpush.msra.mxu1 %v3670_v44  ;;  %3881 = vmatpush.msrb.mxu0 %v3636_v18  ;;  %v3682_v44 = vld [vmem:[%s7003_s2 + $0x398] sm:$0xff] }
 0x770   :  { %3720 = vmatmul.f32.gmra.mxu0 %v3519_v31  ;;  %v3530_v31 = vmul.f32 %v6471_v1, %v3450_v63  ;;  %4011 = vmatpush.msrb.mxu2 %v3686_v39  ;;  %v3538_v17 = vmul.f32 %v6471_v1, %v3458_v28  ;;  %v3634_v63 = vld [vmem:[%s7003_s2 + $0x218] sm:$0xff]  ;;  %v2689_v28 = vsub.f32 %v6128_v56, %v6420_v8  ;;  %v3663_v56 = vld [vmem:[%s7003_s2 + $0x300] sm:$0xff] }
 0x771   :  { %3764 = vmatmul.f32.gmra.mxu3 %v3520_v38  ;;  %v3385_v38 = vmul.f32 0.1, %v6667_v61  ;;  %3968 = vmatpush.msra.mxu1 %v3669_v29  ;;  %v6742_v60 = vpop.f32.mrf.mxu1 }
 0x772   :  { %3808 = vmatmul.f32.gmra.mxu1 %v3521_v10  ;;  %v6704_v10 = vpop.permute.xlu2 %2951  ;;  %3924 = vmatpush.msra.mxu3 %v3653_v20  ;;  %v6728_v53 = vpop.f32.mrf.mxu0  ;;  %v3649_v20 = vld [vmem:[%s7003_s2 + $0x290] sm:$0xff] }
 0x773   :  { %3852 = vmatmul.f32.gmra.mxu2 %v3522_v26  ;;  %v3652_v26 = vld [vmem:[%s7003_s2 + $0x2a8] sm:$0xff]  ;;  %v6715_v32 = vadd.f32 %v6489_v24, %v6704_v10  ;;  %v6726_v50 = vadd.f32 %v6534_v7, %v6704_v10  ;;  %v3651_v24 = vld [vmem:[%s7003_s2 + $0x2a0] sm:$0xff]  ;;  %v3457_v2 = vmax.f32 %v6667_v61, %v3385_v38  ;;  %v6736_v14 = vadd.f32 %v6495_v16, %v6704_v10 }
 0x774   :  { %4012 = vmatpush.msrb.mxu2 %v3685_v13  ;;  %3925 = vmatpush.msra.mxu3 %v3652_v26  ;;  %v3635_v7 = vld [vmem:[%s7003_s2 + $0x220] sm:$0xff]  ;;  %v6747_v46 = vadd.f32 %v6513_v40, %v6704_v10  ;;  %v6758_v40 = vpop.permute.xlu0 %2956  ;;  %v3681_v13 = vld [vmem:[%s7003_s2 + $0x390] sm:$0xff]  ;;  %v3648_v26 = vld [vmem:[%s7003_s2 + $0x288] sm:$0xff] }
 0x775   :  { %3969 = vmatpush.msra.mxu1 %v3668_v19  ;;  %v3683_v16 = vld [vmem:[%s7003_s2 + $0x3a0] sm:$0xff]  ;;  %v3391_v21 = vmul.f32 0.1, %v6715_v32  ;;  %v3537_v3 = vmul.f32 %v6464_v62, %v3457_v2  ;;  %3882 = vmatpush.msrb.mxu0 %v3635_v7  ;;  %v3393_v39 = vmul.f32 0.1, %v6736_v14  ;;  %v6781_v58 = vadd.f32 %v6617_v47, %v6758_v40  ;;  %v3665_v47 = vld [vmem:[%s7003_s2 + $0x310] sm:$0xff] }
 0x776   :  { %4013 = vmatpush.msrb.mxu2 %v3684_v59  ;;  %3926 = vmatpush.msra.mxu3 %v3651_v24  ;;  %v3667_v61 = vld [vmem:[%s7003_s2 + $0x320] sm:$0xff]  ;;  %v6793_v29 = vadd.f32 %v6559_v54, %v6758_v40  ;;  %v6804_v18 = vadd.f32 %v6574_v45, %v6758_v40  ;;  %v6808_v54 = vadd.f32 %v6605_v11, %v6758_v40  ;;  %v3632_v45 = vld [vmem:[%s7003_s2 + $0x208] sm:$0xff] }
 0x777   :  { %3970 = vmatpush.msra.mxu1 %v3667_v61  ;;  %v3463_v38 = vmax.f32 %v6715_v32, %v3391_v21  ;;  %3883 = vmatpush.msrb.mxu0 %v3634_v63  ;;  %v3465_v36 = vmax.f32 %v6736_v14, %v3393_v39  ;;  %v3400_v19 = vmul.f32 0.1, %v6781_v58  ;;  %v3664_v14 = vld [vmem:[%s7003_s2 + $0x308] sm:$0xff]  ;;  %v3647_v21 = vld [vmem:[%s7003_s2 + $0x280] sm:$0xff]  ;;  %v2691_v63 = vsub.f32 %v6143_v33, %v6420_v8 }
 0x778   :  { %3723 = vmatmul.f32.gmra.mxu0 %v3527_v48  ;;  %v3392_v48 = vmul.f32 0.1, %v6726_v50  ;;  %4014 = vmatpush.msrb.mxu2 %v3683_v16  ;;  %v3399_v24 = vmul.f32 0.1, %v6793_v29  ;;  %v3631_v16 = vld [vmem:[%s7003_s2 + $0x200] sm:$0xff] }
 0x779   :  { %3767 = vmatmul.f32.gmra.mxu3 %v3528_v4  ;;  %v6768_v4 = vpop.f32.mrf.mxu3  ;;  %v3543_v32 = vmul.f32 %v6454_v25, %v3463_v38  ;;  %3884 = vmatpush.msrb.mxu0 %v3633_v30  ;;  %v3545_v2 = vmul.f32 %v6464_v62, %v3465_v36  ;;  %v6832_v7 = vpop.f32.mrf.mxu1  ;;  %v3679_v61 = vld [vmem:[%s7003_s2 + $0x380] sm:$0xff] }
 0x77a   :  { %3811 = vmatmul.f32.gmra.mxu1 %v3529_v37  ;;  %v3666_v37 = vld [vmem:[%s7003_s2 + $0x318] sm:$0xff]  ;;  %3927 = vmatpush.msra.mxu3 %v3650_v49  ;;  %v3464_v23 = vmax.f32 %v6726_v50, %v3392_v48  ;;  %v6819_v11 = vpop.f32.mrf.mxu0  ;;  %v3680_v50 = vld [vmem:[%s7003_s2 + $0x388] sm:$0xff]  ;;  %v6852_v48 = vpop.permute.xlu2 %2961  ;;  %v3471_v39 = vmax.f32 %v6793_v29, %v3399_v24  ;;  %v2705_v29 = vmul.f32 1.442695, %v2691_v63  ;;  %s4486_s2 = smov [#allocation5]  }
 0x77b   :  { %3855 = vmatmul.f32.gmra.mxu2 %v3530_v31  ;;  %v3394_v31 = vmul.f32 0.1, %v6747_v46  ;;  %3971 = vmatpush.msra.mxu1 %v3666_v37  ;;  %v3033_v37 = vadd.f32 %v6639_v12, %v6852_v48  ;;  %v3165_v30 = vadd.f32 %v6681_v0, %v6852_v48  ;;  %v2692_v12 = vsub.f32 %v6158_v6, %v6420_v8  ;;  %s4101_s22 = sshll.u32 %s4486_s2, 4  ;;  %s4102_s22 = int_to_ptr.vmem [resolvable:$true] %s4101_s22 }
 0x77c   :  { %4015 = vmatpush.msrb.mxu2 %v3682_v44  ;;  %3928 = vmatpush.msra.mxu3 %v3649_v20  ;;  %v3544_v57 = vmul.f32 %v6460_v5, %v3464_v23  ;;  %v6864_v44 = vpop.f32.mrf.mxu2  ;;  %v3551_v38 = vmul.f32 %v6454_v25, %v3471_v39 }
 0x77d   :  { %v3466_v59 = vmax.f32 %v6747_v46, %v3394_v31  ;;  %3972 = vmatpush.msra.mxu1 %v3665_v47  ;;  %v3402_v46 = vmul.f32 0.1, %v6808_v54  ;;  %3885 = vmatpush.msrb.mxu0 %v3632_v45  ;;  %v2701_v31 = vmul.f32 1.442695, %v2689_v28  ;;  %v2707_v6 = vmul.f32 1.442695, %v2692_v12 }
 0x77e   :  { %4016 = vmatpush.msrb.mxu2 %v3681_v13  ;;  %3929 = vmatpush.msra.mxu3 %v3648_v26  ;;  %v3407_v13 = vmul.f32 0.1, %v3033_v37 }
 0x77f   :  { %3973 = vmatpush.msra.mxu1 %v3664_v14  ;;  %3886 = vmatpush.msrb.mxu0 %v3631_v16  ;;  %v3474_v33 = vmax.f32 %v6808_v54, %v3402_v46  ;;  %4407 = vpow2.f32 %v2701_v31  ;;  %v3410_v54 = vmul.f32 0.1, %v3165_v30  ;;  %v3276_v31 = vadd.f32 %v6832_v7, %v6450_v43 }
 0x780   :  { %3726 = vmatmul.f32.gmra.mxu0 %v3535_v35  ;;  %v3401_v35 = vmul.f32 0.1, %v6804_v18  ;;  %4017 = vmatpush.msrb.mxu2 %v3680_v50  ;;  %v3479_v36 = vmax.f32 %v3033_v37, %v3407_v13  ;;  %v3320_v37 = vadd.f32 %v6864_v44, %v6450_v43 }
 0x781   :  { %3770 = vmatmul.f32.gmra.mxu3 %v3536_v41  ;;  %v3546_v41 = vmul.f32 %v6471_v1, %v3466_v59  ;;  %v6859_v49 = vpop.f32.mrf.mxu3  ;;  %3974 = vmatpush.msra.mxu1 %v3663_v56  ;;  %v3482_v59 = vmax.f32 %v3165_v30, %v3410_v54 }
 0x782   :  { %3814 = vmatmul.f32.gmra.mxu1 %v3537_v3  ;;  %v2690_v3 = vsub.f32 %v6134_v52, %v6420_v8  ;;  %v3077_v52 = vadd.f32 %v6695_v15, %v6852_v48  ;;  %3930 = vmatpush.msra.mxu3 %v3647_v21  ;;  %v3121_v15 = vadd.f32 %v6659_v51, %v6852_v48  ;;  %v6877_v0 = vpop.f32.mrf.mxu0  ;;  %v6880_v8 = vpop.f32.mrf.mxu1  ;;  %v3358_v44 = vmul.f32 0.1, %v3320_v37 }
 0x783   :  { %3858 = vmatmul.f32.gmra.mxu2 %v3538_v17  ;;  %v3472_v17 = vmax.f32 %v6781_v58, %v3400_v19  ;;  %v3473_v58 = vmax.f32 %v6804_v18, %v3401_v35  ;;  %v3554_v51 = vmul.f32 %v6471_v1, %v3474_v33  ;;  %v3229_v19 = vadd.f32 %v6768_v4, %v6432_v22 }
 0x784   :  { %4018 = vmatpush.msrb.mxu2 %v3679_v61  ;;  %v2703_v20 = vmul.f32 1.442695, %v2690_v3  ;;  %v3408_v18 = vmul.f32 0.1, %v3077_v52  ;;  %v3409_v26 = vmul.f32 0.1, %v3121_v15  ;;  %v3322_v14 = vpop.f32.mrf.mxu2  ;;  %v3559_v35 = vmul.f32 %v6454_v25, %v3479_v36 }
 0x785   :  { %v3552_v47 = vmul.f32 %v6460_v5, %v3472_v17  ;;  %v3553_v23 = vmul.f32 %v6464_v62, %v3473_v58  ;;  %v4408_v28 = vpop.eup %4407  ;;  %v3348_v21 = vmul.f32 0.1, %v3229_v19  ;;  %v3562_v3 = vmul.f32 %v6471_v1, %v3482_v59 }
 0x786   :  { %4409 = vpow2.f32 %v2703_v20  ;;  %v3480_v45 = vmax.f32 %v3077_v52, %v3408_v18  ;;  %v3481_v24 = vmax.f32 %v3121_v15, %v3409_v26  ;;  %v3188_v17 = vadd.f32 %v6819_v11, %v6450_v43 }
 0x787   :  { %4411 = vpow2.f32 %v2705_v29  ;;  %v3420_v63 = vmax.f32 %v3229_v19, %v3348_v21  ;;  %v3232_v52 = vadd.f32 %v6859_v49, %v6450_v43  ;;  %v3191_v7 = vadd.f32 %v6877_v0, %v6478_v42 }
 0x788   :  { %3729 = vmatmul.f32.gmra.mxu0 %v3543_v32  ;;  %v3185_v32 = vadd.f32 %v6728_v53, %v6432_v22  ;;  %4413 = vpow2.f32 %v2707_v6  ;;  %v3560_v53 = vmul.f32 %v6460_v5, %v3480_v45  ;;  %v3561_v4 = vmul.f32 %v6464_v62, %v3481_v24 }
 0x789   :  { %3773 = vmatmul.f32.gmra.mxu3 %v3544_v57  ;;  %v3317_v57 = vadd.f32 %v6771_v34, %v6432_v22  ;;  %v3234_v50 = vpop.f32.mrf.mxu3  ;;  %v3355_v12 = vmul.f32 0.1, %v3188_v17  ;;  %v3430_v54 = vmax.f32 %v3320_v37, %v3358_v44  ;;  %v3279_v6 = vadd.f32 %v6880_v8, %v6478_v42 }
 0x78a   :  { %3817 = vmatmul.f32.gmra.mxu1 %v3545_v2  ;;  %v3273_v2 = vadd.f32 %v6742_v60, %v6432_v22  ;;  %v6894_v22 = vperm.slane %v4408_v28, 0  ;;  %v3193_v60 = vpop.f32.mrf.mxu0  ;;  %v3281_v1 = vpop.f32.mrf.mxu1  ;;  %v3363_v19 = vmul.f32 0.1, %v3191_v7 }
 0x78b   :  { %3861 = vmatmul.f32.gmra.mxu2 %v3546_v41  ;;  %v3347_v41 = vmul.f32 0.1, %v3185_v32  ;;  %v3350_v34 = vmul.f32 0.1, %v3317_v57  ;;  %v3427_v43 = vmax.f32 %v3188_v17, %v3355_v12  ;;  %v3194_v8 = vadd.f32 %v3193_v60, %v6498_v55 }
 0x78c   :  { %v4410_v46 = vpop.eup %4409  ;;  %v3349_v56 = vmul.f32 0.1, %v3273_v2  ;;  %v3325_v20 = vpop.f32.mrf.mxu2 }
 0x78d   :  { %v4412_v16 = vpop.eup %4411  ;;  %v6896_v25 = vperm.slane %v4410_v46, 0  ;;  %v3419_v61 = vmax.f32 %v3185_v32, %v3347_v41  ;;  %v3422_v39 = vmax.f32 %v3317_v57, %v3350_v34  ;;  %v3507_v36 = vmul.f32 %v6894_v22, %v3427_v43 }
 0x78e   :  { %v4414_v5 = vpop.eup %4413  ;;  %v6900_v62 = vperm.slane %v4412_v16, 0  ;;  %v3421_v58 = vmax.f32 %v3273_v2, %v3349_v56  ;;  %v3365_v2 = vmul.f32 0.1, %v3279_v6  ;;  %v3326_v46 = vadd.f32 %v3325_v20, %v6498_v55 }
 0x78f   :  { %v3499_v33 = vmul.f32 %v6894_v22, %v3419_v61  ;;  %v6909_v30 = vperm.slane %v4414_v5, 0  ;;  %v3500_v11 = vmul.f32 %v6896_v25, %v3420_v63 }
 0x790   :  { %3732 = vmatmul.f32.gmra.mxu0 %v3551_v38  ;;  %v3501_v49 = vmul.f32 %v6900_v62, %v3421_v58  ;;  %v3356_v38 = vmul.f32 0.1, %v3232_v52  ;;  %v3437_v41 = vmax.f32 %v3279_v6, %v3365_v2  ;;  %v3374_v61 = vmul.f32 0.1, %v3326_v46 }
 0x791   :  { %3776 = vmatmul.f32.gmra.mxu3 %v3552_v47  ;;  %v3237_v15 = vpop.f32.mrf.mxu3  ;;  %v3502_v29 = vmul.f32 %v6909_v30, %v3422_v39  ;;  %v3357_v47 = vmul.f32 0.1, %v3276_v31 }
 0x792   :  { %3820 = vmatmul.f32.gmra.mxu1 %v3553_v23  ;;  %v3428_v13 = vmax.f32 %v3232_v52, %v3356_v38  ;;  %v3235_v23 = vadd.f32 %v3234_v50, %v6478_v42  ;;  %v3196_v18 = vpop.f32.mrf.mxu0  ;;  %v3284_v32 = vpop.f32.mrf.mxu1  ;;  %v3510_v50 = vmul.f32 %v6909_v30, %v3430_v54  ;;  %v3238_v28 = vadd.f32 %v3237_v15, %v6498_v55 }
 0x793   :  { %3864 = vmatmul.f32.gmra.mxu2 %v3554_v51  ;;  %v3323_v51 = vadd.f32 %v3322_v14, %v6478_v42  ;;  %v3429_v26 = vmax.f32 %v3276_v31, %v3357_v47  ;;  %v3435_v42 = vmax.f32 %v3191_v7, %v3363_v19  ;;  %v3517_v56 = vmul.f32 %v6900_v62, %v3437_v41 }
 0x794   :  { %v3508_v45 = vmul.f32 %v6896_v25, %v3428_v13  ;;  %v3364_v59 = vmul.f32 0.1, %v3235_v23  ;;  %v3328_v14 = vpop.f32.mrf.mxu2  ;;  %v3372_v5 = vmul.f32 0.1, %v3238_v28  ;;  %v3446_v31 = vmax.f32 %v3326_v46, %v3374_v61 }
 0x795   :  { %v3509_v0 = vmul.f32 %v6900_v62, %v3429_v26  ;;  %v3366_v57 = vmul.f32 0.1, %v3323_v51  ;;  %v3515_v16 = vmul.f32 %v6894_v22, %v3435_v42  ;;  %v3285_v15 = vadd.f32 %v3284_v32, %v6572_v9 }
 0x796   :  { %v3444_v37 = vmax.f32 %v3238_v28, %v3372_v5  ;;  %v3526_v43 = vmul.f32 %v6909_v30, %v3446_v31 }
 0x797   :  { %v3381_v7 = vmul.f32 0.1, %v3285_v15 }
 0x798   :  { %3735 = vmatmul.f32.gmra.mxu0 %v3559_v35  ;;  %v3436_v35 = vmax.f32 %v3235_v23, %v3364_v59  ;;  %v3524_v20 = vmul.f32 %v6896_v25, %v3444_v37 }
 0x799   :  { %3779 = vmatmul.f32.gmra.mxu3 %v3560_v53  ;;  %v3240_v24 = vpop.f32.mrf.mxu3  ;;  %v3438_v53 = vmax.f32 %v3323_v51, %v3366_v57  ;;  %v3453_v32 = vmax.f32 %v3285_v15, %v3381_v7 }
 0x79a   :  { %3823 = vmatmul.f32.gmra.mxu1 %v3561_v4  ;;  %v3282_v4 = vadd.f32 %v3281_v1, %v6498_v55  ;;  %v3199_v21 = vpop.f32.mrf.mxu0  ;;  %v3516_v34 = vmul.f32 %v6896_v25, %v3436_v35  ;;  %v3287_v60 = vpop.f32.mrf.mxu1  ;;  %v3197_v1 = vadd.f32 %v3196_v18, %v6572_v9  ;;  %v3241_v58 = vadd.f32 %v3240_v24, %v6572_v9 }
 0x79b   :  { %3867 = vmatmul.f32.gmra.mxu2 %v3562_v3  ;;  %v3371_v3 = vmul.f32 0.1, %v3194_v8  ;;  %v3518_v17 = vmul.f32 %v6909_v30, %v3438_v53  ;;  %v3288_v18 = vadd.f32 %v3287_v60, %v6637_v27 }
 0x79c   :  { %v3373_v63 = vmul.f32 0.1, %v3282_v4  ;;  %v3331_v39 = vpop.f32.mrf.mxu2 }
 0x79d   :  { %v3443_v55 = vmax.f32 %v3194_v8, %v3371_v3  ;;  %v3332_v6 = vadd.f32 %v3331_v39, %v6637_v27  ;;  %v3389_v57 = vmul.f32 0.1, %v3288_v18 }
 0x79f   :  { %v3523_v12 = vmul.f32 %v6894_v22, %v3443_v55  ;;  %v3390_v2 = vmul.f32 0.1, %v3332_v6  ;;  %v3461_v35 = vmax.f32 %v3288_v18, %v3389_v57 }
 0x7a0   :  { %3887 = vmatmul.f32.vlgmr.msrb.gmra.mxu0 %v3499_v33  ;;  %v3329_v33 = vadd.f32 %v3328_v14, %v6572_v9  ;;  %v3200_v9 = vadd.f32 %v3199_v21, %v6637_v27 }
 0x7a1   :  { %3931 = vmatmul.f32.vlgmr.msra.gmra.mxu3 %v3500_v11  ;;  %v3243_v52 = vpop.f32.mrf.mxu3  ;;  %v3445_v11 = vmax.f32 %v3282_v4, %v3373_v63  ;;  %v3462_v4 = vmax.f32 %v3332_v6, %v3390_v2  ;;  %v3541_v61 = vmul.f32 %v6900_v62, %v3461_v35 }
 0x7a2   :  { %3975 = vmatmul.f32.vlgmr.msra.gmra.mxu1 %v3501_v49  ;;  %v3379_v49 = vmul.f32 0.1, %v3197_v1  ;;  %v3202_v44 = vpop.f32.mrf.mxu0  ;;  %v3382_v47 = vmul.f32 0.1, %v3329_v33  ;;  %v3290_v13 = vpop.f32.mrf.mxu1  ;;  %v3244_v51 = vadd.f32 %v3243_v52, %v6637_v27  ;;  %v3387_v59 = vmul.f32 0.1, %v3200_v9 }
 0x7a3   :  { %4019 = vmatmul.f32.vlgmr.msrb.gmra.mxu2 %v3502_v29  ;;  %v3525_v38 = vmul.f32 %v6900_v62, %v3445_v11  ;;  %v3380_v29 = vmul.f32 0.1, %v3241_v58  ;;  %v3203_v8 = vadd.f32 %v3202_v44, %v6704_v10  ;;  %v3291_v28 = vadd.f32 %v3290_v13, %v6704_v10 }
 0x7a4   :  { %v3451_v23 = vmax.f32 %v3197_v1, %v3379_v49  ;;  %v3454_v26 = vmax.f32 %v3329_v33, %v3382_v47  ;;  %v3388_v24 = vmul.f32 0.1, %v3244_v51  ;;  %v3459_v27 = vmax.f32 %v3200_v9, %v3387_v59 }
 0x7a5   :  { %v3452_v54 = vmax.f32 %v3241_v58, %v3380_v29  ;;  %v3397_v5 = vmul.f32 0.1, %v3291_v28  ;;  %v3542_v52 = vmul.f32 %v6909_v30, %v3462_v4 }
 0x7a6   :  { %v3531_v19 = vmul.f32 %v6894_v22, %v3451_v23  ;;  %v3534_v14 = vmul.f32 %v6909_v30, %v3454_v26  ;;  %v3460_v53 = vmax.f32 %v3244_v51, %v3388_v24  ;;  %v3539_v21 = vmul.f32 %v6894_v22, %v3459_v27 }
 0x7a7   :  { %v3469_v1 = vmax.f32 %v3291_v28, %v3397_v5 }
 0x7a8   :  { %3890 = vmatmul.f32.gmra.mxu0 %v3507_v36 }
 0x7a9   :  { %3934 = vmatmul.f32.gmra.mxu3 %v3508_v45  ;;  %v3246_v36 = vpop.f32.mrf.mxu3  ;;  %v3334_v45 = vpop.f32.mrf.mxu2  ;;  %v3549_v29 = vmul.f32 %v6900_v62, %v3469_v1 }
 0x7aa   :  { %3978 = vmatmul.f32.gmra.mxu1 %v3509_v0  ;;  %v3532_v0 = vmul.f32 %v6896_v25, %v3452_v54  ;;  %v3205_v42 = vpop.f32.mrf.mxu0  ;;  %v3247_v46 = vadd.f32 %v3246_v36, %v6704_v10  ;;  %v3293_v41 = vpop.f32.mrf.mxu1 }
 0x7ab   :  { %4022 = vmatmul.f32.gmra.mxu2 %v3510_v50  ;;  %v3533_v50 = vmul.f32 %v6900_v62, %v3453_v32  ;;  %v3294_v39 = vadd.f32 %v3293_v41, %v6758_v40 }
 0x7b0   :  { %3893 = vmatmul.f32.gmra.mxu0 %v3515_v16  ;;  %v3335_v16 = vadd.f32 %v3334_v45, %v6704_v10  ;;  %v3206_v10 = vadd.f32 %v3205_v42, %v6758_v40 }
 0x7b1   :  { %3937 = vmatmul.f32.gmra.mxu3 %v3516_v34  ;;  %v3540_v34 = vmul.f32 %v6896_v25, %v3460_v53  ;;  %v3249_v3 = vpop.f32.mrf.mxu3  ;;  %v3337_v60 = vpop.f32.mrf.mxu2 }
 0x7b2   :  { %3981 = vmatmul.f32.gmra.mxu1 %v3517_v56  ;;  %v3395_v56 = vmul.f32 0.1, %v3203_v8  ;;  %v3398_v63 = vmul.f32 0.1, %v3335_v16  ;;  %v3250_v58 = vadd.f32 %v3249_v3, %v6758_v40  ;;  %v3208_v31 = vpop.f32.mrf.mxu0  ;;  %v3338_v11 = vadd.f32 %v3337_v60, %v6758_v40 }
 0x7b3   :  { %4025 = vmatmul.f32.gmra.mxu2 %v3518_v17  ;;  %v3396_v17 = vmul.f32 0.1, %v3247_v46  ;;  %v3403_v49 = vmul.f32 0.1, %v3206_v10  ;;  %v3209_v23 = vadd.f32 %v3208_v31, %v6852_v48 }
 0x7b4   :  { %v3467_v55 = vmax.f32 %v3203_v8, %v3395_v56  ;;  %v3470_v33 = vmax.f32 %v3335_v16, %v3398_v63  ;;  %v3404_v44 = vmul.f32 0.1, %v3250_v58  ;;  %v3406_v47 = vmul.f32 0.1, %v3338_v11 }
 0x7b5   :  { %v3468_v37 = vmax.f32 %v3247_v46, %v3396_v17  ;;  %v3475_v40 = vmax.f32 %v3206_v10, %v3403_v49 }
 0x7b6   :  { %v3547_v15 = vmul.f32 %v6894_v22, %v3467_v55  ;;  %v3476_v54 = vmax.f32 %v3250_v58, %v3404_v44  ;;  %v3478_v26 = vmax.f32 %v3338_v11, %v3406_v47 }
 0x7b7   :  { %v3555_v32 = vmul.f32 %v6894_v22, %v3475_v40 }
 0x7b8   :  { %3896 = vmatmul.f32.gmra.mxu0 %v3523_v12  ;;  %v3296_v12 = vpop.f32.mrf.mxu1  ;;  %v3558_v2 = vmul.f32 %v6909_v30, %v3478_v26 }
 0x7b9   :  { %3940 = vmatmul.f32.gmra.mxu3 %v3524_v20  ;;  %v3548_v20 = vmul.f32 %v6896_v25, %v3468_v37  ;;  %v3252_v7 = vpop.f32.mrf.mxu3  ;;  %v3340_v13 = vpop.f32.mrf.mxu2  ;;  %v3297_v18 = vadd.f32 %v3296_v12, %v6852_v48 }
 0x7ba   :  { %3984 = vmatmul.f32.gmra.mxu1 %v3525_v38  ;;  %v3405_v38 = vmul.f32 0.1, %v3294_v39  ;;  %v3253_v51 = vadd.f32 %v3252_v7, %v6852_v48  ;;  %v3341_v6 = vadd.f32 %v3340_v13, %v6852_v48 }
 0x7bb   :  { %4028 = vmatmul.f32.gmra.mxu2 %v3526_v43  ;;  %v3550_v43 = vmul.f32 %v6909_v30, %v3470_v33  ;;  %v3413_v59 = vmul.f32 0.1, %v3297_v18 }
 0x7bc   :  { %v3477_v9 = vmax.f32 %v3294_v39, %v3405_v38  ;;  %v3414_v24 = vmul.f32 0.1, %v3341_v6 }
 0x7bd   :  { %v3485_v48 = vmax.f32 %v3297_v18, %v3413_v59 }
 0x7be   :  { %v3557_v57 = vmul.f32 %v6900_v62, %v3477_v9  ;;  %v3486_v8 = vmax.f32 %v3341_v6, %v3414_v24 }
 0x7c0   :  { %3899 = vmatmul.f32.gmra.mxu0 %v3531_v19  ;;  %v3556_v19 = vmul.f32 %v6896_v25, %v3476_v54  ;;  %v3566_v3 = vmul.f32 %v6909_v30, %v3486_v8 }
 0x7c1   :  { %3943 = vmatmul.f32.gmra.mxu3 %v3532_v0  ;;  %v3411_v0 = vmul.f32 0.1, %v3209_v23 }
 0x7c2   :  { %3987 = vmatmul.f32.gmra.mxu1 %v3533_v50  ;;  %v3412_v50 = vmul.f32 0.1, %v3253_v51 }
 0x7c3   :  { %4031 = vmatmul.f32.gmra.mxu2 %v3534_v14  ;;  %v3483_v14 = vmax.f32 %v3209_v23, %v3411_v0 }
 0x7c4   :  { %v3484_v27 = vmax.f32 %v3253_v51, %v3412_v50 }
 0x7c5   :  { %v3563_v46 = vmul.f32 %v6894_v22, %v3483_v14 }
 0x7c6   :  { %v3564_v16 = vmul.f32 %v6896_v25, %v3484_v27 }
 0x7c8   :  { %3902 = vmatmul.f32.gmra.mxu0 %v3539_v21  ;;  %v3565_v21 = vmul.f32 %v6900_v62, %v3485_v48 }
 0x7c9   :  { %3946 = vmatmul.f32.gmra.mxu3 %v3540_v34 }
 0x7ca   :  { %3990 = vmatmul.f32.gmra.mxu1 %v3541_v61 }
 0x7cb   :  { %4034 = vmatmul.f32.gmra.mxu2 %v3542_v52 }
 0x7d0   :  { %3905 = vmatmul.f32.gmra.mxu0 %v3547_v15 }
 0x7d1   :  { %3949 = vmatmul.f32.gmra.mxu3 %v3548_v20 }
 0x7d2   :  { %3993 = vmatmul.f32.gmra.mxu1 %v3549_v29 }
 0x7d3   :  { %4037 = vmatmul.f32.gmra.mxu2 %v3550_v43 }
 0x7d5   :  { %v3712_v36 = vpop.f32.mrf.mxu0 }
 0x7d7   :  { %v3800_v45 = vpop.f32.mrf.mxu1 }
 0x7d8   :  { %3908 = vmatmul.f32.gmra.mxu0 %v3555_v32 }
 0x7d9   :  { %3952 = vmatmul.f32.gmra.mxu3 %v3556_v19 }
 0x7da   :  { %3996 = vmatmul.f32.gmra.mxu1 %v3557_v57 }
 0x7db   :  { %4040 = vmatmul.f32.gmra.mxu2 %v3558_v2 }
 0x7dc   :  { %v3756_v42 = vpop.f32.mrf.mxu3 }
 0x7dd   :  { %v3757_v35 = vadd.f32 %v3756_v42, %v3712_v36  ;;  %v3715_v28 = vpop.f32.mrf.mxu0 }
 0x7de   :  { %v3844_v53 = vpop.f32.mrf.mxu2 }
 0x7df   :  { %v3801_v41 = vadd.f32 %v3800_v45, %v3757_v35  ;;  %v3803_v4 = vpop.f32.mrf.mxu1 }
 0x7e0   :  { %3911 = vmatmul.f32.gmra.mxu0 %v3563_v46 }
 0x7e1   :  { %v3845_v34 = vadd.f32 %v3844_v53, %v3801_v41  ;;  %3955 = vmatmul.f32.gmra.mxu3 %v3564_v16 }
 0x7e2   :  { %3999 = vmatmul.f32.gmra.mxu1 %v3565_v21 }
 0x7e3   :  { %4043 = vmatmul.f32.gmra.mxu2 %v3566_v3 }
 0x7e4   :  { %v3759_v56 = vpop.f32.mrf.mxu3 }
 0x7e5   :  { %v3760_v5 = vadd.f32 %v3759_v56, %v3715_v28  ;;  %v3718_v60 = vpop.f32.mrf.mxu0 }
 0x7e6   :  { %v3847_v61 = vpop.f32.mrf.mxu2 }
 0x7e7   :  { %v3804_v17 = vadd.f32 %v3803_v4, %v3760_v5  ;;  %v3806_v63 = vpop.f32.mrf.mxu1 }
 0x7e9   :  { %v3848_v22 = vadd.f32 %v3847_v61, %v3804_v17 }
 0x7ec   :  { %v3762_v52 = vpop.f32.mrf.mxu3 }
 0x7ed   :  { %v3763_v55 = vadd.f32 %v3762_v52, %v3718_v60  ;;  %v3721_v10 = vpop.f32.mrf.mxu0 }
 0x7ee   :  { %v3850_v25 = vpop.f32.mrf.mxu2 }
 0x7ef   :  { %v3807_v1 = vadd.f32 %v3806_v63, %v3763_v55  ;;  %v3809_v39 = vpop.f32.mrf.mxu1 }
 0x7f1   :  { %v3851_v62 = vadd.f32 %v3850_v25, %v3807_v1 }
 0x7f4   :  { %v3765_v37 = vpop.f32.mrf.mxu3 }
 0x7f5   :  { %v3766_v58 = vadd.f32 %v3765_v37, %v3721_v10  ;;  %v3724_v31 = vpop.f32.mrf.mxu0 }
 0x7f6   :  { %v3853_v30 = vpop.f32.mrf.mxu2 }
 0x7f7   :  { %v3810_v33 = vadd.f32 %v3809_v39, %v3766_v58  ;;  %v3812_v11 = vpop.f32.mrf.mxu1 }
 0x7f9   :  { %v3854_v15 = vadd.f32 %v3853_v30, %v3810_v33 }
 0x7fc   :  { %v3768_v12 = vpop.f32.mrf.mxu3 }
 0x7fd   :  { %v3769_v20 = vadd.f32 %v3768_v12, %v3724_v31  ;;  %v3727_v49 = vpop.f32.mrf.mxu0 }
 0x7fe   :  { %v3856_v38 = vpop.f32.mrf.mxu2 }
 0x7ff   :  { %v3813_v29 = vadd.f32 %v3812_v11, %v3769_v20  ;;  %v3815_v44 = vpop.f32.mrf.mxu1 }
 0x801   :  { %v6976_v47 = vadd.f32 %v3856_v38, %v3813_v29 }
 0x804   :  { %v3771_v43 = vpop.f32.mrf.mxu3 }
 0x805   :  { %v3772_v7 = vadd.f32 %v3771_v43, %v3727_v49  ;;  %v3730_v13 = vpop.f32.mrf.mxu0 }
 0x806   :  { %v3859_v40 = vpop.f32.mrf.mxu2 }
 0x807   :  { %v3816_v23 = vadd.f32 %v3815_v44, %v3772_v7  ;;  %v3818_v9 = vpop.f32.mrf.mxu1 }
 0x809   :  { %v6978_v18 = vadd.f32 %v3859_v40, %v3816_v23 }
 0x80c   :  { %v3774_v54 = vpop.f32.mrf.mxu3 }
 0x80d   :  { %v3775_v51 = vadd.f32 %v3774_v54, %v3730_v13  ;;  %v3733_v26 = vpop.f32.mrf.mxu0 }
 0x80e   :  { %v3862_v6 = vpop.f32.mrf.mxu2 }
 0x80f   :  { %v3819_v36 = vadd.f32 %v3818_v9, %v3775_v51  ;;  %v3821_v32 = vpop.f32.mrf.mxu1 }
 0x811   :  { %v6980_v45 = vadd.f32 %v3862_v6, %v3819_v36 }
 0x814   :  { %v3777_v19 = vpop.f32.mrf.mxu3 }
 0x815   :  { %v3778_v0 = vadd.f32 %v3777_v19, %v3733_v26  ;;  %v3736_v59 = vpop.f32.mrf.mxu0 }
 0x816   :  { %v3865_v57 = vpop.f32.mrf.mxu2 }
 0x817   :  { %v3822_v50 = vadd.f32 %v3821_v32, %v3778_v0  ;;  %v3824_v24 = vpop.f32.mrf.mxu1 }
 0x819   :  { %v6982_v2 = vadd.f32 %v3865_v57, %v3822_v50 }
 0x81c   :  { %v3780_v14 = vpop.f32.mrf.mxu3 }
 0x81d   :  { %v3781_v48 = vadd.f32 %v3780_v14, %v3736_v59  ;;  %v3888_v42 = vpop.f32.mrf.mxu0 }
 0x81e   :  { %v3868_v27 = vpop.f32.mrf.mxu2  ;;  %v3889_v8 = vadd.f32 %v3888_v42, %v3845_v34 }
 0x81f   :  { %v3825_v35 = vadd.f32 %v3824_v24, %v3781_v48  ;;  %v3976_v28 = vpop.f32.mrf.mxu1 }
 0x821   :  { %v3869_v53 = vadd.f32 %v3868_v27, %v3825_v35 }
 0x824   :  { %v3932_v46 = vpop.f32.mrf.mxu3 }
 0x825   :  { %v3933_v41 = vadd.f32 %v3932_v46, %v3889_v8  ;;  %v3891_v4 = vpop.f32.mrf.mxu0 }
 0x826   :  { %v4020_v16 = vpop.f32.mrf.mxu2  ;;  %v3892_v21 = vadd.f32 %v3891_v4, %v3848_v22 }
 0x827   :  { %v3977_v3 = vadd.f32 %v3976_v28, %v3933_v41  ;;  %v3979_v56 = vpop.f32.mrf.mxu1 }
 0x829   :  { %v6984_v5 = vadd.f32 %v4020_v16, %v3977_v3 }
 0x82c   :  { %v3935_v60 = vpop.f32.mrf.mxu3 }
 0x82d   :  { %v3936_v61 = vadd.f32 %v3935_v60, %v3892_v21  ;;  %v3894_v17 = vpop.f32.mrf.mxu0 }
 0x82e   :  { %v4023_v63 = vpop.f32.mrf.mxu2  ;;  %v3895_v52 = vadd.f32 %v3894_v17, %v3851_v62 }
 0x82f   :  { %v3980_v55 = vadd.f32 %v3979_v56, %v3936_v61  ;;  %v3982_v10 = vpop.f32.mrf.mxu1 }
 0x831   :  { %v6986_v34 = vadd.f32 %v4023_v63, %v3980_v55 }
 0x834   :  { %v3938_v25 = vpop.f32.mrf.mxu3 }
 0x835   :  { %v3939_v1 = vadd.f32 %v3938_v25, %v3895_v52  ;;  %v3897_v39 = vpop.f32.mrf.mxu0 }
 0x836   :  { %v4026_v37 = vpop.f32.mrf.mxu2  ;;  %v3898_v58 = vadd.f32 %v3897_v39, %v3854_v15 }
 0x837   :  { %v3983_v31 = vadd.f32 %v3982_v10, %v3939_v1  ;;  %v3985_v22 = vpop.f32.mrf.mxu1 }
 0x839   :  { %v6988_v30 = vadd.f32 %v4026_v37, %v3983_v31 }
 0x83c   :  { %v3941_v33 = vpop.f32.mrf.mxu3 }
 0x83d   :  { %v3942_v11 = vadd.f32 %v3941_v33, %v3898_v58  ;;  %v3900_v12 = vpop.f32.mrf.mxu0 }
 0x83e   :  { %v4029_v20 = vpop.f32.mrf.mxu2  ;;  %v3901_v42 = vadd.f32 %v3900_v12, %v6976_v47 }
 0x83f   :  { %v3986_v49 = vadd.f32 %v3985_v22, %v3942_v11  ;;  %v3988_v38 = vpop.f32.mrf.mxu1 }
 0x841   :  { %v4030_v62 = vadd.f32 %v4029_v20, %v3986_v49  ;;  %v4070_v20 = vld [vmem:[#allocation2 + $0x2f0] sm:$0x3] }
 0x844   :  { %v3944_v29 = vpop.f32.mrf.mxu3 }
 0x845   :  { %v3903_v44 = vpop.f32.mrf.mxu0  ;;  %v3945_v46 = vadd.f32 %v3944_v29, %v3901_v42 }
 0x846   :  { %v4032_v43 = vpop.f32.mrf.mxu2  ;;  %v3904_v27 = vadd.f32 %v3903_v44, %v6978_v18 }
 0x847   :  { %v3991_v7 = vpop.f32.mrf.mxu1  ;;  %v3989_v60 = vadd.f32 %v3988_v38, %v3945_v46 }
 0x84c   :  { %v3947_v13 = vpop.f32.mrf.mxu3 }
 0x84d   :  { %v3906_v40 = vpop.f32.mrf.mxu0  ;;  %v3948_v41 = vadd.f32 %v3947_v13, %v3904_v27 }
 0x84e   :  { %v4035_v23 = vpop.f32.mrf.mxu2  ;;  %v3907_v8 = vadd.f32 %v3906_v40, %v6980_v45 }
 0x84f   :  { %v3994_v9 = vpop.f32.mrf.mxu1  ;;  %v3992_v61 = vadd.f32 %v3991_v7, %v3948_v41 }
 0x851   :  { %v4036_v55 = vadd.f32 %v4035_v23, %v3992_v61 }
 0x854   :  { %v3950_v15 = vpop.f32.mrf.mxu3 }
 0x855   :  { %v3909_v51 = vpop.f32.mrf.mxu0 }
 0x856   :  { %v4038_v54 = vpop.f32.mrf.mxu2  ;;  %v3910_v35 = vadd.f32 %v3909_v51, %v6982_v2  ;;  %v4033_v2 = vadd.f32 %v4032_v43, %v3989_v60 }
 0x857   :  { %v3997_v26 = vpop.f32.mrf.mxu1 }
 0x85c   :  { %v3953_v6 = vpop.f32.mrf.mxu3 }
 0x85d   :  { %v3912_v32 = vpop.f32.mrf.mxu0  ;;  %v3954_v4 = vadd.f32 %v3953_v6, %v3910_v35 }
 0x85e   :  { %v4041_v36 = vpop.f32.mrf.mxu2  ;;  %v3913_v19 = vadd.f32 %v3912_v32, %v3869_v53  ;;  %v3951_v53 = vadd.f32 %v3950_v15, %v3907_v8 }
 0x85f   :  { %v4000_v57 = vpop.f32.mrf.mxu1  ;;  %v3998_v47 = vadd.f32 %v3997_v26, %v3954_v4 }
 0x860   :  { %v3995_v17 = vadd.f32 %v3994_v9, %v3951_v53 }
 0x861   :  { %v4042_v25 = vadd.f32 %v4041_v36, %v3998_v47 }
 0x862   :  { %v4039_v10 = vadd.f32 %v4038_v54, %v3995_v17 }
 0x864   :  { %v3956_v0 = vpop.f32.mrf.mxu3 }
 0x865   :  { %v3957_v59 = vadd.f32 %v3956_v0, %v3913_v19 }
 0x866   :  { %v4044_v24 = vpop.f32.mrf.mxu2 }
 0x867   :  { %v4001_v50 = vadd.f32 %v4000_v57, %v3957_v59 }
 0x869   :  { %v4045_v14 = vadd.f32 %v4044_v24, %v4001_v50 }
 0x86b   :  { %4415 = vrcp.f32 %v4045_v14  ;;  %v4058_v21 = vand.u32 2147483648, %v4045_v14  ;;  %v4056_v56 = vand.u32 2147483647, %v4045_v14  ;;  %vm4052_vm4 = vweird.f32 %v4045_v14 }
 0x86d   :  { %v4059_v18 = vor.u32 1.1754944e-38, %v4058_v21  ;;  %vm4057_vm6 = vcmp.eq.f32.partialorder %v4056_v56, 8.507059e+37 }
 0x871   :  { %v4416_v48 = vpop.eup %4415 }
 0x872   :  { %v4048_v28 = vmul.f32 %v4416_v48, %v4045_v14  ;;  %vm4053_vm3 = vweird.f32 %v4416_v48 }
 0x873   :  { %vm4054_vm5 = vmor %vm4052_vm4, %vm4053_vm3 }
 0x874   :  { %v4049_v16 = vsub.f32 1.0, %v4048_v28 }
 0x876   :  { %v4050_v3 = vmul.f32 %v4416_v48, %v4049_v16 }
 0x878   :  { %v4051_v63 = vadd.f32 %v4416_v48, %v4050_v3 }
 0x87a   :  { %v4055_v45 = vsel %vm4054_vm5, %v4416_v48, %v4051_v63 }
 0x87b   :  { %v4060_v52 = vsel %vm4057_vm6, %v4059_v18, %v4055_v45 }
 0x87c   :  { %v4061_v1 = vperm.slane %v4060_v52, 0 }
 0x87e   :  { %v4069_v39 = vmul.f32 %v4061_v1, %v4042_v25  ;;  %v4068_v37 = vmul.f32 %v4061_v1, %v4039_v10  ;;  %v4067_v58 = vmul.f32 %v4061_v1, %v4036_v55  ;;  %v4066_v31 = vmul.f32 %v4061_v1, %v4033_v2 }
 0x87f   :  { %v4065_v22 = vmul.f32 %v4061_v1, %v4030_v62  ;;  %v4064_v33 = vmul.f32 %v4061_v1, %v6988_v30  ;;  %v4063_v11 = vmul.f32 %v4061_v1, %v6986_v34  ;;  %v4062_v12 = vmul.f32 %v4061_v1, %v6984_v5 }
 0x880   :  { %4082 = vmatpush.msra.mxu0 %v4069_v39 }
 0x882   :  { %4083 = vmatpush.msra.mxu0 %v4068_v37 }
 0x884   :  { %4084 = vmatpush.msra.mxu0 %v4067_v58 }
 0x886   :  { %4085 = vmatpush.msra.mxu0 %v4066_v31 }
 0x888   :  { %4086 = vmatpush.msra.mxu0 %v4065_v22 }
 0x88a   :  { %4087 = vmatpush.msra.mxu0 %v4064_v33 }
 0x88c   :  { %4088 = vmatpush.msra.mxu0 %v4063_v11 }
 0x88e   :  { %4089 = vmatpush.msra.mxu0 %v4062_v12 }
 0x88f   :  { %4377 = vmatmul.msk.f32.vlgmr.msra.gmra.mxu0 %vm317_vm0, %v4070_v20 }
 0x90c   :  { %v4091_v5 = vpop.f32.mrf.mxu0 }
 0x90d   :  { %4095 = vst.msk [vmem:[#allocation5] sm:$0x3] %vm4094_vm7, %v4091_v5 }
 0x90e   :  { %4106 = dma.vmem_to_hbm [thread:$0]  %s4102_s22, 32, %s4104_s24, [#allocation4]  }
 0x90f   :  { %4479 = dma.done.wait [#allocation4], 32  }
 0x910   :  { %4480 = vsyncadd [#allocation4], 4294967264 }
 0x911   :  { %4111 = vsyncpa [#allocation3], 1 }
 0x912   :  { %4112 = vsyncpa [#allocation4], 1 }

</bundles_post_ra>
